<compile_context>
chip_gen: v6e
topology: v6e:2x2x1
jax: 0.10.0
libtpu: 0.0.40
codegen_flags: <defaults>
</compile_context>

<pallas_src>
import functools

import jax
import jax.numpy as jnp
from jax.experimental import pallas as pl
from jax.experimental.pallas import tpu as pltpu

_C1 = 0.01 ** 2
_C2 = 0.03 ** 2


# ---------------------------------------------------------------------------
# Shift helpers.  When the last two dims are (8,128)-aligned (guaranteed at
# production resolutions by the wrapper padding) shifts lower to XLU rotates
# (pltpu.roll); otherwise a slice+concat fallback is used.  Boundary values
# are arbitrary/clamped — callers fix them with the hoisted reflect masks.
# ---------------------------------------------------------------------------
def _rolls_ok(x):
    return (x.shape[-1] % 128 == 0) and (x.shape[-2] % 8 == 0)


def _shift_pair(x, axis):
    """Raw (prev, next): prev[j]=x[j-1] (j=0 arbitrary), next[j]=x[j+1] (j=n-1 arbitrary)."""
    n = x.shape[axis]
    ax = axis % x.ndim
    if _rolls_ok(x):
        return pltpu.roll(x, 1, axis=ax), pltpu.roll(x, n - 1, axis=ax)

    def take(lo, hi):
        sl = [slice(None)] * x.ndim
        sl[ax] = slice(lo, hi)
        return x[tuple(sl)]

    prev = jnp.concatenate([take(0, 1), take(0, n - 1)], axis=ax)
    nxt = jnp.concatenate([take(1, n), take(n - 1, n)], axis=ax)
    return prev, nxt


def _shift_next(x, axis):
    """next[j] = x[j+1]; value at the last index is garbage (caller masks)."""
    n = x.shape[axis]
    ax = axis % x.ndim
    if _rolls_ok(x):
        return pltpu.roll(x, n - 1, axis=ax)
    sl_hi = [slice(None)] * x.ndim
    sl_hi[ax] = slice(1, n)
    sl_last = [slice(None)] * x.ndim
    sl_last[ax] = slice(n - 1, n)
    return jnp.concatenate([x[tuple(sl_hi)], x[tuple(sl_last)]], axis=ax)


def _refl3(x, prev, nxt, first_m, last_m):
    """3-tap sum with 1-px reflection at the ORIGINAL image boundary (hoisted masks)."""
    return jnp.where(first_m, nxt, prev) + x + jnp.where(last_m, prev, nxt)


# ---------------------------------------------------------------------------
# Pallas kernel: one grid step == one (image-pair, direction) loss evaluation.
# ---------------------------------------------------------------------------
def dp_losses_kernel(ti_ref, ri_ref, *refs, auto_mask, h_orig, w_orig):
    del ti_ref, ri_ref  # consumed by the index_maps only
    if auto_mask:
        (tgt_ref, ref_ref, depth_ref, warp_ref, valid_ref,
         projd_ref, compd_ref, out_ref) = refs
    else:
        (tgt_ref, depth_ref, warp_ref, valid_ref,
         projd_ref, compd_ref, out_ref) = refs
        ref_ref = None

    tgt = tgt_ref[...].astype(jnp.float32)       # [B, 3, Hp, Wp]
    warped = warp_ref[...].astype(jnp.float32)   # [B, 3, Hp, Wp]
    valid = valid_ref[...].astype(jnp.float32)   # [B, 1, Hp, Wp]
    projd = projd_ref[...].astype(jnp.float32)   # [B, 1, Hp, Wp]
    compd = compd_ref[...].astype(jnp.float32)   # [B, 1, Hp, Wp]
    depth = depth_ref[...].astype(jnp.float32)   # [B, 1, Hp, Wp]
    B, _, Hp, Wp = tgt.shape

    # ---- hoisted boundary / in-bounds masks (computed once, (1,1,Hp,Wp)) ----
    col = jax.lax.broadcasted_iota(jnp.int32, (1, 1, Hp, Wp), 3)
    row = jax.lax.broadcasted_iota(jnp.int32, (1, 1, Hp, Wp), 2)
    first_col = col == 0
    last_col = col == (w_orig - 1)
    first_row = row == 0
    last_row = row == (h_orig - 1)
    in_col = col < w_orig
    in_row = row < h_orig
    inb = (in_col & in_row).astype(jnp.float32)
    mask_x = ((col < (w_orig - 1)) & in_row).astype(jnp.float32)
    mask_y = ((row < (h_orig - 1)) & in_col).astype(jnp.float32)

    # ---- SSIM(tgt, warped): separable reflect-padded 3x3 box sums ----
    # Share the W-axis rolls across the five pools; rolled products are
    # derived algebraically from the rolled inputs.
    tP, tN = _shift_pair(tgt, -1)
    wP, wN = _shift_pair(warped, -1)
    sx_w = _refl3(tgt, tP, tN, first_col, last_col)
    sy_w = _refl3(warped, wP, wN, first_col, last_col)
    sxx_w = _refl3(tgt * tgt, tP * tP, tN * tN, first_col, last_col)
    syy_w = _refl3(warped * warped, wP * wP, wN * wN, first_col, last_col)
    sxy_w = _refl3(tgt * warped, tP * wP, tN * wN, first_col, last_col)

    def hsum(s):
        p, n = _shift_pair(s, -2)
        return _refl3(s, p, n, first_row, last_row)

    Sx, Sy = hsum(sx_w), hsum(sy_w)
    Sxx, Syy, Sxy = hsum(sxx_w), hsum(syy_w), hsum(sxy_w)

    # Fold the 1/9 pool scale into the constants:
    #   mu = S/9, sigma = Sq/9 - (S/9)^2; common 1/81 factors cancel in the ratio.
    sxsy = Sx * Sy
    sx2 = Sx * Sx
    sy2 = Sy * Sy
    n1 = 2.0 * sxsy + 81.0 * _C1
    n2 = 18.0 * Sxy - 2.0 * sxsy + 81.0 * _C2
    d1 = sx2 + sy2 + 81.0 * _C1
    d2 = 9.0 * (Sxx + Syy) - sx2 - sy2 + 81.0 * _C2
    ssim_map = jnp.clip(
        0.5 * (1.0 - n1 * n2 * pl.reciprocal(d1 * d2, approx=True)), 0.0, 1.0)

    # ---- photometric / consistency terms ----
    diff_abs = jnp.abs(tgt - warped)                                   # [B,3,Hp,Wp]
    d_cons_r = jnp.abs(compd - projd) * pl.reciprocal(
        jnp.abs(compd + projd) + 1e-12, approx=True)                   # [B,1,Hp,Wp]
    occ = 1.0 - d_cons_r                                               # occlusion weight

    if auto_mask:
        refi = ref_ref[...].astype(jnp.float32)
        am = (jnp.mean(diff_abs, axis=1, keepdims=True)
              < jnp.mean(jnp.abs(tgt - refi), axis=1, keepdims=True))
        valid = jnp.where(am, valid, 0.0)

    phot = jnp.mean(0.85 * ssim_map + 0.15 * jnp.minimum(diff_abs, 1.0),
                    axis=1, keepdims=True)                             # [B,1,Hp,Wp]

    # ---- edge-aware smoothness on mean-normalized depth (disp_smooth_loss) ----
    # TODO(synk): exact disp_smooth_loss source not provided; SC-Depth /
    # monodepth2 get_smooth_loss (mean-normalized) is used.
    dsum = jnp.sum(jnp.sum(depth * inb, axis=3, keepdims=True), axis=2, keepdims=True)
    inv_dmean = 1.0 / (dsum * (1.0 / float(h_orig * w_orig)) + 1e-7)   # [B,1,1,1]
    gdx = jnp.abs(depth - _shift_next(depth, -1)) * inv_dmean
    gdy = jnp.abs(depth - _shift_next(depth, -2)) * inv_dmean
    gix = jnp.mean(jnp.abs(tgt - tN), axis=1, keepdims=True)           # reuse W roll of tgt
    giy = jnp.mean(jnp.abs(tgt - _shift_next(tgt, -2)), axis=1, keepdims=True)
    smooth = (jnp.sum(gdx * jnp.exp(-gix) * mask_x)
              * (1.0 / float(B * h_orig * (w_orig - 1)))
              + jnp.sum(gdy * jnp.exp(-giy) * mask_y)
              * (1.0 / float(B * (h_orig - 1) * w_orig)))

    # ---- masked-mean numerators / denominator (mean_on_mask) ----
    phot_num = jnp.sum(phot * occ * valid)
    mask_sum = jnp.sum(valid)
    dcons_num = jnp.sum(d_cons_r * valid)

    # Pack the four scalars into row 0 of a lane-dense (8,128) output tile.
    r8 = jax.lax.broadcasted_iota(jnp.int32, (8, 128), 0)
    c128 = jax.lax.broadcasted_iota(jnp.int32, (8, 128), 1)
    row0 = r8 == 0
    out_ref[...] = (phot_num * (row0 & (c128 == 0)).astype(jnp.float32)
                    + mask_sum * (row0 & (c128 == 1)).astype(jnp.float32)
                    + dcons_num * (row0 & (c128 == 2)).astype(jnp.float32)
                    + smooth * (row0 & (c128 == 3)).astype(jnp.float32))


# ---------------------------------------------------------------------------
# Wrapper around pallas_call.
# ---------------------------------------------------------------------------
def _round_up(n, m):
    return ((n + m - 1) // m) * m


def _pad_hw(x, hp, wp):
    h, w = x.shape[-2], x.shape[-1]
    if h == hp and w == wp:
        return x
    pad = [(0, 0)] * (x.ndim - 2) + [(0, hp - h), (0, wp - w)]
    return jnp.pad(x, pad)


def dp_losses_stats(imgs_all, depths_all, tgt_idx, ref_idx,
                    warp_s, valid_s, projd_s, compd_s,
                    *, auto_mask=True, image_dtype=jnp.bfloat16):
    """Fused per-(pair,direction) loss statistics.

    imgs_all:   (3, B, 3, H, W)  base images, passed once (no duplicated stack)
    depths_all: (3, B, 1, H, W)  base depths, passed once
    tgt_idx/ref_idx: (N,) int32  which base image each direction reads
    warp/valid/projd/compd: (N, B, ., H, W)  genuinely per-direction inputs
    Returns (N, 4): [photometric numerator, mask sum, depth-consistency
    numerator, smoothness loss] per direction.
    """
    N = warp_s.shape[0]
    _, B, C, H, W = imgs_all.shape

    # Pad spatial dims so the roll fast path / lane-dense stores engage at
    # production widths (e.g. 832->896).  Pad region is excluded via `valid`
    # and the hoisted in-bounds masks, so the results are unchanged.
    Hp = _round_up(H, 8)
    W128 = _round_up(W, 128)
    Wp = W128 if (W >= 128 and (W128 - W) * 4 <= W) else W

    imgs_p = _pad_hw(imgs_all.astype(image_dtype), Hp, Wp)
    deps_p = _pad_hw(depths_all, Hp, Wp)
    warp_p = _pad_hw(warp_s, Hp, Wp)
    valid_p = _pad_hw(valid_s, Hp, Wp)
    projd_p = _pad_hw(projd_s, Hp, Wp)
    compd_p = _pad_hw(compd_s, Hp, Wp)

    kern = functools.partial(dp_losses_kernel, auto_mask=auto_mask,
                             h_orig=H, w_orig=W)

    img_t_spec = pl.BlockSpec((None, B, C, Hp, Wp),
                              lambda i, ti, ri: (ti[i], 0, 0, 0, 0))
    img_r_spec = pl.BlockSpec((None, B, C, Hp, Wp),
                              lambda i, ti, ri: (ri[i], 0, 0, 0, 0))
    dep_spec = pl.BlockSpec((None, B, 1, Hp, Wp),
                            lambda i, ti, ri: (ti[i], 0, 0, 0, 0))
    dir_img_spec = pl.BlockSpec((None, B, C, Hp, Wp),
                                lambda i, ti, ri: (i, 0, 0, 0, 0))
    dir_map_spec = pl.BlockSpec((None, B, 1, Hp, Wp),
                                lambda i, ti, ri: (i, 0, 0, 0, 0))

    in_specs = [img_t_spec]
    operands = [imgs_p]
    if auto_mask:
        in_specs.append(img_r_spec)
        operands.append(imgs_p)          # same HBM buffer, different index_map
    in_specs += [dep_spec, dir_img_spec, dir_map_spec, dir_map_spec, dir_map_spec]
    operands += [deps_p, warp_p, valid_p, projd_p, compd_p]

    # VMEM budget: per-step blocks (double-buffered) + intermediates headroom,
    # clamped to the chip's physical VMEM.
    img_bytes = B * C * Hp * Wp * jnp.dtype(image_dtype).itemsize
    map_bytes = B * Hp * Wp * 4
    step_bytes = (img_bytes * (2 if auto_mask else 1)
                  + B * C * Hp * Wp * 4 + 4 * map_bytes + 4096)
    want = max(32 * 1024 * 1024, 4 * step_bytes)
    try:
        cap = int(getattr(pltpu.get_tpu_info(), "vmem_capacity_bytes", 0))
    except Exception:
        cap = 0
    if cap <= 0:
        cap = 64 * 1024 * 1024
    vmem_limit = int(min(want, int(cap * 0.9)))

    # TODO(synk): for production resolutions on v7x (64 MiB VMEM) add an
    # H-tiled grid axis ("arbitrary") with a 1-row pool-halo carry in VMEM
    # scratch and a scalar-prefetched dmean pre-pass; whole-image blocks are
    # fine at the shapes used here and on v5e/v6e.
    out = pl.pallas_call(
        kern,
        out_shape=jax.ShapeDtypeStruct((N, 8, 128), jnp.float32),
        grid_spec=pltpu.PrefetchScalarGridSpec(
            num_scalar_prefetch=2,
            grid=(N,),
            in_specs=in_specs,
            out_specs=pl.BlockSpec((None, 8, 128), lambda i, ti, ri: (i, 0, 0)),
        ),
        # TODO(synk): on v7x verify this axis splits across both TensorCores;
        # switch to pltpu.CORE_PARALLEL if plain "parallel" does not.
        compiler_params=pltpu.CompilerParams(
            dimension_semantics=("parallel",),
            vmem_limit_bytes=vmem_limit),
    )(tgt_idx, ref_idx, *operands)
    return out[:, 0, :4]


# ---------------------------------------------------------------------------
# Plain-JAX glue: pose algebra + inverse warp (grid_sample gather).
# ---------------------------------------------------------------------------
def euler2mat(angle):  # [B,3] -> [B,3,3]
    x, y, z = angle[:, 0], angle[:, 1], angle[:, 2]
    zeros = jnp.zeros_like(z)
    ones = jnp.ones_like(z)
    cz, sz = jnp.cos(z), jnp.sin(z)
    zmat = jnp.stack([cz, -sz, zeros, sz, cz, zeros, zeros, zeros, ones],
                     axis=1).reshape(-1, 3, 3)
    cy, sy = jnp.cos(y), jnp.sin(y)
    ymat = jnp.stack([cy, zeros, sy, zeros, ones, zeros, -sy, zeros, cy],
                     axis=1).reshape(-1, 3, 3)
    cx, sx = jnp.cos(x), jnp.sin(x)
    xmat = jnp.stack([ones, zeros, zeros, zeros, cx, -sx, zeros, sx, cx],
                     axis=1).reshape(-1, 3, 3)
    return xmat @ ymat @ zmat


def pose_vec2mat(vec):  # [B,6] (tx,ty,tz,rx,ry,rz) -> [B,3,4]
    t = vec[:, :3, None]
    rot = euler2mat(vec[:, 3:])
    return jnp.concatenate([rot, t], axis=2)


def inverse_poses_loss(pose, pose_inv):
    # TODO(synk): exact inverse_poses_loss source not provided; use
    # mean |T(pose) @ T(pose_inv) - I| pose-cycle-consistency.
    B = pose.shape[0]
    bottom = jnp.tile(jnp.array([[[0.0, 0.0, 0.0, 1.0]]], jnp.float32), (B, 1, 1))
    T1 = jnp.concatenate([pose_vec2mat(pose), bottom], axis=1)
    T2 = jnp.concatenate([pose_vec2mat(pose_inv), bottom], axis=1)
    return jnp.mean(jnp.abs(T1 @ T2 - jnp.eye(4, dtype=jnp.float32)[None]))


def grid_sample_bilinear(img, grid):
    # img: [B,C,H,W], grid: [B,H,W,2] normalized (x,y) in [-1,1].
    # align_corners=True denormalization, padding_mode='zeros'.
    B, C, H, W = img.shape
    x = (grid[..., 0] + 1.0) * (W - 1) * 0.5
    y = (grid[..., 1] + 1.0) * (H - 1) * 0.5
    x0 = jnp.floor(x)
    y0 = jnp.floor(y)
    x1 = x0 + 1.0
    y1 = y0 + 1.0
    wa = (x1 - x) * (y1 - y)
    wb = (x1 - x) * (y - y0)
    wc = (x - x0) * (y1 - y)
    wd = (x - x0) * (y - y0)

    def sample(img_b, xi, yi, w):
        ok = ((xi >= 0) & (xi <= W - 1) & (yi >= 0) & (yi <= H - 1))
        xc = jnp.clip(xi, 0, W - 1).astype(jnp.int32)
        yc = jnp.clip(yi, 0, H - 1).astype(jnp.int32)
        vals = img_b[:, yc, xc]                      # [C,H,W] gather
        return vals * (w * ok.astype(img_b.dtype))[None]

    def per_batch(img_b, xb0, xb1, yb0, yb1, a, b, c, d):
        return (sample(img_b, xb0, yb0, a) + sample(img_b, xb0, yb1, b)
                + sample(img_b, xb1, yb0, c) + sample(img_b, xb1, yb1, d))

    return jax.vmap(per_batch)(img, x0, x1, y0, y1, wa, wb, wc, wd)


def inverse_warp(ref_img, tgt_depth, ref_depth, pose, intrinsics):
    # TODO(synk): exact inverse_warp source not provided; SC-Depth style
    # inverse_warp2 with a consistent align_corners=True sampling convention.
    B, _, H, W = ref_img.shape
    jj, ii = jnp.meshgrid(jnp.arange(W, dtype=jnp.float32),
                          jnp.arange(H, dtype=jnp.float32))
    pix = jnp.stack([jj, ii, jnp.ones((H, W), jnp.float32)], axis=0).reshape(3, H * W)
    Kinv = jnp.linalg.inv(intrinsics)                                   # [B,3,3]
    cam = (Kinv @ pix[None]) * tgt_depth.reshape(B, 1, H * W)           # [B,3,HW]
    pose_mat = pose_vec2mat(pose)                                       # [B,3,4]
    proj = intrinsics @ pose_mat                                        # [B,3,4]
    rot, tr = proj[:, :, :3], proj[:, :, 3:]
    pcoords = rot @ cam + tr                                            # [B,3,HW]
    X, Y = pcoords[:, 0], pcoords[:, 1]
    Z = jnp.maximum(pcoords[:, 2], 1e-3)
    Xn = 2.0 * (X / Z) / (W - 1) - 1.0
    Yn = 2.0 * (Y / Z) / (H - 1) - 1.0
    grid = jnp.stack([Xn, Yn], axis=2).reshape(B, H, W, 2)
    computed_depth = Z.reshape(B, 1, H, W)
    warped_img = grid_sample_bilinear(ref_img, grid)
    projected_depth = grid_sample_bilinear(ref_depth, grid)
    valid = (jnp.max(jnp.abs(grid), axis=-1) <= 1.0).astype(jnp.float32)[:, None]
    flow = None  # TODO(synk): dp_flow is unused by the forward pass; not computed.
    return warped_img, valid, projected_depth, computed_depth, flow


# ---------------------------------------------------------------------------
# Module wrapper mirroring DepthPoseLosses.forward
# ---------------------------------------------------------------------------
class DepthPoseLossesPallas:
    def __init__(self, num_scales=1, auto_mask=1, image_dtype=jnp.bfloat16):
        self.num_scales = num_scales
        self.auto_mask = auto_mask
        self.image_dtype = image_dtype

    def __call__(self, imgs, intrinsics, depths, poses, poses_inv):
        imgpart = [[0, 1], [0, 2], [1, 2]]
        num_scales = min(self.num_scales, len(depths[0]))
        DP_photo = 0.0
        D_cons = 0.0
        P_cons = 0.0
        D_smooth = 0.0
        imgs_all = jnp.stack(imgs)                       # (3, B, 3, H, W), written once
        for s in range(num_scales):
            # TODO(synk): multi-scale F.interpolate branch omitted: depths are
            # full-resolution here (single scale), matching the `else` branch.
            K = intrinsics
            depths_all = jnp.stack([depths[0][s], depths[1][s], depths[2][s]])
            ti, ri = [], []
            warp_l, val_l, prj_l, cmp_l = [], [], [], []
            for i, (a, b) in enumerate(imgpart):
                for (t_i, r_i, p, pinv) in ((a, b, poses[i], poses_inv[i]),
                                            (b, a, poses_inv[i], poses[i])):
                    warped, valid, projd, compd, _ = inverse_warp(
                        imgs[r_i], depths[t_i][s], depths[r_i][s], p, K)
                    ti.append(t_i)
                    ri.append(r_i)
                    warp_l.append(warped)
                    val_l.append(valid)
                    prj_l.append(projd)
                    cmp_l.append(compd)
                    P_cons = P_cons + inverse_poses_loss(p, pinv)
            stats = dp_losses_stats(
                imgs_all, depths_all,
                jnp.asarray(ti, jnp.int32), jnp.asarray(ri, jnp.int32),
                jnp.stack(warp_l), jnp.stack(val_l),
                jnp.stack(prj_l), jnp.stack(cmp_l),
                auto_mask=(self.auto_mask == 1),
                image_dtype=self.image_dtype)
            phot_sum, mask_sum = stats[:, 0], stats[:, 1]
            dcons_sum, smooth = stats[:, 2], stats[:, 3]
            # mean_on_mask: masked mean if > 100 valid pixels, else 0.
            enough = mask_sum > 100.0
            denom = jnp.maximum(mask_sum, 1.0)
            DP_photo = DP_photo + jnp.sum(jnp.where(enough, phot_sum / denom, 0.0))
            D_cons = D_cons + jnp.sum(jnp.where(enough, dcons_sum / denom, 0.0))
            D_smooth = D_smooth + jnp.sum(smooth)
        return (DP_photo / 3.0, D_cons / 3.0, P_cons / 3.0, D_smooth / 3.0)


# ---------------------------------------------------------------------------
if __name__ == "__main__":
    key = jax.random.PRNGKey(0)
    B, C, H, W = 2, 3, 16, 16

    keys = jax.random.split(key, 12)
    imgs = [jax.random.uniform(keys[i], (B, C, H, W), jnp.float32) for i in range(3)]
    depths = [[1.0 + 4.0 * jax.random.uniform(keys[3 + i], (B, 1, H, W), jnp.float32)]
              for i in range(3)]
    poses = [0.02 * jax.random.normal(keys[6 + i], (B, 6), jnp.float32)
             for i in range(3)]
    poses_inv = [-p for p in poses]  # approximate inverses for small motions

    K = jnp.array([[W / 2.0, 0.0, W / 2.0],
                   [0.0, H / 2.0, H / 2.0],
                   [0.0, 0.0, 1.0]], jnp.float32)
    intrinsics = jnp.broadcast_to(K[None], (B, 3, 3))

    model = DepthPoseLossesPallas(num_scales=1, auto_mask=1)

    @jax.jit
    def run(imgs, intrinsics, depths, poses, poses_inv):
        return model(imgs, intrinsics, depths, poses, poses_inv)

    out = run(imgs, intrinsics, depths, poses, poses_inv)
    out = jax.block_until_ready(out)
    for v in out:
        assert jnp.isfinite(v), "non-finite loss"
    print("KERNEL_OK")
</pallas_src>

<mosaic_0001>
module attributes {stable_mosaic.version = 11 : i64} {
  func.func @dp_losses_kernel(%arg0: i32, %arg1: memref<6xi32, #tpu.memory_space<smem>>, %arg2: memref<6xi32, #tpu.memory_space<smem>>, %arg3: memref<1x2x3x16x16xbf16, #tpu.memory_space<vmem>>, %arg4: memref<1x2x3x16x16xbf16, #tpu.memory_space<vmem>>, %arg5: memref<1x2x1x16x16xf32, #tpu.memory_space<vmem>>, %arg6: memref<1x2x3x16x16xf32, #tpu.memory_space<vmem>>, %arg7: memref<1x2x1x16x16xf32, #tpu.memory_space<vmem>>, %arg8: memref<1x2x1x16x16xf32, #tpu.memory_space<vmem>>, %arg9: memref<1x2x1x16x16xf32, #tpu.memory_space<vmem>>, %arg10: memref<1x8x128xf32, #tpu.memory_space<vmem>>) attributes {dimension_semantics = [#tpu.dimension_semantics<parallel>], iteration_bounds = array<i64: 6>, scalar_prefetch = 2 : i64, scratch_operands = 0 : i64, tpu.core_type = #tpu.core_type<tc>, window_params = [{transform_indices = @transform_0, window_bounds = array<i64: 1, 2, 3, 16, 16>}, {transform_indices = @transform_1, window_bounds = array<i64: 1, 2, 3, 16, 16>}, {transform_indices = @transform_2, window_bounds = array<i64: 1, 2, 1, 16, 16>}, {transform_indices = @transform_3, window_bounds = array<i64: 1, 2, 3, 16, 16>}, {transform_indices = @transform_4, window_bounds = array<i64: 1, 2, 1, 16, 16>}, {transform_indices = @transform_5, window_bounds = array<i64: 1, 2, 1, 16, 16>}, {transform_indices = @transform_6, window_bounds = array<i64: 1, 2, 1, 16, 16>}, {transform_indices = @transform_7, window_bounds = array<i64: 1, 8, 128>}]} {
    %c0 = arith.constant 0 : index
    %c0_0 = arith.constant 0 : index
    %c0_1 = arith.constant 0 : index
    %c0_2 = arith.constant 0 : index
    %c0_3 = arith.constant 0 : index
    %0 = vector.load %arg3[%c0, %c0_0, %c0_1, %c0_2, %c0_3] : memref<1x2x3x16x16xbf16, #tpu.memory_space<vmem>>, vector<1x2x3x16x16xbf16>
    %1 = vector.shape_cast %0 : vector<1x2x3x16x16xbf16> to vector<2x3x16x16xbf16>
    %2 = arith.extf %1 : vector<2x3x16x16xbf16> to vector<2x3x16x16xf32>
    %c0_4 = arith.constant 0 : index
    %c0_5 = arith.constant 0 : index
    %c0_6 = arith.constant 0 : index
    %c0_7 = arith.constant 0 : index
    %c0_8 = arith.constant 0 : index
    %3 = vector.load %arg6[%c0_4, %c0_5, %c0_6, %c0_7, %c0_8] : memref<1x2x3x16x16xf32, #tpu.memory_space<vmem>>, vector<1x2x3x16x16xf32>
    %4 = vector.shape_cast %3 : vector<1x2x3x16x16xf32> to vector<2x3x16x16xf32>
    %c0_9 = arith.constant 0 : index
    %c0_10 = arith.constant 0 : index
    %c0_11 = arith.constant 0 : index
    %c0_12 = arith.constant 0 : index
    %c0_13 = arith.constant 0 : index
    %5 = vector.load %arg7[%c0_9, %c0_10, %c0_11, %c0_12, %c0_13] : memref<1x2x1x16x16xf32, #tpu.memory_space<vmem>>, vector<1x2x1x16x16xf32>
    %6 = vector.shape_cast %5 : vector<1x2x1x16x16xf32> to vector<2x1x16x16xf32>
    %c0_14 = arith.constant 0 : index
    %c0_15 = arith.constant 0 : index
    %c0_16 = arith.constant 0 : index
    %c0_17 = arith.constant 0 : index
    %c0_18 = arith.constant 0 : index
    %7 = vector.load %arg8[%c0_14, %c0_15, %c0_16, %c0_17, %c0_18] : memref<1x2x1x16x16xf32, #tpu.memory_space<vmem>>, vector<1x2x1x16x16xf32>
    %8 = vector.shape_cast %7 : vector<1x2x1x16x16xf32> to vector<2x1x16x16xf32>
    %c0_19 = arith.constant 0 : index
    %c0_20 = arith.constant 0 : index
    %c0_21 = arith.constant 0 : index
    %c0_22 = arith.constant 0 : index
    %c0_23 = arith.constant 0 : index
    %9 = vector.load %arg9[%c0_19, %c0_20, %c0_21, %c0_22, %c0_23] : memref<1x2x1x16x16xf32, #tpu.memory_space<vmem>>, vector<1x2x1x16x16xf32>
    %10 = vector.shape_cast %9 : vector<1x2x1x16x16xf32> to vector<2x1x16x16xf32>
    %c0_24 = arith.constant 0 : index
    %c0_25 = arith.constant 0 : index
    %c0_26 = arith.constant 0 : index
    %c0_27 = arith.constant 0 : index
    %c0_28 = arith.constant 0 : index
    %11 = vector.load %arg5[%c0_24, %c0_25, %c0_26, %c0_27, %c0_28] : memref<1x2x1x16x16xf32, #tpu.memory_space<vmem>>, vector<1x2x1x16x16xf32>
    %12 = vector.shape_cast %11 : vector<1x2x1x16x16xf32> to vector<2x1x16x16xf32>
    %13 = tpu.iota {dimensions = array<i32: 3>} : vector<1x1x16x16xi32>
    %14 = tpu.iota {dimensions = array<i32: 2>} : vector<1x1x16x16xi32>
    %c0_i32 = arith.constant 0 : i32
    %15 = vector.broadcast %c0_i32 : i32 to vector<1x1x16x16xi32>
    %16 = arith.cmpi eq, %13, %15 : vector<1x1x16x16xi32>
    %c15_i32 = arith.constant 15 : i32
    %17 = vector.broadcast %c15_i32 : i32 to vector<1x1x16x16xi32>
    %18 = arith.cmpi eq, %13, %17 : vector<1x1x16x16xi32>
    %c0_i32_29 = arith.constant 0 : i32
    %19 = vector.broadcast %c0_i32_29 : i32 to vector<1x1x16x16xi32>
    %20 = arith.cmpi eq, %14, %19 : vector<1x1x16x16xi32>
    %c15_i32_30 = arith.constant 15 : i32
    %21 = vector.broadcast %c15_i32_30 : i32 to vector<1x1x16x16xi32>
    %22 = arith.cmpi eq, %14, %21 : vector<1x1x16x16xi32>
    %c16_i32 = arith.constant 16 : i32
    %23 = vector.broadcast %c16_i32 : i32 to vector<1x1x16x16xi32>
    %24 = arith.cmpi slt, %13, %23 : vector<1x1x16x16xi32>
    %c16_i32_31 = arith.constant 16 : i32
    %25 = vector.broadcast %c16_i32_31 : i32 to vector<1x1x16x16xi32>
    %26 = arith.cmpi slt, %14, %25 : vector<1x1x16x16xi32>
    %27 = arith.andi %24, %26 : vector<1x1x16x16xi1>
    %28 = arith.extui %27 : vector<1x1x16x16xi1> to vector<1x1x16x16xi32>
    %29 = arith.sitofp %28 : vector<1x1x16x16xi32> to vector<1x1x16x16xf32>
    %c15_i32_32 = arith.constant 15 : i32
    %30 = vector.broadcast %c15_i32_32 : i32 to vector<1x1x16x16xi32>
    %31 = arith.cmpi slt, %13, %30 : vector<1x1x16x16xi32>
    %32 = arith.andi %31, %26 : vector<1x1x16x16xi1>
    %33 = arith.extui %32 : vector<1x1x16x16xi1> to vector<1x1x16x16xi32>
    %34 = arith.sitofp %33 : vector<1x1x16x16xi32> to vector<1x1x16x16xf32>
    %c15_i32_33 = arith.constant 15 : i32
    %35 = vector.broadcast %c15_i32_33 : i32 to vector<1x1x16x16xi32>
    %36 = arith.cmpi slt, %14, %35 : vector<1x1x16x16xi32>
    %37 = arith.andi %36, %24 : vector<1x1x16x16xi1>
    %38 = arith.extui %37 : vector<1x1x16x16xi1> to vector<1x1x16x16xi32>
    %39 = arith.sitofp %38 : vector<1x1x16x16xi32> to vector<1x1x16x16xf32>
    %40 = vector.extract_strided_slice %2 {offsets = [0, 0, 0, 0], sizes = [2, 3, 16, 1], strides = [1, 1, 1, 1]} : vector<2x3x16x16xf32> to vector<2x3x16x1xf32>
    %41 = vector.extract_strided_slice %2 {offsets = [0, 0, 0, 0], sizes = [2, 3, 16, 15], strides = [1, 1, 1, 1]} : vector<2x3x16x16xf32> to vector<2x3x16x15xf32>
    %42 = tpu.concatenate %40, %41 in 3 : vector<2x3x16x1xf32>, vector<2x3x16x15xf32> -> vector<2x3x16x16xf32>
    %43 = vector.extract_strided_slice %2 {offsets = [0, 0, 0, 1], sizes = [2, 3, 16, 15], strides = [1, 1, 1, 1]} : vector<2x3x16x16xf32> to vector<2x3x16x15xf32>
    %44 = vector.extract_strided_slice %2 {offsets = [0, 0, 0, 15], sizes = [2, 3, 16, 1], strides = [1, 1, 1, 1]} : vector<2x3x16x16xf32> to vector<2x3x16x1xf32>
    %45 = tpu.concatenate %43, %44 in 3 : vector<2x3x16x15xf32>, vector<2x3x16x1xf32> -> vector<2x3x16x16xf32>
    %46 = vector.extract_strided_slice %4 {offsets = [0, 0, 0, 0], sizes = [2, 3, 16, 1], strides = [1, 1, 1, 1]} : vector<2x3x16x16xf32> to vector<2x3x16x1xf32>
    %47 = vector.extract_strided_slice %4 {offsets = [0, 0, 0, 0], sizes = [2, 3, 16, 15], strides = [1, 1, 1, 1]} : vector<2x3x16x16xf32> to vector<2x3x16x15xf32>
    %48 = tpu.concatenate %46, %47 in 3 : vector<2x3x16x1xf32>, vector<2x3x16x15xf32> -> vector<2x3x16x16xf32>
    %49 = vector.extract_strided_slice %4 {offsets = [0, 0, 0, 1], sizes = [2, 3, 16, 15], strides = [1, 1, 1, 1]} : vector<2x3x16x16xf32> to vector<2x3x16x15xf32>
    %50 = vector.extract_strided_slice %4 {offsets = [0, 0, 0, 15], sizes = [2, 3, 16, 1], strides = [1, 1, 1, 1]} : vector<2x3x16x16xf32> to vector<2x3x16x1xf32>
    %51 = tpu.concatenate %49, %50 in 3 : vector<2x3x16x15xf32>, vector<2x3x16x1xf32> -> vector<2x3x16x16xf32>
    %52 = vector.shape_cast %16 : vector<1x1x16x16xi1> to vector<1x1x16x16xi1>
    %53 = vector.broadcast %52 : vector<1x1x16x16xi1> to vector<2x3x16x16xi1>
    %54 = arith.select %53, %45, %42 : vector<2x3x16x16xi1>, vector<2x3x16x16xf32>
    %55 = arith.addf %54, %2 : vector<2x3x16x16xf32>
    %56 = vector.shape_cast %18 : vector<1x1x16x16xi1> to vector<1x1x16x16xi1>
    %57 = vector.broadcast %56 : vector<1x1x16x16xi1> to vector<2x3x16x16xi1>
    %58 = arith.select %57, %42, %45 : vector<2x3x16x16xi1>, vector<2x3x16x16xf32>
    %59 = arith.addf %55, %58 : vector<2x3x16x16xf32>
    %60 = vector.shape_cast %16 : vector<1x1x16x16xi1> to vector<1x1x16x16xi1>
    %61 = vector.broadcast %60 : vector<1x1x16x16xi1> to vector<2x3x16x16xi1>
    %62 = arith.select %61, %51, %48 : vector<2x3x16x16xi1>, vector<2x3x16x16xf32>
    %63 = arith.addf %62, %4 : vector<2x3x16x16xf32>
    %64 = vector.shape_cast %18 : vector<1x1x16x16xi1> to vector<1x1x16x16xi1>
    %65 = vector.broadcast %64 : vector<1x1x16x16xi1> to vector<2x3x16x16xi1>
    %66 = arith.select %65, %48, %51 : vector<2x3x16x16xi1>, vector<2x3x16x16xf32>
    %67 = arith.addf %63, %66 : vector<2x3x16x16xf32>
    %68 = arith.mulf %2, %2 : vector<2x3x16x16xf32>
    %69 = arith.mulf %42, %42 : vector<2x3x16x16xf32>
    %70 = arith.mulf %45, %45 : vector<2x3x16x16xf32>
    %71 = vector.shape_cast %16 : vector<1x1x16x16xi1> to vector<1x1x16x16xi1>
    %72 = vector.broadcast %71 : vector<1x1x16x16xi1> to vector<2x3x16x16xi1>
    %73 = arith.select %72, %70, %69 : vector<2x3x16x16xi1>, vector<2x3x16x16xf32>
    %74 = arith.addf %73, %68 : vector<2x3x16x16xf32>
    %75 = vector.shape_cast %18 : vector<1x1x16x16xi1> to vector<1x1x16x16xi1>
    %76 = vector.broadcast %75 : vector<1x1x16x16xi1> to vector<2x3x16x16xi1>
    %77 = arith.select %76, %69, %70 : vector<2x3x16x16xi1>, vector<2x3x16x16xf32>
    %78 = arith.addf %74, %77 : vector<2x3x16x16xf32>
    %79 = arith.mulf %4, %4 : vector<2x3x16x16xf32>
    %80 = arith.mulf %48, %48 : vector<2x3x16x16xf32>
    %81 = arith.mulf %51, %51 : vector<2x3x16x16xf32>
    %82 = vector.shape_cast %16 : vector<1x1x16x16xi1> to vector<1x1x16x16xi1>
    %83 = vector.broadcast %82 : vector<1x1x16x16xi1> to vector<2x3x16x16xi1>
    %84 = arith.select %83, %81, %80 : vector<2x3x16x16xi1>, vector<2x3x16x16xf32>
    %85 = arith.addf %84, %79 : vector<2x3x16x16xf32>
    %86 = vector.shape_cast %18 : vector<1x1x16x16xi1> to vector<1x1x16x16xi1>
    %87 = vector.broadcast %86 : vector<1x1x16x16xi1> to vector<2x3x16x16xi1>
    %88 = arith.select %87, %80, %81 : vector<2x3x16x16xi1>, vector<2x3x16x16xf32>
    %89 = arith.addf %85, %88 : vector<2x3x16x16xf32>
    %90 = arith.mulf %2, %4 : vector<2x3x16x16xf32>
    %91 = arith.mulf %42, %48 : vector<2x3x16x16xf32>
    %92 = arith.mulf %45, %51 : vector<2x3x16x16xf32>
    %93 = vector.shape_cast %16 : vector<1x1x16x16xi1> to vector<1x1x16x16xi1>
    %94 = vector.broadcast %93 : vector<1x1x16x16xi1> to vector<2x3x16x16xi1>
    %95 = arith.select %94, %92, %91 : vector<2x3x16x16xi1>, vector<2x3x16x16xf32>
    %96 = arith.addf %95, %90 : vector<2x3x16x16xf32>
    %97 = vector.shape_cast %18 : vector<1x1x16x16xi1> to vector<1x1x16x16xi1>
    %98 = vector.broadcast %97 : vector<1x1x16x16xi1> to vector<2x3x16x16xi1>
    %99 = arith.select %98, %91, %92 : vector<2x3x16x16xi1>, vector<2x3x16x16xf32>
    %100 = arith.addf %96, %99 : vector<2x3x16x16xf32>
    %101 = vector.extract_strided_slice %59 {offsets = [0, 0, 0, 0], sizes = [2, 3, 1, 16], strides = [1, 1, 1, 1]} : vector<2x3x16x16xf32> to vector<2x3x1x16xf32>
    %102 = vector.extract_strided_slice %59 {offsets = [0, 0, 0, 0], sizes = [2, 3, 15, 16], strides = [1, 1, 1, 1]} : vector<2x3x16x16xf32> to vector<2x3x15x16xf32>
    %103 = tpu.concatenate %101, %102 in 2 : vector<2x3x1x16xf32>, vector<2x3x15x16xf32> -> vector<2x3x16x16xf32>
    %104 = vector.extract_strided_slice %59 {offsets = [0, 0, 1, 0], sizes = [2, 3, 15, 16], strides = [1, 1, 1, 1]} : vector<2x3x16x16xf32> to vector<2x3x15x16xf32>
    %105 = vector.extract_strided_slice %59 {offsets = [0, 0, 15, 0], sizes = [2, 3, 1, 16], strides = [1, 1, 1, 1]} : vector<2x3x16x16xf32> to vector<2x3x1x16xf32>
    %106 = tpu.concatenate %104, %105 in 2 : vector<2x3x15x16xf32>, vector<2x3x1x16xf32> -> vector<2x3x16x16xf32>
    %107 = vector.shape_cast %20 : vector<1x1x16x16xi1> to vector<1x1x16x16xi1>
    %108 = vector.broadcast %107 : vector<1x1x16x16xi1> to vector<2x3x16x16xi1>
    %109 = arith.select %108, %106, %103 : vector<2x3x16x16xi1>, vector<2x3x16x16xf32>
    %110 = arith.addf %109, %59 : vector<2x3x16x16xf32>
    %111 = vector.shape_cast %22 : vector<1x1x16x16xi1> to vector<1x1x16x16xi1>
    %112 = vector.broadcast %111 : vector<1x1x16x16xi1> to vector<2x3x16x16xi1>
    %113 = arith.select %112, %103, %106 : vector<2x3x16x16xi1>, vector<2x3x16x16xf32>
    %114 = arith.addf %110, %113 : vector<2x3x16x16xf32>
    %115 = vector.extract_strided_slice %67 {offsets = [0, 0, 0, 0], sizes = [2, 3, 1, 16], strides = [1, 1, 1, 1]} : vector<2x3x16x16xf32> to vector<2x3x1x16xf32>
    %116 = vector.extract_strided_slice %67 {offsets = [0, 0, 0, 0], sizes = [2, 3, 15, 16], strides = [1, 1, 1, 1]} : vector<2x3x16x16xf32> to vector<2x3x15x16xf32>
    %117 = tpu.concatenate %115, %116 in 2 : vector<2x3x1x16xf32>, vector<2x3x15x16xf32> -> vector<2x3x16x16xf32>
    %118 = vector.extract_strided_slice %67 {offsets = [0, 0, 1, 0], sizes = [2, 3, 15, 16], strides = [1, 1, 1, 1]} : vector<2x3x16x16xf32> to vector<2x3x15x16xf32>
    %119 = vector.extract_strided_slice %67 {offsets = [0, 0, 15, 0], sizes = [2, 3, 1, 16], strides = [1, 1, 1, 1]} : vector<2x3x16x16xf32> to vector<2x3x1x16xf32>
    %120 = tpu.concatenate %118, %119 in 2 : vector<2x3x15x16xf32>, vector<2x3x1x16xf32> -> vector<2x3x16x16xf32>
    %121 = vector.shape_cast %20 : vector<1x1x16x16xi1> to vector<1x1x16x16xi1>
    %122 = vector.broadcast %121 : vector<1x1x16x16xi1> to vector<2x3x16x16xi1>
    %123 = arith.select %122, %120, %117 : vector<2x3x16x16xi1>, vector<2x3x16x16xf32>
    %124 = arith.addf %123, %67 : vector<2x3x16x16xf32>
    %125 = vector.shape_cast %22 : vector<1x1x16x16xi1> to vector<1x1x16x16xi1>
    %126 = vector.broadcast %125 : vector<1x1x16x16xi1> to vector<2x3x16x16xi1>
    %127 = arith.select %126, %117, %120 : vector<2x3x16x16xi1>, vector<2x3x16x16xf32>
    %128 = arith.addf %124, %127 : vector<2x3x16x16xf32>
    %129 = vector.extract_strided_slice %78 {offsets = [0, 0, 0, 0], sizes = [2, 3, 1, 16], strides = [1, 1, 1, 1]} : vector<2x3x16x16xf32> to vector<2x3x1x16xf32>
    %130 = vector.extract_strided_slice %78 {offsets = [0, 0, 0, 0], sizes = [2, 3, 15, 16], strides = [1, 1, 1, 1]} : vector<2x3x16x16xf32> to vector<2x3x15x16xf32>
    %131 = tpu.concatenate %129, %130 in 2 : vector<2x3x1x16xf32>, vector<2x3x15x16xf32> -> vector<2x3x16x16xf32>
    %132 = vector.extract_strided_slice %78 {offsets = [0, 0, 1, 0], sizes = [2, 3, 15, 16], strides = [1, 1, 1, 1]} : vector<2x3x16x16xf32> to vector<2x3x15x16xf32>
    %133 = vector.extract_strided_slice %78 {offsets = [0, 0, 15, 0], sizes = [2, 3, 1, 16], strides = [1, 1, 1, 1]} : vector<2x3x16x16xf32> to vector<2x3x1x16xf32>
    %134 = tpu.concatenate %132, %133 in 2 : vector<2x3x15x16xf32>, vector<2x3x1x16xf32> -> vector<2x3x16x16xf32>
    %135 = vector.shape_cast %20 : vector<1x1x16x16xi1> to vector<1x1x16x16xi1>
    %136 = vector.broadcast %135 : vector<1x1x16x16xi1> to vector<2x3x16x16xi1>
    %137 = arith.select %136, %134, %131 : vector<2x3x16x16xi1>, vector<2x3x16x16xf32>
    %138 = arith.addf %137, %78 : vector<2x3x16x16xf32>
    %139 = vector.shape_cast %22 : vector<1x1x16x16xi1> to vector<1x1x16x16xi1>
    %140 = vector.broadcast %139 : vector<1x1x16x16xi1> to vector<2x3x16x16xi1>
    %141 = arith.select %140, %131, %134 : vector<2x3x16x16xi1>, vector<2x3x16x16xf32>
    %142 = arith.addf %138, %141 : vector<2x3x16x16xf32>
    %143 = vector.extract_strided_slice %89 {offsets = [0, 0, 0, 0], sizes = [2, 3, 1, 16], strides = [1, 1, 1, 1]} : vector<2x3x16x16xf32> to vector<2x3x1x16xf32>
    %144 = vector.extract_strided_slice %89 {offsets = [0, 0, 0, 0], sizes = [2, 3, 15, 16], strides = [1, 1, 1, 1]} : vector<2x3x16x16xf32> to vector<2x3x15x16xf32>
    %145 = tpu.concatenate %143, %144 in 2 : vector<2x3x1x16xf32>, vector<2x3x15x16xf32> -> vector<2x3x16x16xf32>
    %146 = vector.extract_strided_slice %89 {offsets = [0, 0, 1, 0], sizes = [2, 3, 15, 16], strides = [1, 1, 1, 1]} : vector<2x3x16x16xf32> to vector<2x3x15x16xf32>
    %147 = vector.extract_strided_slice %89 {offsets = [0, 0, 15, 0], sizes = [2, 3, 1, 16], strides = [1, 1, 1, 1]} : vector<2x3x16x16xf32> to vector<2x3x1x16xf32>
    %148 = tpu.concatenate %146, %147 in 2 : vector<2x3x15x16xf32>, vector<2x3x1x16xf32> -> vector<2x3x16x16xf32>
    %149 = vector.shape_cast %20 : vector<1x1x16x16xi1> to vector<1x1x16x16xi1>
    %150 = vector.broadcast %149 : vector<1x1x16x16xi1> to vector<2x3x16x16xi1>
    %151 = arith.select %150, %148, %145 : vector<2x3x16x16xi1>, vector<2x3x16x16xf32>
    %152 = arith.addf %151, %89 : vector<2x3x16x16xf32>
    %153 = vector.shape_cast %22 : vector<1x1x16x16xi1> to vector<1x1x16x16xi1>
    %154 = vector.broadcast %153 : vector<1x1x16x16xi1> to vector<2x3x16x16xi1>
    %155 = arith.select %154, %145, %148 : vector<2x3x16x16xi1>, vector<2x3x16x16xf32>
    %156 = arith.addf %152, %155 : vector<2x3x16x16xf32>
    %157 = vector.extract_strided_slice %100 {offsets = [0, 0, 0, 0], sizes = [2, 3, 1, 16], strides = [1, 1, 1, 1]} : vector<2x3x16x16xf32> to vector<2x3x1x16xf32>
    %158 = vector.extract_strided_slice %100 {offsets = [0, 0, 0, 0], sizes = [2, 3, 15, 16], strides = [1, 1, 1, 1]} : vector<2x3x16x16xf32> to vector<2x3x15x16xf32>
    %159 = tpu.concatenate %157, %158 in 2 : vector<2x3x1x16xf32>, vector<2x3x15x16xf32> -> vector<2x3x16x16xf32>
    %160 = vector.extract_strided_slice %100 {offsets = [0, 0, 1, 0], sizes = [2, 3, 15, 16], strides = [1, 1, 1, 1]} : vector<2x3x16x16xf32> to vector<2x3x15x16xf32>
    %161 = vector.extract_strided_slice %100 {offsets = [0, 0, 15, 0], sizes = [2, 3, 1, 16], strides = [1, 1, 1, 1]} : vector<2x3x16x16xf32> to vector<2x3x1x16xf32>
    %162 = tpu.concatenate %160, %161 in 2 : vector<2x3x15x16xf32>, vector<2x3x1x16xf32> -> vector<2x3x16x16xf32>
    %163 = vector.shape_cast %20 : vector<1x1x16x16xi1> to vector<1x1x16x16xi1>
    %164 = vector.broadcast %163 : vector<1x1x16x16xi1> to vector<2x3x16x16xi1>
    %165 = arith.select %164, %162, %159 : vector<2x3x16x16xi1>, vector<2x3x16x16xf32>
    %166 = arith.addf %165, %100 : vector<2x3x16x16xf32>
    %167 = vector.shape_cast %22 : vector<1x1x16x16xi1> to vector<1x1x16x16xi1>
    %168 = vector.broadcast %167 : vector<1x1x16x16xi1> to vector<2x3x16x16xi1>
    %169 = arith.select %168, %159, %162 : vector<2x3x16x16xi1>, vector<2x3x16x16xf32>
    %170 = arith.addf %166, %169 : vector<2x3x16x16xf32>
    %171 = arith.mulf %114, %128 : vector<2x3x16x16xf32>
    %172 = arith.mulf %114, %114 : vector<2x3x16x16xf32>
    %173 = arith.mulf %128, %128 : vector<2x3x16x16xf32>
    %cst = arith.constant 2.000000e+00 : f32
    %174 = vector.broadcast %cst : f32 to vector<2x3x16x16xf32>
    %175 = arith.mulf %174, %171 : vector<2x3x16x16xf32>
    %cst_34 = arith.constant 8.100000e-03 : f32
    %176 = vector.broadcast %cst_34 : f32 to vector<2x3x16x16xf32>
    %177 = arith.addf %175, %176 : vector<2x3x16x16xf32>
    %cst_35 = arith.constant 1.800000e+01 : f32
    %178 = vector.broadcast %cst_35 : f32 to vector<2x3x16x16xf32>
    %179 = arith.mulf %178, %170 : vector<2x3x16x16xf32>
    %cst_36 = arith.constant 2.000000e+00 : f32
    %180 = vector.broadcast %cst_36 : f32 to vector<2x3x16x16xf32>
    %181 = arith.mulf %180, %171 : vector<2x3x16x16xf32>
    %182 = arith.subf %179, %181 : vector<2x3x16x16xf32>
    %cst_37 = arith.constant 7.290000e-02 : f32
    %183 = vector.broadcast %cst_37 : f32 to vector<2x3x16x16xf32>
    %184 = arith.addf %182, %183 : vector<2x3x16x16xf32>
    %185 = arith.addf %172, %173 : vector<2x3x16x16xf32>
    %cst_38 = arith.constant 8.100000e-03 : f32
    %186 = vector.broadcast %cst_38 : f32 to vector<2x3x16x16xf32>
    %187 = arith.addf %185, %186 : vector<2x3x16x16xf32>
    %188 = arith.addf %142, %156 : vector<2x3x16x16xf32>
    %cst_39 = arith.constant 9.000000e+00 : f32
    %189 = vector.broadcast %cst_39 : f32 to vector<2x3x16x16xf32>
    %190 = arith.mulf %189, %188 : vector<2x3x16x16xf32>
    %191 = arith.subf %190, %172 : vector<2x3x16x16xf32>
    %192 = arith.subf %191, %173 : vector<2x3x16x16xf32>
    %cst_40 = arith.constant 7.290000e-02 : f32
    %193 = vector.broadcast %cst_40 : f32 to vector<2x3x16x16xf32>
    %194 = arith.addf %192, %193 : vector<2x3x16x16xf32>
    %195 = arith.mulf %177, %184 : vector<2x3x16x16xf32>
    %196 = arith.mulf %187, %194 : vector<2x3x16x16xf32>
    %197 = tpu.reciprocal %196 {approx = true} : vector<2x3x16x16xf32> -> vector<2x3x16x16xf32>
    %198 = arith.mulf %195, %197 : vector<2x3x16x16xf32>
    %cst_41 = arith.constant 1.000000e+00 : f32
    %199 = vector.broadcast %cst_41 : f32 to vector<2x3x16x16xf32>
    %200 = arith.subf %199, %198 : vector<2x3x16x16xf32>
    %cst_42 = arith.constant 5.000000e-01 : f32
    %201 = vector.broadcast %cst_42 : f32 to vector<2x3x16x16xf32>
    %202 = arith.mulf %201, %200 : vector<2x3x16x16xf32>
    %cst_43 = arith.constant 0.000000e+00 : f32
    %cst_44 = arith.constant 1.000000e+00 : f32
    %203 = vector.broadcast %cst_43 : f32 to vector<2x3x16x16xf32>
    %204 = arith.maximumf %203, %202 : vector<2x3x16x16xf32>
    %205 = vector.broadcast %cst_44 : f32 to vector<2x3x16x16xf32>
    %206 = arith.minimumf %205, %204 : vector<2x3x16x16xf32>
    %207 = arith.subf %2, %4 : vector<2x3x16x16xf32>
    %208 = math.absf %207 : vector<2x3x16x16xf32>
    %209 = arith.subf %10, %8 : vector<2x1x16x16xf32>
    %210 = math.absf %209 : vector<2x1x16x16xf32>
    %211 = arith.addf %10, %8 : vector<2x1x16x16xf32>
    %212 = math.absf %211 : vector<2x1x16x16xf32>
    %cst_45 = arith.constant 9.99999996E-13 : f32
    %213 = vector.broadcast %cst_45 : f32 to vector<2x1x16x16xf32>
    %214 = arith.addf %212, %213 : vector<2x1x16x16xf32>
    %215 = tpu.reciprocal %214 {approx = true} : vector<2x1x16x16xf32> -> vector<2x1x16x16xf32>
    %216 = arith.mulf %210, %215 : vector<2x1x16x16xf32>
    %cst_46 = arith.constant 1.000000e+00 : f32
    %217 = vector.broadcast %cst_46 : f32 to vector<2x1x16x16xf32>
    %218 = arith.subf %217, %216 : vector<2x1x16x16xf32>
    %c0_47 = arith.constant 0 : index
    %c0_48 = arith.constant 0 : index
    %c0_49 = arith.constant 0 : index
    %c0_50 = arith.constant 0 : index
    %c0_51 = arith.constant 0 : index
    %219 = vector.load %arg4[%c0_47, %c0_48, %c0_49, %c0_50, %c0_51] : memref<1x2x3x16x16xbf16, #tpu.memory_space<vmem>>, vector<1x2x3x16x16xbf16>
    %220 = vector.shape_cast %219 : vector<1x2x3x16x16xbf16> to vector<2x3x16x16xbf16>
    %221 = arith.extf %220 : vector<2x3x16x16xbf16> to vector<2x3x16x16xf32>
    %cst_52 = arith.constant dense<0.000000e+00> : vector<2x16x16xf32>
    %222 = vector.multi_reduction <add>, %208, %cst_52 [1] : vector<2x3x16x16xf32> to vector<2x16x16xf32>
    %223 = vector.shape_cast %222 : vector<2x16x16xf32> to vector<2x1x16x16xf32>
    %cst_53 = arith.constant 3.000000e+00 : f32
    %224 = vector.broadcast %cst_53 : f32 to vector<2x1x16x16xf32>
    %225 = arith.divf %223, %224 : vector<2x1x16x16xf32>
    %226 = arith.subf %2, %221 : vector<2x3x16x16xf32>
    %227 = math.absf %226 : vector<2x3x16x16xf32>
    %cst_54 = arith.constant dense<0.000000e+00> : vector<2x16x16xf32>
    %228 = vector.multi_reduction <add>, %227, %cst_54 [1] : vector<2x3x16x16xf32> to vector<2x16x16xf32>
    %229 = vector.shape_cast %228 : vector<2x16x16xf32> to vector<2x1x16x16xf32>
    %cst_55 = arith.constant 3.000000e+00 : f32
    %230 = vector.broadcast %cst_55 : f32 to vector<2x1x16x16xf32>
    %231 = arith.divf %229, %230 : vector<2x1x16x16xf32>
    %232 = arith.cmpf olt, %225, %231 : vector<2x1x16x16xf32>
    %cst_56 = arith.constant 0.000000e+00 : f32
    %233 = vector.broadcast %cst_56 : f32 to vector<2x1x16x16xf32>
    %234 = arith.select %232, %6, %233 : vector<2x1x16x16xi1>, vector<2x1x16x16xf32>
    %cst_57 = arith.constant 8.500000e-01 : f32
    %235 = vector.broadcast %cst_57 : f32 to vector<2x3x16x16xf32>
    %236 = arith.mulf %235, %206 : vector<2x3x16x16xf32>
    %cst_58 = arith.constant 1.000000e+00 : f32
    %237 = vector.broadcast %cst_58 : f32 to vector<2x3x16x16xf32>
    %238 = arith.minimumf %208, %237 : vector<2x3x16x16xf32>
    %cst_59 = arith.constant 1.500000e-01 : f32
    %239 = vector.broadcast %cst_59 : f32 to vector<2x3x16x16xf32>
    %240 = arith.mulf %239, %238 : vector<2x3x16x16xf32>
    %241 = arith.addf %236, %240 : vector<2x3x16x16xf32>
    %cst_60 = arith.constant dense<0.000000e+00> : vector<2x16x16xf32>
    %242 = vector.multi_reduction <add>, %241, %cst_60 [1] : vector<2x3x16x16xf32> to vector<2x16x16xf32>
    %243 = vector.shape_cast %242 : vector<2x16x16xf32> to vector<2x1x16x16xf32>
    %cst_61 = arith.constant 3.000000e+00 : f32
    %244 = vector.broadcast %cst_61 : f32 to vector<2x1x16x16xf32>
    %245 = arith.divf %243, %244 : vector<2x1x16x16xf32>
    %246 = vector.broadcast %29 : vector<1x1x16x16xf32> to vector<2x1x16x16xf32>
    %247 = arith.mulf %12, %246 : vector<2x1x16x16xf32>
    %cst_62 = arith.constant dense<0.000000e+00> : vector<2x1x16xf32>
    %248 = vector.multi_reduction <add>, %247, %cst_62 [3] : vector<2x1x16x16xf32> to vector<2x1x16xf32>
    %249 = vector.shape_cast %248 : vector<2x1x16xf32> to vector<2x1x16x1xf32>
    %cst_63 = arith.constant dense<0.000000e+00> : vector<2x1x1xf32>
    %250 = vector.multi_reduction <add>, %249, %cst_63 [2] : vector<2x1x16x1xf32> to vector<2x1x1xf32>
    %251 = vector.shape_cast %250 : vector<2x1x1xf32> to vector<2x1x1x1xf32>
    %cst_64 = arith.constant 3.906250e-03 : f32
    %252 = vector.broadcast %cst_64 : f32 to vector<2x1x1x1xf32>
    %253 = arith.mulf %251, %252 : vector<2x1x1x1xf32>
    %cst_65 = arith.constant 1.000000e-07 : f32
    %254 = vector.broadcast %cst_65 : f32 to vector<2x1x1x1xf32>
    %255 = arith.addf %253, %254 : vector<2x1x1x1xf32>
    %cst_66 = arith.constant 1.000000e+00 : f32
    %256 = vector.broadcast %cst_66 : f32 to vector<2x1x1x1xf32>
    %257 = arith.divf %256, %255 : vector<2x1x1x1xf32>
    %258 = vector.extract_strided_slice %12 {offsets = [0, 0, 0, 1], sizes = [2, 1, 16, 15], strides = [1, 1, 1, 1]} : vector<2x1x16x16xf32> to vector<2x1x16x15xf32>
    %259 = vector.extract_strided_slice %12 {offsets = [0, 0, 0, 15], sizes = [2, 1, 16, 1], strides = [1, 1, 1, 1]} : vector<2x1x16x16xf32> to vector<2x1x16x1xf32>
    %260 = tpu.concatenate %258, %259 in 3 : vector<2x1x16x15xf32>, vector<2x1x16x1xf32> -> vector<2x1x16x16xf32>
    %261 = arith.subf %12, %260 : vector<2x1x16x16xf32>
    %262 = math.absf %261 : vector<2x1x16x16xf32>
    %263 = vector.broadcast %257 : vector<2x1x1x1xf32> to vector<2x1x16x16xf32>
    %264 = arith.mulf %262, %263 : vector<2x1x16x16xf32>
    %265 = vector.extract_strided_slice %12 {offsets = [0, 0, 1, 0], sizes = [2, 1, 15, 16], strides = [1, 1, 1, 1]} : vector<2x1x16x16xf32> to vector<2x1x15x16xf32>
    %266 = vector.extract_strided_slice %12 {offsets = [0, 0, 15, 0], sizes = [2, 1, 1, 16], strides = [1, 1, 1, 1]} : vector<2x1x16x16xf32> to vector<2x1x1x16xf32>
    %267 = tpu.concatenate %265, %266 in 2 : vector<2x1x15x16xf32>, vector<2x1x1x16xf32> -> vector<2x1x16x16xf32>
    %268 = arith.subf %12, %267 : vector<2x1x16x16xf32>
    %269 = math.absf %268 : vector<2x1x16x16xf32>
    %270 = vector.broadcast %257 : vector<2x1x1x1xf32> to vector<2x1x16x16xf32>
    %271 = arith.mulf %269, %270 : vector<2x1x16x16xf32>
    %272 = arith.subf %2, %45 : vector<2x3x16x16xf32>
    %273 = math.absf %272 : vector<2x3x16x16xf32>
    %cst_67 = arith.constant dense<0.000000e+00> : vector<2x16x16xf32>
    %274 = vector.multi_reduction <add>, %273, %cst_67 [1] : vector<2x3x16x16xf32> to vector<2x16x16xf32>
    %275 = vector.shape_cast %274 : vector<2x16x16xf32> to vector<2x1x16x16xf32>
    %cst_68 = arith.constant 3.000000e+00 : f32
    %276 = vector.broadcast %cst_68 : f32 to vector<2x1x16x16xf32>
    %277 = arith.divf %275, %276 : vector<2x1x16x16xf32>
    %278 = vector.extract_strided_slice %2 {offsets = [0, 0, 1, 0], sizes = [2, 3, 15, 16], strides = [1, 1, 1, 1]} : vector<2x3x16x16xf32> to vector<2x3x15x16xf32>
    %279 = vector.extract_strided_slice %2 {offsets = [0, 0, 15, 0], sizes = [2, 3, 1, 16], strides = [1, 1, 1, 1]} : vector<2x3x16x16xf32> to vector<2x3x1x16xf32>
    %280 = tpu.concatenate %278, %279 in 2 : vector<2x3x15x16xf32>, vector<2x3x1x16xf32> -> vector<2x3x16x16xf32>
    %281 = arith.subf %2, %280 : vector<2x3x16x16xf32>
    %282 = math.absf %281 : vector<2x3x16x16xf32>
    %cst_69 = arith.constant dense<0.000000e+00> : vector<2x16x16xf32>
    %283 = vector.multi_reduction <add>, %282, %cst_69 [1] : vector<2x3x16x16xf32> to vector<2x16x16xf32>
    %284 = vector.shape_cast %283 : vector<2x16x16xf32> to vector<2x1x16x16xf32>
    %cst_70 = arith.constant 3.000000e+00 : f32
    %285 = vector.broadcast %cst_70 : f32 to vector<2x1x16x16xf32>
    %286 = arith.divf %284, %285 : vector<2x1x16x16xf32>
    %cst_71 = arith.constant 0.000000e+00 : f32
    %287 = vector.broadcast %cst_71 : f32 to vector<2x1x16x16xf32>
    %288 = arith.subf %287, %277 : vector<2x1x16x16xf32>
    %289 = math.exp %288 : vector<2x1x16x16xf32>
    %290 = arith.mulf %264, %289 : vector<2x1x16x16xf32>
    %291 = vector.broadcast %34 : vector<1x1x16x16xf32> to vector<2x1x16x16xf32>
    %292 = arith.mulf %290, %291 : vector<2x1x16x16xf32>
    %293 = vector.shape_cast %292 : vector<2x1x16x16xf32> to vector<1x2x1x16x16xf32>
    %cst_72 = arith.constant dense<0.000000e+00> : vector<1xf32>
    %294 = vector.multi_reduction <add>, %293, %cst_72 [1, 2, 3, 4] : vector<1x2x1x16x16xf32> to vector<1xf32>
    %295 = vector.shape_cast %294 : vector<1xf32> to vector<1x1x1x1x1xf32>
    %296 = vector.extract %295[0, 0, 0, 0, 0] : f32 from vector<1x1x1x1x1xf32>
    %cst_73 = arith.constant 0.00208333344 : f32
    %297 = arith.mulf %296, %cst_73 : f32
    %cst_74 = arith.constant 0.000000e+00 : f32
    %298 = vector.broadcast %cst_74 : f32 to vector<2x1x16x16xf32>
    %299 = arith.subf %298, %286 : vector<2x1x16x16xf32>
    %300 = math.exp %299 : vector<2x1x16x16xf32>
    %301 = arith.mulf %271, %300 : vector<2x1x16x16xf32>
    %302 = vector.broadcast %39 : vector<1x1x16x16xf32> to vector<2x1x16x16xf32>
    %303 = arith.mulf %301, %302 : vector<2x1x16x16xf32>
    %304 = vector.shape_cast %303 : vector<2x1x16x16xf32> to vector<1x2x1x16x16xf32>
    %cst_75 = arith.constant dense<0.000000e+00> : vector<1xf32>
    %305 = vector.multi_reduction <add>, %304, %cst_75 [1, 2, 3, 4] : vector<1x2x1x16x16xf32> to vector<1xf32>
    %306 = vector.shape_cast %305 : vector<1xf32> to vector<1x1x1x1x1xf32>
    %307 = vector.extract %306[0, 0, 0, 0, 0] : f32 from vector<1x1x1x1x1xf32>
    %cst_76 = arith.constant 0.00208333344 : f32
    %308 = arith.mulf %307, %cst_76 : f32
    %309 = arith.addf %297, %308 : f32
    %310 = arith.mulf %245, %218 : vector<2x1x16x16xf32>
    %311 = arith.mulf %310, %234 : vector<2x1x16x16xf32>
    %312 = vector.shape_cast %311 : vector<2x1x16x16xf32> to vector<1x2x1x16x16xf32>
    %cst_77 = arith.constant dense<0.000000e+00> : vector<1xf32>
    %313 = vector.multi_reduction <add>, %312, %cst_77 [1, 2, 3, 4] : vector<1x2x1x16x16xf32> to vector<1xf32>
    %314 = vector.shape_cast %313 : vector<1xf32> to vector<1x1x1x1x1xf32>
    %315 = vector.extract %314[0, 0, 0, 0, 0] : f32 from vector<1x1x1x1x1xf32>
    %316 = vector.shape_cast %234 : vector<2x1x16x16xf32> to vector<1x2x1x16x16xf32>
    %cst_78 = arith.constant dense<0.000000e+00> : vector<1xf32>
    %317 = vector.multi_reduction <add>, %316, %cst_78 [1, 2, 3, 4] : vector<1x2x1x16x16xf32> to vector<1xf32>
    %318 = vector.shape_cast %317 : vector<1xf32> to vector<1x1x1x1x1xf32>
    %319 = vector.extract %318[0, 0, 0, 0, 0] : f32 from vector<1x1x1x1x1xf32>
    %320 = arith.mulf %216, %234 : vector<2x1x16x16xf32>
    %321 = vector.shape_cast %320 : vector<2x1x16x16xf32> to vector<1x2x1x16x16xf32>
    %cst_79 = arith.constant dense<0.000000e+00> : vector<1xf32>
    %322 = vector.multi_reduction <add>, %321, %cst_79 [1, 2, 3, 4] : vector<1x2x1x16x16xf32> to vector<1xf32>
    %323 = vector.shape_cast %322 : vector<1xf32> to vector<1x1x1x1x1xf32>
    %324 = vector.extract %323[0, 0, 0, 0, 0] : f32 from vector<1x1x1x1x1xf32>
    %325 = tpu.iota {dimensions = array<i32: 0>} : vector<8x128xi32>
    %326 = tpu.iota {dimensions = array<i32: 1>} : vector<8x128xi32>
    %c0_i32_80 = arith.constant 0 : i32
    %327 = vector.broadcast %c0_i32_80 : i32 to vector<8x128xi32>
    %328 = arith.cmpi eq, %325, %327 : vector<8x128xi32>
    %c0_i32_81 = arith.constant 0 : i32
    %329 = vector.broadcast %c0_i32_81 : i32 to vector<8x128xi32>
    %330 = arith.cmpi eq, %326, %329 : vector<8x128xi32>
    %331 = arith.andi %328, %330 : vector<8x128xi1>
    %332 = arith.extui %331 : vector<8x128xi1> to vector<8x128xi32>
    %333 = arith.sitofp %332 : vector<8x128xi32> to vector<8x128xf32>
    %334 = vector.broadcast %315 : f32 to vector<8x128xf32>
    %335 = arith.mulf %334, %333 : vector<8x128xf32>
    %c1_i32 = arith.constant 1 : i32
    %336 = vector.broadcast %c1_i32 : i32 to vector<8x128xi32>
    %337 = arith.cmpi eq, %326, %336 : vector<8x128xi32>
    %338 = arith.andi %328, %337 : vector<8x128xi1>
    %339 = arith.extui %338 : vector<8x128xi1> to vector<8x128xi32>
    %340 = arith.sitofp %339 : vector<8x128xi32> to vector<8x128xf32>
    %341 = vector.broadcast %319 : f32 to vector<8x128xf32>
    %342 = arith.mulf %341, %340 : vector<8x128xf32>
    %343 = arith.addf %335, %342 : vector<8x128xf32>
    %c2_i32 = arith.constant 2 : i32
    %344 = vector.broadcast %c2_i32 : i32 to vector<8x128xi32>
    %345 = arith.cmpi eq, %326, %344 : vector<8x128xi32>
    %346 = arith.andi %328, %345 : vector<8x128xi1>
    %347 = arith.extui %346 : vector<8x128xi1> to vector<8x128xi32>
    %348 = arith.sitofp %347 : vector<8x128xi32> to vector<8x128xf32>
    %349 = vector.broadcast %324 : f32 to vector<8x128xf32>
    %350 = arith.mulf %349, %348 : vector<8x128xf32>
    %351 = arith.addf %343, %350 : vector<8x128xf32>
    %c3_i32 = arith.constant 3 : i32
    %352 = vector.broadcast %c3_i32 : i32 to vector<8x128xi32>
    %353 = arith.cmpi eq, %326, %352 : vector<8x128xi32>
    %354 = arith.andi %328, %353 : vector<8x128xi1>
    %355 = arith.extui %354 : vector<8x128xi1> to vector<8x128xi32>
    %356 = arith.sitofp %355 : vector<8x128xi32> to vector<8x128xf32>
    %357 = vector.broadcast %309 : f32 to vector<8x128xf32>
    %358 = arith.mulf %357, %356 : vector<8x128xf32>
    %359 = arith.addf %351, %358 : vector<8x128xf32>
    %c0_82 = arith.constant 0 : index
    %c0_83 = arith.constant 0 : index
    %c0_84 = arith.constant 0 : index
    %360 = vector.load %arg10[%c0_82, %c0_83, %c0_84] : memref<1x8x128xf32, #tpu.memory_space<vmem>>, vector<1x8x128xf32>
    %361 = vector.shape_cast %360 : vector<1x8x128xf32> to vector<8x128xf32>
    %362 = vector.shape_cast %359 : vector<8x128xf32> to vector<1x8x128xf32>
    tpu.vector_store %arg10[%c0_82, %c0_83, %c0_84], %362 {strides = array<i32>} : memref<1x8x128xf32, #tpu.memory_space<vmem>>, vector<1x8x128xf32>,
    return
  }
  func.func @transform_0(%arg0: i32, %arg1: memref<6xi32, #tpu.memory_space<smem>>, %arg2: memref<6xi32, #tpu.memory_space<smem>>) -> (i32, i32, i32, i32, i32) {
    %0 = arith.index_cast %arg0 : i32 to index
    %1 = memref.load %arg1[%0] : memref<6xi32, #tpu.memory_space<smem>>
    %c0_i32 = arith.constant 0 : i32
    %c0_i32_0 = arith.constant 0 : i32
    %c0_i32_1 = arith.constant 0 : i32
    %c0_i32_2 = arith.constant 0 : i32
    %c0_i32_3 = arith.constant 0 : i32
    return %1, %c0_i32, %c0_i32_0, %c0_i32_1, %c0_i32_2 : i32, i32, i32, i32, i32
  }
  func.func @transform_1(%arg0: i32, %arg1: memref<6xi32, #tpu.memory_space<smem>>, %arg2: memref<6xi32, #tpu.memory_space<smem>>) -> (i32, i32, i32, i32, i32) {
    %0 = arith.index_cast %arg0 : i32 to index
    %1 = memref.load %arg2[%0] : memref<6xi32, #tpu.memory_space<smem>>
    %c0_i32 = arith.constant 0 : i32
    %c0_i32_0 = arith.constant 0 : i32
    %c0_i32_1 = arith.constant 0 : i32
    %c0_i32_2 = arith.constant 0 : i32
    %c0_i32_3 = arith.constant 0 : i32
    return %1, %c0_i32, %c0_i32_0, %c0_i32_1, %c0_i32_2 : i32, i32, i32, i32, i32
  }
  func.func @transform_2(%arg0: i32, %arg1: memref<6xi32, #tpu.memory_space<smem>>, %arg2: memref<6xi32, #tpu.memory_space<smem>>) -> (i32, i32, i32, i32, i32) {
    %0 = arith.index_cast %arg0 : i32 to index
    %1 = memref.load %arg1[%0] : memref<6xi32, #tpu.memory_space<smem>>
    %c0_i32 = arith.constant 0 : i32
    %c0_i32_0 = arith.constant 0 : i32
    %c0_i32_1 = arith.constant 0 : i32
    %c0_i32_2 = arith.constant 0 : i32
    %c0_i32_3 = arith.constant 0 : i32
    return %1, %c0_i32, %c0_i32_0, %c0_i32_1, %c0_i32_2 : i32, i32, i32, i32, i32
  }
  func.func @transform_3(%arg0: i32, %arg1: memref<6xi32, #tpu.memory_space<smem>>, %arg2: memref<6xi32, #tpu.memory_space<smem>>) -> (i32, i32, i32, i32, i32) {
    %c0_i32 = arith.constant 0 : i32
    %c0_i32_0 = arith.constant 0 : i32
    %c0_i32_1 = arith.constant 0 : i32
    %c0_i32_2 = arith.constant 0 : i32
    %c0_i32_3 = arith.constant 0 : i32
    return %arg0, %c0_i32, %c0_i32_0, %c0_i32_1, %c0_i32_2 : i32, i32, i32, i32, i32
  }
  func.func @transform_4(%arg0: i32, %arg1: memref<6xi32, #tpu.memory_space<smem>>, %arg2: memref<6xi32, #tpu.memory_space<smem>>) -> (i32, i32, i32, i32, i32) {
    %c0_i32 = arith.constant 0 : i32
    %c0_i32_0 = arith.constant 0 : i32
    %c0_i32_1 = arith.constant 0 : i32
    %c0_i32_2 = arith.constant 0 : i32
    %c0_i32_3 = arith.constant 0 : i32
    return %arg0, %c0_i32, %c0_i32_0, %c0_i32_1, %c0_i32_2 : i32, i32, i32, i32, i32
  }
  func.func @transform_5(%arg0: i32, %arg1: memref<6xi32, #tpu.memory_space<smem>>, %arg2: memref<6xi32, #tpu.memory_space<smem>>) -> (i32, i32, i32, i32, i32) {
    %c0_i32 = arith.constant 0 : i32
    %c0_i32_0 = arith.constant 0 : i32
    %c0_i32_1 = arith.constant 0 : i32
    %c0_i32_2 = arith.constant 0 : i32
    %c0_i32_3 = arith.constant 0 : i32
    return %arg0, %c0_i32, %c0_i32_0, %c0_i32_1, %c0_i32_2 : i32, i32, i32, i32, i32
  }
  func.func @transform_6(%arg0: i32, %arg1: memref<6xi32, #tpu.memory_space<smem>>, %arg2: memref<6xi32, #tpu.memory_space<smem>>) -> (i32, i32, i32, i32, i32) {
    %c0_i32 = arith.constant 0 : i32
    %c0_i32_0 = arith.constant 0 : i32
    %c0_i32_1 = arith.constant 0 : i32
    %c0_i32_2 = arith.constant 0 : i32
    %c0_i32_3 = arith.constant 0 : i32
    return %arg0, %c0_i32, %c0_i32_0, %c0_i32_1, %c0_i32_2 : i32, i32, i32, i32, i32
  }
  func.func @transform_7(%arg0: i32, %arg1: memref<6xi32, #tpu.memory_space<smem>>, %arg2: memref<6xi32, #tpu.memory_space<smem>>) -> (i32, i32, i32) {
    %c0_i32 = arith.constant 0 : i32
    %c0_i32_0 = arith.constant 0 : i32
    %c0_i32_1 = arith.constant 0 : i32
    return %arg0, %c0_i32, %c0_i32_0 : i32, i32, i32
  }
}

</mosaic_0001>

<bundles_post_ra>
// kernel: custom-call.111
= control target key start
LH: loop header
LB: loop body
LE: loop exit
PB: predicated region body
PF: predicated region fallthrough
CT: control target
= control target key end

     0   :  { %5 = vsyncpa [#allocation6], 0  ;;  %s909_s0 = inlined_call_operand.vmem [shape: f32[2,3,3], index: 0, kind: input, shape index: {}]   ;;  %s910_s1 = inlined_call_operand.vmem [shape: f32[2,3,3], index: 1, kind: output, shape index: {0}]   ;;  %s911_s2 = inlined_call_operand.hbm [shape: s32[2,3], index: 2, kind: output, shape index: {1}]   ;;  %s912_s3 = inlined_call_operand.vmem [shape: s32[2,3], index: 3, kind: output, shape index: {2}]  }
   0x1   :  { %7 = vsyncpa [#allocation6 + $0x1], 0  ;;  %s726_s12 = smov 0   ;;  %s728_s13 = smov 0  }
   0x2   :  { %s730_s14 = smov 0   ;;  %s732_s15 = smov 0  }
   0x3 LB: > { %s747_s16 = sadd.s32 4294967295, %s698_s15   ;;  %s563_s17 = sadd.s32 4294967294, %s698_s15   ;;  %s698_s15 = sphi %s732_s15, %s920_s15   ;;  %s694_s14 = sphi %s730_s14, %s919_s14   ;;  %s690_s13 = sphi %s728_s13, %s918_s13   ;;  %s686_s12 = sphi %s726_s12, %s917_s12  }
   0x4   : > { %s751_s18 = sadd.s32 1, %s698_s15   ;;  %s17_s19 = sshrl.u32 %s698_s15, 3 }
   0x5   : > { %s18_s20 = sshrl.u32 %s751_s18, 3  ;;  %s22_s21 = sadd.s32 1, %s694_s14 }
   0x6   : > { %s19_s22 = ssub.s32 %s17_s19, %s18_s20  ;;  %p32_p0 = scmp.ne.s32.totalorder %s694_s14, %s690_s13 }
   0x7   : > { %p20_p1 = scmp.eq.s32.totalorder %s19_s22, 0  ;;  %p33_p2 = scmp.eq.s32.totalorder %s747_s16, 1 }
   0x8   : > { %p38_p3 = scmp.ne.s32.totalorder %s690_s13, %s686_s12  ;;  %p39_p4 = scmp.eq.s32.totalorder %s563_s17, 1 }
   0x9   : > { %s762_s23 = scalar_select %p20_p1, %s694_s14, %s22_s21  }
   0xa   : > { %p764_p5 = por %p33_p2, %p32_p0  ;;  %p768_p6 = por %p39_p4, %p38_p3 }
   0xb   : > { %p565_p7 = scmp.ge.s32.totalorder %s698_s15, 2 }
   0xc   : > { %s85_s26 = sand.u32 (!%p565_p7), 1, %s698_s15   ;;  %s567_s27 = sshll.u32 (!%p565_p7), %s698_s15, 2 }
   0xd   : > { %83 = sbr.rel (%p565_p7) target bundleno = 20 (0x14), region = 16  ;;  %s566_s28 = sshll.u32 (!%p565_p7), %s85_s26, 2 }
   0xe   : > { %s89_s4 = scalar_lea.vmem (!%p565_p7), %s909_s0, %s567_s27  ;;  %s87_s5 = scalar_lea.vmem (!%p565_p7), [#allocation1], %s566_s28 }
  0x12   : > { %v106_v0 = vld [vmem:[%s89_s4] sm:$0xf] }
  0x13   : > { %107 = vst [vmem:[%s87_s5] sm:$0xf] %v106_v0 }
  0x14 PF: > { %p568_p8 = scmp.ge.s32.totalorder %s698_s15, 1  ;;  %p124_p9 = scmp.lt.s32.totalorder %s698_s15, 3 }
  0x16   : > { %p125_p10 = pnand %p568_p8, %p124_p9 }
  0x18   : > { %128 = sbr.rel (%p125_p10) target bundleno = 446 (0x1be), region = 50 }
  0x1d   : > { %s135_s6 = sand.u32 1, %s747_s16   ;;  %s146_s7 = sand.u32 1, %s690_s13   ;;  %v169_v1 = vlaneseq  ;;  %v704_v4 = vmov 0  }
  0x1e   : > { %s784_s8 = sshll.u32 %s135_s6, 2  ;;  %s788_s9 = sshll.u32 %s146_s7, 1 }
  0x1f   : > { %v791_v2 = vshrl.u32 %v169_v1, 7  ;;  %s137_s10 = scalar_lea.vmem [#allocation1], %s784_s8  ;;  %s164_s11 = sand.u32 7, %s747_s16  }
  0x20   : > { %v158_v3 = vld [vmem:[%s137_s10] sm:$0xf]  ;;  %s796_s17 = scalar_lea.vmem [#allocation4], %s164_s11  ;;  %s141_s19 = scalar_lea.vmem [#allocation3], %s784_s8 }
  0x21   : > { %159 = vst [vmem:[#allocation0] sm:$0xf] %v158_v3  ;;  %173 = vst [vmem:[#allocation9] sm:$0xff] %v791_v2  ;;  %s148_s20 = scalar_lea.vmem [#allocation5], %s788_s9  ;;  %s154_s21 = scalar_lea.vmem [#allocation8], %s788_s9 }
  0x22   : > { %168 = vst [vmem:[%s796_s17] sm:$0x1] %v704_v4  ;;  %s802_s22 = scalar_lea.vmem [#allocation7], %s164_s11  ;;  %s804_s26 = smov 0  }
  0x28   : > { %v162_v5 = vld [vmem:[#allocation0] sm:$0xff] }
  0x29   : > { %163 = vst [vmem:[#allocation2] sm:$0xff] %v162_v5 }
  0x2a LB: >> { %vm189_vm0 = vcmp.lt.s32.totalorder %v791_v2, 3  ;;  %v811_v8 = vstv %s702_s26  ;;  %s230_s27 = ssub.s32 128, %s702_s26  ;;  %v236_v38 = vand.u32 127, %v169_v1  ;;  %v239_v40 = vld [vmem:[%s796_s17] ss:$0 sm:$0xff]  ;;  %s242_s28 = scalar_lea.vmem [#allocation2], %s702_s26  ;;  %s702_s26 = sphi %s804_s26, %s179_s26  }
  0x2b   : >> { %vm188_vm1 = vcmp.ge.s32.totalorder %v791_v2, %v811_v8  ;;  %s248_s30 = scalar_lea.vmem [#allocation9], %s702_s26  ;;  %vm268_vm15 = vcmp.gt.s32.totalorder %v791_v2, %v811_v8  ;;  %s179_s26 = sadd.s32 1, %s702_s26  }
  0x2c   : >> { %vm190_vm3 = vmand %vm188_vm1, %vm189_vm0  ;;  %vm260_vm12 = vcmp.gt.s32.totalorder %v236_v38, %v811_v8  ;;  %vm237_vm13 = vcmp.eq.s32.totalorder %v236_v38, %v811_v8  ;;  %v250_v42 = vld [vmem:[%s248_s30] ss:$0 sm:$0xff]  ;;  %p176_p11 = scmp.ge.s32.totalorder %s179_s26, 3  }
  0x2d   : >> { %vm272_vm1 = vmand %vm268_vm15, %vm237_vm13  ;;  %s913_s6 = sshrl.u32 (%p176_p11), %s747_s16, 3  ;;  %s577_s10 = sshll.u32 (%p176_p11), %s747_s16, 2 }
  0x2e   : > { %s578_s11 = sshll.u32 (%p176_p11), %s913_s6, 5 }
  0x30   : >> { %v184_v6 = vld [vmem:[#allocation2] sm:$0xff]  ;;  %v244_v41 = vld [vmem:[%s242_s28] ss:$0 sm:$0xff] }
  0x31   : >> { %v185_v7 = vand.u32 2147483647, %v184_v6 }
  0x33   : >> { %vm573_vm2 = vcmp.gt.f32.partialorder %v185_v7, -inf }
  0x34   : >> { %vm192_vm4 = vmand %vm190_vm3, %vm573_vm2 }
  0x35   : >> { %v193_v9 = vsel %vm192_vm4, %v791_v2, %v811_v8  ;;  %v194_v10 = vsel %vm192_vm4, %v185_v7, -inf }
  0x36   : >> { %v195_v11 = vrot.slane %v194_v10, 1  ;;  %v196_v12 = vrot.slane %v193_v9, 1 }
  0x38   : >> { %vm197_vm5 = vcmp.ge.f32.partialorder %v195_v11, %v194_v10  ;;  %v200_v13 = vrot.slane %v195_v11, 1  ;;  %v201_v14 = vrot.slane %v196_v12, 1 }
  0x39   : >> { %v198_v15 = vsel %vm197_vm5, %v195_v11, %v194_v10  ;;  %v199_v16 = vsel %vm197_vm5, %v196_v12, %v193_v9 }
  0x3a   : >> { %vm202_vm6 = vcmp.ge.f32.partialorder %v200_v13, %v198_v15  ;;  %v205_v17 = vrot.slane %v200_v13, 1  ;;  %v206_v18 = vrot.slane %v201_v14, 1 }
  0x3b   : >> { %v203_v19 = vsel %vm202_vm6, %v200_v13, %v198_v15  ;;  %v204_v20 = vsel %vm202_vm6, %v201_v14, %v199_v16 }
  0x3c   : >> { %vm207_vm7 = vcmp.ge.f32.partialorder %v205_v17, %v203_v19  ;;  %v210_v21 = vrot.slane %v205_v17, 1  ;;  %v211_v22 = vrot.slane %v206_v18, 1 }
  0x3d   : >> { %v208_v23 = vsel %vm207_vm7, %v205_v17, %v203_v19  ;;  %v209_v24 = vsel %vm207_vm7, %v206_v18, %v204_v20 }
  0x3e   : >> { %vm212_vm8 = vcmp.ge.f32.partialorder %v210_v21, %v208_v23  ;;  %v215_v25 = vrot.slane %v210_v21, 1  ;;  %v216_v26 = vrot.slane %v211_v22, 1 }
  0x3f   : >> { %v213_v27 = vsel %vm212_vm8, %v210_v21, %v208_v23  ;;  %v214_v28 = vsel %vm212_vm8, %v211_v22, %v209_v24 }
  0x40   : >> { %vm217_vm9 = vcmp.ge.f32.partialorder %v215_v25, %v213_v27  ;;  %v220_v29 = vrot.slane %v215_v25, 1  ;;  %v221_v30 = vrot.slane %v216_v26, 1 }
  0x41   : >> { %v218_v31 = vsel %vm217_vm9, %v215_v25, %v213_v27  ;;  %v219_v32 = vsel %vm217_vm9, %v216_v26, %v214_v28 }
  0x42   : >> { %vm222_vm10 = vcmp.ge.f32.partialorder %v220_v29, %v218_v31  ;;  %v225_v33 = vrot.slane %v220_v29, 1  ;;  %v226_v34 = vrot.slane %v221_v30, 1 }
  0x43   : >> { %v223_v35 = vsel %vm222_vm10, %v220_v29, %v218_v31  ;;  %v224_v36 = vsel %vm222_vm10, %v221_v30, %v219_v32 }
  0x44   : >> { %vm227_vm11 = vcmp.ge.f32.partialorder %v225_v33, %v223_v35 }
  0x45   : >> { %v229_v37 = vsel %vm227_vm11, %v226_v34, %v224_v36 }
  0x46   : >> { %231 = vrot.lane.b32.xlu0 %v229_v37, %s230_s27  ;;  %s849_s27 = scalar_lea.vmem (%p176_p11), %s910_s1, %s577_s10 }
  0xb8   : >> { %v232_v39 = vpop.permute.xlu0 %231 }
  0xb9   : >> { %582 = vpush %v232_v39 }
  0xea   : >> { %s583_s29 = spop %582 }
  0xeb   : >> { %v238_v43 = vstv %s583_s29  ;;  %s243_s4 = scalar_lea.vmem [#allocation2], %s583_s29  ;;  %s249_s5 = scalar_lea.vmem [#allocation9], %s583_s29 }
  0xec   : >> { %v245_v44 = vld [vmem:[%s243_s4] ss:$0 sm:$0xff]  ;;  %v240_v46 = vsel %vm237_vm13, %v238_v43, %v239_v40 }
  0xed   : >> { %v251_v45 = vld [vmem:[%s249_s5] ss:$0 sm:$0xff]  ;;  %246 = vst [vmem:[%s243_s4] sm:$0x1] %v244_v41  ;;  %vm254_vm14 = vcmp.ne.f32.partialorder %v245_v44, 0.0  ;;  %241 = vst [vmem:[%s796_s17] sm:$0x1] %v240_v46  ;;  %v261_v53 = vsel %vm260_vm12, %v245_v44, 0.0 }
  0xee   : >> { %252 = vst [vmem:[%s249_s5] sm:$0x1] %v250_v42  ;;  %247 = vst [vmem:[%s242_s28] sm:$0x1] %v245_v44  ;;  %s410_s4 = sshll.u32 (%p176_p11), %s148_s20, 4  ;;  %s357_s5 = scalar_lea.sflag (%p176_p11), [#allocation6], %s146_s7  ;;  %s411_s4 = int_to_ptr.vmem [resolvable:$true] %s410_s4 }
  0xef   : >> { %253 = vst [vmem:[%s248_s30] sm:$0x1] %v251_v45  ;;  %vm255_vm0 = vmand %vm237_vm13, %vm254_vm14  ;;  %s854_s30 = scalar_lea.hbm (%p176_p11), %s911_s2, %s578_s11  ;;  %s634_s6 = scalar_lea.vmem (%p176_p11), %s411_s4, 32 }
  0xf0   : >> { %v256_v47 = vsel %vm255_vm0, %v245_v44, 1.0  ;;  %p635_p12 = scmp.ne.s32.totalorder (%p176_p11), %s411_s4, %s634_s6  ;;  %s705_s17 = smov (%p176_p11), [#allocation5]  }
  0xf1   : >> { %v269_v48 = vsel %vm268_vm15, %v256_v47, 1.0  ;;  %s638_s10 = sshll.u32 (%p176_p11), %s705_s17, 4  ;;  %s639_s10 = int_to_ptr.vmem [resolvable:$false] %s638_s10 }
  0xf2   : >> { %632 = vrcp.f32 %v269_v48  ;;  %p636_p13 = pnand (%p176_p11), %p635_p12, %p764_p5  ;;  %s640_s26 = scalar_lea.vmem (%p176_p11), %s639_s10, 64 }
  0xf3   : > { %p641_p1 = scmp.lt.s32.totalorder (%p176_p11), %s411_s4, %s639_s10  ;;  %p642_p2 = scmp.lt.s32.totalorder (%p176_p11), %s640_s26, %s634_s6 }
  0xf4   : > { %v340_v59 = vld [vmem:[#allocation4] sm:$0x3] (%p176_p11)  ;;  %p637_p0 = pneg (%p176_p11), %p636_p13 }
  0xf5   : >> { %v265_v50 = vld [vmem:[#allocation2] sm:$0xff]  ;;  %343 = vst [vmem:[%s148_s20] sm:$0x3] (%p176_p11), %v340_v59  ;;  %p643_p3 = por (%p176_p11), %p642_p2, %p641_p1 }
  0xf6   : > { %v279_v57 = vld [vmem:[#allocation9] sm:$0xff] (%p176_p11) }
  0xf7   : > { %p644_p4 = pnand (%p176_p11), %p643_p3, %p637_p0 }
  0xff   : >> { %v633_v49 = vpop.eup %632 }
 0x100   : >> { %v271_v51 = vmul.f32 %v633_v49, %v265_v50 }
 0x102   : >> { %v273_v52 = vsel %vm272_vm1, %v271_v51, 0.0 }
 0x103   : >> { %274 = vadd.xlane.f32.xlu0 %v273_v52 }
 0x130   : > { %295 = vxpose.xlu0.b32.start.end [1/1] (short) (narrow) (%p176_p11), %v279_v57, 8 }
 0x18c   : >> { %v275_v54 = vpop.xlane.xlu0 %274 }
 0x18d   : >> { %v276_v55 = vmul.f32 %v275_v54, %v261_v53  ;;  %178 = sbr.rel (!%p176_p11) target bundleno = 42 (0x2a), region = 202 }
 0x18f   : >> { %v277_v56 = vsub.f32 %v271_v51, %v276_v55 }
 0x191   : >> { %278 = vst [vmem:[#allocation2] sm:$0xff] %v277_v56 }
 0x198   : > { %v332_v58 = vld [vmem:[#allocation2] sm:$0xf] }
 0x199   : > { %335 = vst [vmem:[%s141_s19] sm:$0xf] %v332_v58 }
 0x1a0   : > { %v383_v60 = vld [vmem:[%s141_s19] sm:$0xf] }
 0x1a1   : > { %647 = shalt.err (!%p644_p4)
}
 0x1a2   : > { %s648_s8 = scalar_lea.hbm %s854_s30, 32  ;;  %s652_s20 = scalar_lea.hbm %s911_s2, 32 }
 0x1a3   : > { %p649_p8 = scmp.ne.s32.totalorder %s854_s30, %s648_s8  ;;  %p653_p11 = scmp.lt.s32.totalorder %s854_s30, %s911_s2 }
 0x1a4   : > { %p654_p12 = scmp.lt.s32.totalorder %s652_s20, %s648_s8 }
 0x1a5   : > { %p650_p9 = pnand %p649_p8, %p764_p5 }
 0x1a6   : > { %p655_p13 = por %p654_p12, %p653_p11 }
 0x1a7   : > { %p651_p10 = pneg %p650_p9 }
 0x1a9   : > { %p656_p0 = pnand %p655_p13, %p651_p10 }
 0x1ab   : > { %659 = shalt.err (!%p656_p0)
}
 0x1ac   : > { %584 = dma.vmem_to_hbm [thread:$0]  (%p764_p5), %s411_s4, 32, %s854_s30, %s357_s5   ;;  %384 = vst [vmem:[%s849_s27] sm:$0xf] %v383_v60  ;;  %v311_v61 = vpop.trf.xlu0 }
 0x1ad   : > { %327 = vst [vmem:[%s802_s22] sm:$0x1] %v311_v61  ;;  %s916_s6 = sshrl.u32 (%p764_p5), %s747_s16, 3 }
 0x1ae   : > { %s579_s29 = sshll.u32 (%p764_p5), %s916_s6, 1 }
 0x1af   : > { %s419_s26 = scalar_lea.vmem (%p764_p5), %s912_s3, %s579_s29 }
 0x1b1   : > { %416 = sbr.rel (!%p764_p5) target bundleno = 446 (0x1be), region = 96 }
 0x1b4   : > { %v348_v62 = vld [vmem:[#allocation7] sm:$0x3] }
 0x1b5   : > { %351 = vst [vmem:[%s154_s21] sm:$0x3] %v348_v62 }
 0x1bc   : > { %v436_v63 = vld [vmem:[%s154_s21] sm:$0x3] }
 0x1bd   : > { %437 = vst [vmem:[%s419_s26] sm:$0x3] %v436_v63 }
 0x1be PF: > { %s465_s22 = sand.u32 1, %s686_s12   ;;  %p587_p5 = pnand %p565_p7, %p768_p6 }
 0x1bf   : > { %s466_s16 = scalar_lea.sflag [#allocation6], %s465_s22 }
 0x1c0   : > { %p588_p1 = pneg %p587_p5 }
 0x1c2   : > { %681 = dma.done.wait (%p588_p1), %s466_s16, 32  }
 0x1c3   : > { %683 = vsyncadd (%p588_p1), %s466_s16, 4294967264  ;;  %p10_p2 = scmp.ge.s32.totalorder %s751_s18, 4   ;;  %s917_s12 = smov %s690_s13 }
 0x1c4   : > { %s918_s13 = smov %s694_s14  ;;  %s919_s14 = smov %s762_s23 }
 0x1c5   : > { %s920_s15 = smov %s751_s18  ;;  %12 = sbr.rel (!%p10_p2) target bundleno = 3 (0x3), region = 213 }
 0x1ca   :  { %478 = vsyncpa [#allocation6], 1 }
 0x1cb   :  { %480 = vsyncpa [#allocation6 + $0x1], 1 }

// kernel: custom-call.113
= control target key start
LH: loop header
LB: loop body
LE: loop exit
PB: predicated region body
PF: predicated region fallthrough
CT: control target
= control target key end

     0   :  { %s350_s6 = smov 0   ;;  %s352_s7 = smov 0   ;;  %s397_s0 = inlined_call_operand.vmem [shape: f32[2,1,3,3], index: 0, kind: input, shape index: {}]   ;;  %s398_s1 = inlined_call_operand.vmem [shape: f32[2,1,3,3], index: 1, kind: output, shape index: {}]  }
   0x1   :  { %s354_s8 = smov 0  }
   0x2 LB: > { %s276_s9 = sadd.s32 4294967295, %s337_s8   ;;  %s33_s10 = sadd.s32 1, %s333_s7  ;;  %s337_s8 = sphi %s354_s8, %s7_s8   ;;  %s333_s7 = sphi %s352_s7, %s400_s7   ;;  %s329_s6 = sphi %s350_s6, %s399_s6  }
   0x3   : > { %p35_p0 = scmp.ge.s32.totalorder %s33_s10, 2  ;;  %p278_p1 = scmp.ge.s32.totalorder %s337_s8, 2 }
   0x4   : > { %s49_s11 = sand.u32 (!%p278_p1), 1, %s337_s8   ;;  %s280_s12 = sshll.u32 (!%p278_p1), %s333_s7, 2 }
   0x5   : > { %s402_s10 = smov (%p35_p0, %s33_s10), 0  ;;  %47 = sbr.rel (%p278_p1) target bundleno = 12 (0xc), region = 16 }
   0x6   : > { %s279_s13 = sshll.u32 (!%p278_p1), %s49_s11, 2  ;;  %s56_s16 = scalar_lea.vmem (!%p278_p1), %s397_s0, %s280_s12 }
   0x7   : > { %s51_s17 = scalar_lea.vmem (!%p278_p1), [#allocation1], %s279_s13 }
   0xa   : > { %v73_v0 = vld [vmem:[%s56_s16] sm:$0xf] }
   0xb   : > { %74 = vst [vmem:[%s51_s17] sm:$0xf] %v73_v0 }
   0xc PF: > { %p281_p2 = scmp.ge.s32.totalorder %s337_s8, 1  ;;  %p91_p3 = scmp.lt.s32.totalorder %s337_s8, 3 }
   0xe   : > { %p92_p4 = pnand %p281_p2, %p91_p3 }
  0x10   : > { %95 = sbr.rel (%p92_p4) target bundleno = 500 (0x1f4), region = 50 }
  0x15   : > { %s377_s18 = sand.u32 1, %s276_s9   ;;  %v114_v1 = vlaneseq  ;;  %v339_v11 = vmov -1.0   ;;  %s285_s22 = sshll.u32 %s329_s6, 2 }
  0x16   : > { %s282_s19 = sshll.u32 %s377_s18, 2  ;;  %s183_s25 = scalar_lea.vmem %s398_s1, %s285_s22 }
  0x17   : > { %s104_s20 = scalar_lea.vmem [#allocation1], %s282_s19  ;;  %v115_v3 = vand.u32 127, %v114_v1  ;;  %v118_v4 = vshrl.u32 %v114_v1, 7  ;;  %s108_s21 = scalar_lea.vmem [#allocation3], %s282_s19 }
  0x18   : > { %v112_v2 = vld [vmem:[%s104_s20] sm:$0xf] }
  0x19   : > { %113 = vst [vmem:[#allocation0] sm:$0xf] %v112_v2  ;;  %vm116_vm0 = vcmp.lt.s32.totalorder %v115_v3, 3  ;;  %vm125_vm1 = vcmp.ge.s32.totalorder %v118_v4, %v115_v3  ;;  %vm120_vm2 = vcmp.eq.s32.totalorder %v118_v4, %v115_v3  ;;  %vm139_vm4 = vcmp.eq.s32.totalorder %v115_v3, 0 }
  0x1a   : > { %vm126_vm3 = vmand %vm125_vm1, %vm116_vm0  ;;  %vm136_vm5 = vcmp.eq.s32.totalorder %v115_v3, %v118_v4  ;;  %v140_v12 = vsel %vm139_vm4, 1.0, %v339_v11  ;;  %vm147_vm6 = vcmp.eq.s32.totalorder %v115_v3, 1  ;;  %vm157_vm7 = vcmp.eq.s32.totalorder %v115_v3, 2 }
  0x1b   : > { %v141_v13 = vsel %vm136_vm5, %v140_v12, 0.0 }
  0x20   : > { %v121_v5 = vld [vmem:[#allocation0] sm:$0xff] }
  0x21   : > { %v122_v6 = vsel %vm120_vm2, %v121_v5, 0.0  ;;  %v127_v7 = vsel %vm126_vm3, %v121_v5, 0.0 }
  0x22   : > { %123 = vadd.xlane.f32.xlu0 %v122_v6 }
  0xab   : > { %v124_v8 = vpop.xlane.xlu0 %123 }
  0xac   : > { %313 = vrcp.f32 %v124_v8  ;;  %vm164_vm8 = vweird.f32 %v124_v8 }
  0xb9   : > { %v314_v9 = vpop.eup %313 }
  0xba   : > { %v129_v10 = vmul.f32 %v314_v9, %v127_v7 }
  0xbc   : > { %130 = vst [vmem:[#allocation4] sm:$0xff] %v129_v10 }
  0xc3   : > { %v143_v14 = vld [vmem:[#allocation4 + $0x1] ss:$0 sm:$0xff]  ;;  %v153_v17 = vld [vmem:[#allocation4 + $0x2] ss:$0 sm:$0xff] }
  0xc4   : > { %v144_v15 = vxor.u32 2147483648, %v143_v14  ;;  %v154_v19 = vxor.u32 2147483648, %v153_v17 }
  0xc6   : > { %v148_v16 = vmul.f32 %v144_v15, %v141_v13 }
  0xc8   : > { %149 = vadd.xlane.f32.xlu0 %v148_v16 }
 0x151   : > { %v150_v18 = vpop.xlane.xlu0 %149 }
 0x152   : > { %v151_v20 = vsel %vm147_vm6, %v150_v18, %v141_v13 }
 0x153   : > { %v158_v21 = vmul.f32 %v154_v19, %v151_v20 }
 0x155   : > { %159 = vadd.xlane.f32.xlu1 %v158_v21 }
 0x1de   : > { %v160_v22 = vpop.xlane.xlu1 %159 }
 0x1df   : > { %v161_v23 = vsel %vm157_vm7, %v160_v22, %v151_v20 }
 0x1e0   : > { %v163_v24 = vmul.f32 %v314_v9, %v161_v23 }
 0x1e2   : > { %v165_v25 = vsel %vm164_vm8, %v161_v23, %v163_v24 }
 0x1e3   : > { %166 = vst [vmem:[#allocation2] sm:$0xff] %v165_v25 }
 0x1ea   : > { %v171_v26 = vld [vmem:[#allocation2] sm:$0xf] }
 0x1eb   : > { %174 = vst [vmem:[%s108_s21] sm:$0xf] %v171_v26 }
 0x1f2   : > { %v200_v27 = vld [vmem:[%s108_s21] sm:$0xf] }
 0x1f3   : > { %201 = vst [vmem:[%s183_s25] sm:$0xf] %v200_v27 }
 0x1f4 PF: > { %s7_s8 = sadd.s32 1, %s337_s8   ;;  %s399_s6 = smov %s333_s7 }
 0x1f5   : > { %p4_p5 = scmp.ge.s32.totalorder %s7_s8, 4   ;;  %s400_s7 = smov %s402_s10 }
 0x1f7   :  { %6 = sbr.rel (!%p4_p5) target bundleno = 2 (0x2), region = 112 }

// kernel: custom-call.112
= control target key start
LH: loop header
LB: loop body
LE: loop exit
PB: predicated region body
PF: predicated region fallthrough
CT: control target
= control target key end

     0   :  { %s349_s6 = smov 0   ;;  %s351_s7 = smov 0   ;;  %s396_s0 = inlined_call_operand.vmem [shape: f32[2,1,3,3], index: 0, kind: input, shape index: {}]   ;;  %s397_s1 = inlined_call_operand.vmem [shape: f32[2,1,3,3], index: 1, kind: output, shape index: {}]  }
   0x1   :  { %s353_s8 = smov 0  }
   0x2 LB: > { %s275_s9 = sadd.s32 4294967295, %s336_s8   ;;  %s33_s10 = sadd.s32 1, %s332_s7  ;;  %s336_s8 = sphi %s353_s8, %s7_s8   ;;  %s332_s7 = sphi %s351_s7, %s399_s7   ;;  %s328_s6 = sphi %s349_s6, %s398_s6  }
   0x3   : > { %p35_p0 = scmp.ge.s32.totalorder %s33_s10, 2  ;;  %p277_p1 = scmp.ge.s32.totalorder %s336_s8, 2 }
   0x4   : > { %s49_s11 = sand.u32 (!%p277_p1), 1, %s336_s8   ;;  %s279_s12 = sshll.u32 (!%p277_p1), %s332_s7, 2 }
   0x5   : > { %s401_s10 = smov (%p35_p0, %s33_s10), 0  ;;  %47 = sbr.rel (%p277_p1) target bundleno = 12 (0xc), region = 16 }
   0x6   : > { %s278_s13 = sshll.u32 (!%p277_p1), %s49_s11, 2  ;;  %s56_s16 = scalar_lea.vmem (!%p277_p1), %s396_s0, %s279_s12 }
   0x7   : > { %s51_s17 = scalar_lea.vmem (!%p277_p1), [#allocation1], %s278_s13 }
   0xa   : > { %v73_v0 = vld [vmem:[%s56_s16] sm:$0xf] }
   0xb   : > { %74 = vst [vmem:[%s51_s17] sm:$0xf] %v73_v0 }
   0xc PF: > { %p280_p2 = scmp.ge.s32.totalorder %s336_s8, 1  ;;  %p91_p3 = scmp.lt.s32.totalorder %s336_s8, 3 }
   0xe   : > { %p92_p4 = pnand %p280_p2, %p91_p3 }
  0x10   : > { %95 = sbr.rel (%p92_p4) target bundleno = 500 (0x1f4), region = 50 }
  0x15   : > { %s376_s18 = sand.u32 1, %s275_s9   ;;  %v114_v1 = vlaneseq  ;;  %v338_v11 = vmov -1.0   ;;  %s284_s22 = sshll.u32 %s328_s6, 2 }
  0x16   : > { %s281_s19 = sshll.u32 %s376_s18, 2  ;;  %s182_s25 = scalar_lea.vmem %s397_s1, %s284_s22 }
  0x17   : > { %s104_s20 = scalar_lea.vmem [#allocation1], %s281_s19  ;;  %v115_v3 = vand.u32 127, %v114_v1  ;;  %v118_v4 = vshrl.u32 %v114_v1, 7  ;;  %s108_s21 = scalar_lea.vmem [#allocation3], %s281_s19 }
  0x18   : > { %v112_v2 = vld [vmem:[%s104_s20] sm:$0xf] }
  0x19   : > { %113 = vst [vmem:[#allocation0] sm:$0xf] %v112_v2  ;;  %vm116_vm0 = vcmp.lt.s32.totalorder %v115_v3, 3  ;;  %vm125_vm1 = vcmp.le.s32.totalorder %v118_v4, %v115_v3  ;;  %vm120_vm2 = vcmp.eq.s32.totalorder %v118_v4, %v115_v3  ;;  %vm139_vm4 = vcmp.eq.s32.totalorder %v115_v3, 2 }
  0x1a   : > { %vm126_vm3 = vmand %vm125_vm1, %vm116_vm0  ;;  %vm136_vm5 = vcmp.eq.s32.totalorder %v115_v3, %v118_v4  ;;  %v140_v12 = vsel %vm139_vm4, 1.0, %v338_v11  ;;  %vm147_vm6 = vcmp.eq.s32.totalorder %v115_v3, 1  ;;  %vm156_vm7 = vcmp.eq.s32.totalorder %v115_v3, 0 }
  0x1b   : > { %v141_v13 = vsel %vm136_vm5, %v140_v12, 0.0 }
  0x20   : > { %v121_v5 = vld [vmem:[#allocation0] sm:$0xff] }
  0x21   : > { %v122_v6 = vsel %vm120_vm2, %v121_v5, 0.0  ;;  %v127_v7 = vsel %vm126_vm3, %v121_v5, 0.0 }
  0x22   : > { %123 = vadd.xlane.f32.xlu0 %v122_v6 }
  0xab   : > { %v124_v8 = vpop.xlane.xlu0 %123 }
  0xac   : > { %312 = vrcp.f32 %v124_v8  ;;  %vm163_vm8 = vweird.f32 %v124_v8 }
  0xb9   : > { %v313_v9 = vpop.eup %312 }
  0xba   : > { %v129_v10 = vmul.f32 %v313_v9, %v127_v7 }
  0xbc   : > { %130 = vst [vmem:[#allocation4] sm:$0xff] %v129_v10 }
  0xc3   : > { %v143_v14 = vld [vmem:[#allocation4 + $0x1] ss:$0 sm:$0xff]  ;;  %v152_v17 = vld [vmem:[#allocation4] ss:$0 sm:$0xff] }
  0xc4   : > { %v144_v15 = vxor.u32 2147483648, %v143_v14  ;;  %v153_v19 = vxor.u32 2147483648, %v152_v17 }
  0xc6   : > { %v148_v16 = vmul.f32 %v144_v15, %v141_v13 }
  0xc8   : > { %149 = vadd.xlane.f32.xlu0 %v148_v16 }
 0x151   : > { %v150_v18 = vpop.xlane.xlu0 %149 }
 0x152   : > { %v151_v20 = vsel %vm147_vm6, %v150_v18, %v141_v13 }
 0x153   : > { %v157_v21 = vmul.f32 %v153_v19, %v151_v20 }
 0x155   : > { %158 = vadd.xlane.f32.xlu1 %v157_v21 }
 0x1de   : > { %v159_v22 = vpop.xlane.xlu1 %158 }
 0x1df   : > { %v160_v23 = vsel %vm156_vm7, %v159_v22, %v151_v20 }
 0x1e0   : > { %v162_v24 = vmul.f32 %v313_v9, %v160_v23 }
 0x1e2   : > { %v164_v25 = vsel %vm163_vm8, %v160_v23, %v162_v24 }
 0x1e3   : > { %165 = vst [vmem:[#allocation2] sm:$0xff] %v164_v25 }
 0x1ea   : > { %v170_v26 = vld [vmem:[#allocation2] sm:$0xf] }
 0x1eb   : > { %173 = vst [vmem:[%s108_s21] sm:$0xf] %v170_v26 }
 0x1f2   : > { %v199_v27 = vld [vmem:[%s108_s21] sm:$0xf] }
 0x1f3   : > { %200 = vst [vmem:[%s182_s25] sm:$0xf] %v199_v27 }
 0x1f4 PF: > { %s7_s8 = sadd.s32 1, %s336_s8   ;;  %s398_s6 = smov %s332_s7 }
 0x1f5   : > { %p4_p5 = scmp.ge.s32.totalorder %s7_s8, 4   ;;  %s399_s7 = smov %s401_s10 }
 0x1f7   :  { %6 = sbr.rel (!%p4_p5) target bundleno = 2 (0x2), region = 111 }

// kernel: mul.301
= control target key start
LH: loop header
LB: loop body
LE: loop exit
PB: predicated region body
PF: predicated region fallthrough
CT: control target
= control target key end

     0   :  { %s8_s6 = smov 3  ;;  %s11_s7 = smov 12  ;;  %vm13_vm0 = vcmask 1043458   ;;  %vm3_vm1 = vcmask 130048   ;;  %vm17_vm2 = vcmask 1048448   ;;  %vm31_vm3 = vcmask 917248   ;;  %s216_s0 = inlined_call_operand.vmem [shape: f32[2,1,16,16], index: 0, kind: input, shape index: {}]   ;;  %s217_s1 = inlined_call_operand.vmem [shape: f32[2,256], index: 1, kind: output, shape index: {}]  }
   0x1   :  { %v119_v0 = vld [vmem:[%s216_s0 + $0x7] ss:$16 sm:%s8_s6]   ;;  %v120_v1 = vld [vmem:[%s216_s0 - $0x11] ss:$16 sm:%s11_s7]   ;;  %s36_s12 = smov 3  ;;  %s39_s15 = smov 12 }
   0x2   :  { %v14_v2 = vsel %vm13_vm0, %v120_v1, %v119_v0  ;;  %v123_v3 = vld [vmem:[%s216_s0 + $0x5] ss:$16 sm:%s36_s12]   ;;  %s141_s16 = smov 112   ;;  %v124_v4 = vld [vmem:[%s216_s0 - $0x13] ss:$16 sm:%s39_s15]   ;;  %s22_s19 = smov 3 }
   0x3   :  { %15 = vrot.lane.b32.xlu0 %v14_v2, %s141_s16  ;;  %s25_s20 = smov 12  ;;  %v42_v5 = vsel %vm13_vm0, %v124_v4, %v123_v3  ;;  %v121_v6 = vld [vmem:[%s216_s0 + $0x6] ss:$16 sm:%s22_s19]   ;;  %s50_s25 = smov 3  ;;  %vm45_vm4 = vcmask 786048   ;;  %vm59_vm5 = vcmask 654848  }
   0x4   :  { %v122_v7 = vld [vmem:[%s216_s0 - $0x12] ss:$16 sm:%s25_s20]   ;;  %s142_s26 = smov 80   ;;  %v125_v9 = vld [vmem:[%s216_s0 + $0x4] ss:$16 sm:%s50_s25]   ;;  %s53_s29 = smov 12 }
   0x5   :  { %43 = vrot.lane.b32.xlu1 %v42_v5, %s142_s26  ;;  %v28_v8 = vsel %vm13_vm0, %v122_v7, %v121_v6  ;;  %v126_v10 = vld [vmem:[%s216_s0 - $0x14] ss:$16 sm:%s53_s29]   ;;  %s64_s3 = smov 3  ;;  %s67_s4 = smov 12  ;;  %vm73_vm6 = vcmask 523648   ;;  %vm87_vm7 = vcmask 392448  }
   0x6   :  { %s143_s5 = smov 96   ;;  %v56_v11 = vsel %vm13_vm0, %v126_v10, %v125_v9  ;;  %v127_v12 = vld [vmem:[%s216_s0 + $0x3] ss:$16 sm:%s64_s3]   ;;  %s78_s8 = smov 3  ;;  %v128_v13 = vld [vmem:[%s216_s0 - $0x15] ss:$16 sm:%s67_s4]  }
   0x7   :  { %29 = vrot.lane.b32.xlu0 %v28_v8, %s143_s5  ;;  %v129_v14 = vld [vmem:[%s216_s0 + $0x2] ss:$16 sm:%s78_s8]   ;;  %s81_s13 = smov 12  ;;  %s144_s14 = smov 64   ;;  %v70_v15 = vsel %vm13_vm0, %v128_v13, %v127_v12  ;;  %vm101_vm8 = vcmask 261248  }
   0x8   :  { %v130_v16 = vld [vmem:[%s216_s0 - $0x16] ss:$16 sm:%s81_s13]   ;;  %s92_s17 = smov 3  ;;  %s95_s18 = smov 12 }
   0x9   :  { %57 = vrot.lane.b32.xlu1 %v56_v11, %s144_s14  ;;  %v84_v17 = vsel %vm13_vm0, %v130_v16, %v129_v14  ;;  %v131_v18 = vld [vmem:[%s216_s0 + $0x1] ss:$16 sm:%s92_s17]   ;;  %s145_s23 = smov 48   ;;  %v2_v20 = vld [vmem:[%s216_s0] ss:$8 sm:$0xf]  }
   0xa   :  { %v132_v19 = vld [vmem:[%s216_s0 - $0x17] ss:$16 sm:%s95_s18]   ;;  %4 = vst.msk [vmem:[#allocation0] ss:$8 sm:$0x3] %vm3_vm1, %v2_v20   ;;  %s146_s0 = smov 32  }
   0xb   :  { %71 = vrot.lane.b32.xlu0 %v70_v15, %s145_s23  ;;  %v98_v21 = vsel %vm13_vm0, %v132_v19, %v131_v18  ;;  %6 = vst.msk [vmem:[#allocation0 - $0xf] ss:$8 sm:$0xc] %vm3_vm1, %v2_v20   ;;  %s147_s26 = smov 16  }
   0xd   :  { %85 = vrot.lane.b32.xlu1 %v84_v17, %s146_s0 }
   0xf   :  { %99 = vrot.lane.b32.xlu0 %v98_v21, %s147_s26 }
  0x75   :  { %v16_v22 = vpop.permute.xlu0 %15  }
  0x76   :  { %18 = vst.msk [vmem:[#allocation0] sm:$0x3] %vm17_vm2, %v16_v22   ;;  %20 = vst.msk [vmem:[#allocation0 + $0x6] sm:$0xc] %vm17_vm2, %v16_v22  }
  0x77   :  { %v44_v23 = vpop.permute.xlu1 %43  }
  0x79   :  { %v30_v24 = vpop.permute.xlu0 %29  }
  0x7a   :  { %32 = vst.msk [vmem:[#allocation0] sm:$0x3] %vm31_vm3, %v30_v24   ;;  %34 = vst.msk [vmem:[#allocation0 + $0x6] sm:$0xc] %vm31_vm3, %v30_v24  }
  0x7b   :  { %46 = vst.msk [vmem:[#allocation0] sm:$0x3] %vm45_vm4, %v44_v23   ;;  %48 = vst.msk [vmem:[#allocation0 + $0x6] sm:$0xc] %vm45_vm4, %v44_v23   ;;  %v58_v25 = vpop.permute.xlu1 %57  }
  0x7c   :  { %60 = vst.msk [vmem:[#allocation0] sm:$0x3] %vm59_vm5, %v58_v25   ;;  %62 = vst.msk [vmem:[#allocation0 + $0x6] sm:$0xc] %vm59_vm5, %v58_v25  }
  0x7d   :  { %v72_v26 = vpop.permute.xlu0 %71  }
  0x7e   :  { %74 = vst.msk [vmem:[#allocation0] sm:$0x3] %vm73_vm6, %v72_v26   ;;  %76 = vst.msk [vmem:[#allocation0 + $0x6] sm:$0xc] %vm73_vm6, %v72_v26  }
  0x7f   :  { %v86_v27 = vpop.permute.xlu1 %85  }
  0x80   :  { %88 = vst.msk [vmem:[#allocation0] sm:$0x3] %vm87_vm7, %v86_v27   ;;  %90 = vst.msk [vmem:[#allocation0 + $0x6] sm:$0xc] %vm87_vm7, %v86_v27  }
  0x81   :  { %v100_v28 = vpop.permute.xlu0 %99  }
  0x82   :  { %102 = vst.msk [vmem:[#allocation0] sm:$0x3] %vm101_vm8, %v100_v28   ;;  %104 = vst.msk [vmem:[#allocation0 + $0x6] sm:$0xc] %vm101_vm8, %v100_v28  }
  0x89   :  { %v109_v29 = vld [vmem:[#allocation0] sm:$0x3]  ;;  %v114_v30 = vld [vmem:[#allocation0 + $0x8] sm:$0x3] }
  0x8a   :  { %112 = vst [vmem:[%s217_s1] sm:$0x3] %v109_v29  ;;  %133 = vst [vmem:[%s217_s1 + $0x2] sm:$0x3] %v114_v30 }

// kernel: run.1
= control target key start
LH: loop header
LB: loop body
LE: loop exit
PB: predicated region body
PF: predicated region fallthrough
CT: control target
= control target key end

     0   :  { %s5489_s0 = inlined_call_operand.vmem [shape: s32[6], index: 0, kind: input, shape index: {}]   ;;  %s5490_s2 = inlined_call_operand.vmem [shape: bf16[3,2,3,16,16], index: 2, kind: input, shape index: {}, may-alias: {2,3}]   ;;  %s5491_s3 = inlined_call_operand.vmem [shape: bf16[3,2,3,16,16], index: 3, kind: input, shape index: {}, may-alias: {2,3}]   ;;  %s5492_s4 = inlined_call_operand.vmem [shape: f32[3,2,1,16,16], index: 4, kind: input, shape index: {}]   ;;  %s5493_s5 = inlined_call_operand.vmem [shape: f32[6,2,3,16,16], index: 5, kind: input, shape index: {}]   ;;  %s5494_s6 = inlined_call_operand.vmem [shape: f32[6,2,1,16,16], index: 6, kind: input, shape index: {}]   ;;  %s5495_s7 = inlined_call_operand.vmem [shape: f32[6,2,1,16,16], index: 7, kind: input, shape index: {}]   ;;  %s5496_s8 = inlined_call_operand.vmem [shape: f32[6,2,1,16,16], index: 8, kind: input, shape index: {}]   ;;  %s5497_s9 = inlined_call_operand.vmem [shape: f32[6,8,128], index: 9, kind: output, shape index: {}]   ;;  %s5498_s1 = inlined_call_operand.vmem [shape: s32[6], index: 1, kind: input, shape index: {}]  }
   0x1   :  { %s14_s11 = sshll.u32 %s5489_s0, 4  ;;  %s18_s14 = sshll.u32 %s5498_s1, 4  ;;  %s15_s11 = int_to_ptr.vmem [resolvable:$true] %s14_s11  ;;  %s19_s14 = int_to_ptr.vmem [resolvable:$true] %s18_s14 }
   0x2   :  { %s3031_s15 = scalar_lea.vmem %s15_s11, 16  ;;  %p3036_p1 = scmp.lt.s32.totalorder %s15_s11, %s15_s11 }
   0x3   :  { %p3032_p0 = scmp.ne.s32.totalorder %s15_s11, %s3031_s15  ;;  %p3037_p2 = scmp.lt.s32.totalorder %s3031_s15, %s3031_s15 }
   0x5   :  { %p3038_p3 = por %p3037_p2, %p3036_p1 }
   0x7   :  { %p3039_p4 = pnand %p3038_p3, %p3032_p0 }
   0x9   :  { %3042 = shalt.err (!%p3039_p4)  }
   0xa   :  { %s3065_s16 = smov [#allocation3]   ;;  %s3043_s17 = scalar_lea.vmem %s19_s14, 16 }
   0xb   :  { %17 = dma.vmem_to_smem %s15_s11, 16, %s3065_s16, [#allocation2] }
   0xc   :  { %p3044_p5 = scmp.ne.s32.totalorder %s19_s14, %s3043_s17  ;;  %p3048_p6 = scmp.lt.s32.totalorder %s19_s14, %s19_s14 }
   0xd   :  { %p3049_p7 = scmp.lt.s32.totalorder %s3043_s17, %s3043_s17 }
   0xf   :  { %p3050_p8 = por %p3049_p7, %p3048_p6 }
  0x11   :  { %p3051_p9 = pnand %p3050_p8, %p3044_p5 }
  0x13   :  { %3054 = shalt.err (!%p3051_p9)  }
  0x14   :  { %s3066_s0 = smov [#allocation4]  }
  0x15   :  { %21 = dma.vmem_to_smem %s19_s14, 16, %s3066_s0, [#allocation2] }
  0x16   :  { %3059 = dma.done.wait [#allocation2], 32 }
  0x17   :  { %3060 = vsyncadd [#allocation2], 4294967264 }
  0x18   :  { %23 = sfence }
  0x19   :  { %s3126_s1 = smov 0  }
  0x1a LB: > { %s3132_s18 = sadd.s32 4294967295, %s3063_s1   ;;  %p2784_p10 = scmp.ge.s32.totalorder %s3063_s1, 1  ;;  %s3063_s1 = sphi %s3126_s1, %s29_s1  }
  0x1b   : > { %p321_p11 = scmp.lt.s32.totalorder %s3063_s1, 7 }
  0x1d   : > { %p322_p12 = pnand %p2784_p10, %p321_p11 }
  0x1f   : > { %325 = sbr.rel (%p322_p12) target bundleno = 790 (0x316), region = 48 }
  0x24   : > { %p406_p13 = scmp.lt.s32.totalorder %s3132_s18, 5  ;;  %s385_s19 = sld [smem:[#allocation3 + %s3132_s18]]  ;;  %v482_v36 = vlaneseq  ;;  %v5499_v39 = vmov 0.0   ;;  %vm2113_vm1 = vcmask 130048   ;;  %vm565_vm2 = vcmask 7168  }
  0x25   : > { %s3067_s25 = smov 1   ;;  %s3068_s30 = smov 127   ;;  %vm614_vm3 = vcmask 121856   ;;  %vm1099_vm6 = vcmask 1040384   ;;  %vm1136_vm7 = vcmask 1046528  }
  0x26   : > { %s3139_s20 = scalar_select %p406_p13, %s3132_s18, 5  ;;  %v3267_v37 = vand.u32 127, %v482_v36  ;;  %v3305_v55 = vshrl.u32 %v482_v36, 7 }
  0x27   : > { %s399_s10 = sld [smem:[#allocation3 + %s3132_s18]] }
  0x28   : > { %s2873_s21 = smul.u32 96, %s3139_s20  ;;  %5579 = vst [vmem:[#allocation15_spill] sm:$0xff] %v3267_v37  ;;  %vm493_vm0 = vcmp.lt.s32.totalorder %v3267_v37, 16  ;;  %vm487_vm4 = vcmp.eq.s32.totalorder %v3267_v37, 0  ;;  %vm488_vm5 = vcmp.eq.s32.totalorder %v3267_v37, 15  ;;  %5581 = vst [vmem:[#allocation17_spill] sm:$0xff] %v3305_v55 }
  0x29   : > { %v3279_v40 = vsel %vm493_vm0, 1.0, %v5499_v39  ;;  %vm489_vm8 = vcmp.eq.s32.totalorder %v3305_v55, 0  ;;  %vm502_vm9 = vcmp.lt.s32.totalorder %v3267_v37, 15  ;;  %s4818_s15 = sld [smem:[#allocation4 + %s3132_s18]]  ;;  %s4862_s16 = sshll.u32 %s3139_s20, 5 }
  0x2a   : > { %s3145_s24 = scalar_lea.vmem %s5493_s5, %s2873_s21  ;;  %p386_p0 = scmp.lt.s32.totalorder %s385_s19, 2  ;;  %5580 = vst [vmem:[#allocation16_spill] sm:$0xff] %v3279_v40 }
  0x2b   : > { %v3148_v0 = vld [vmem:[%s3145_s24 + $0x8] sm:$0xff]  ;;  %v3151_v1 = vld [vmem:[%s3145_s24] sm:$0xff]  ;;  %v3158_v2 = vld [vmem:[%s3145_s24 + $0x18] sm:$0xff]  ;;  %s4881_s18 = scalar_lea.vmem %s5495_s7, %s4862_s16  ;;  %s425_s23 = scalar_lea.vmem %s5496_s8, %s4862_s16 }
  0x2c   : > { %641 = vrot.lane.b32.xlu1 %v3148_v0, %s3067_s25  ;;  %639 = vrot.lane.b32.xlu0 %v3151_v1, %s3067_s25  ;;  %v3161_v3 = vld [vmem:[%s3145_s24 + $0x10] sm:$0xff]  ;;  %s5848_s19 = smov (!%p386_p0, %s385_s19), 2  ;;  %v3226_v24 = vld [vmem:[%s3145_s24 + $0x28] sm:$0xff]  ;;  %v920_v54 = vmul.f32 %v3148_v0, %v3148_v0  ;;  %v919_v56 = vmul.f32 %v3151_v1, %v3151_v1  ;;  %s2796_s17 = sshll.u32 %s3139_s20, 3 }
  0x2d   : > { %s2871_s26 = smul.u32 48, %s5848_s19  ;;  %v3229_v25 = vld [vmem:[%s3145_s24 + $0x20] sm:$0xff]  ;;  %v461_v26 = vld [vmem:[%s3145_s24 + $0x38] sm:$0xff]  ;;  %v460_v27 = vld [vmem:[%s3145_s24 + $0x30] sm:$0xff]  ;;  %p400_p1 = scmp.lt.s32.totalorder %s399_s10, 2  ;;  %v3393_v36 = vmul.f32 %v3226_v24, %v3226_v24 }
  0x2e   : > { %v463_v28 = vld [vmem:[%s3145_s24 + $0x48] sm:$0xff]  ;;  %v462_v29 = vld [vmem:[%s3145_s24 + $0x40] sm:$0xff]  ;;  %v465_v34 = vld [vmem:[%s3145_s24 + $0x58] sm:$0xff] }
  0x2f   : > { %s3170_s29 = scalar_lea.vmem %s5490_s2, %s2871_s26  ;;  %v464_v35 = vld [vmem:[%s3145_s24 + $0x50] sm:$0xff]  ;;  %s5850_s10 = smov (!%p400_p1, %s399_s10), 2  ;;  %5584 = vst [vmem:[#allocation20_spill] sm:$0xff] %v3393_v36 }
  0x30   : > { %645 = vrot.lane.b32.xlu1 %v3158_v2, %s3067_s25  ;;  %643 = vrot.lane.b32.xlu0 %v3161_v3, %s3067_s25  ;;  %v2814_v4 = vld [vmem:[%s3170_s29] sm:$0xff]   ;;  %v2861_v5 = vld [vmem:[%s3170_s29 + $0x8] sm:$0xff]   ;;  %s2809_s11 = sshll.u32 %s5850_s10, 5  ;;  %p393_p2 = scmp.lt.s32.totalorder %s4818_s15, 2 }
  0x31   : > { %v3174_v6 = vunpack.c.l.bf16 %v2814_v4  ;;  %v3176_v7 = vunpack.c.h.bf16 %v2814_v4  ;;  %v3182_v8 = vunpack.c.l.bf16 %v2861_v5  ;;  %v3184_v9 = vunpack.c.h.bf16 %v2861_v5  ;;  %v2863_v12 = vld [vmem:[%s3170_s29 + $0x18] sm:$0xff]   ;;  %v2862_v13 = vld [vmem:[%s3170_s29 + $0x10] sm:$0xff]   ;;  %v2864_v18 = vld [vmem:[%s3170_s29 + $0x20] sm:$0xff]   ;;  %s3272_s14 = scalar_lea.vmem %s5492_s4, %s2809_s11 }
  0x32   : > { %v3196_v14 = vunpack.c.l.bf16 %v2863_v12  ;;  %v3198_v15 = vunpack.c.h.bf16 %v2863_v12  ;;  %v3200_v16 = vunpack.c.l.bf16 %v2862_v13  ;;  %v3202_v17 = vunpack.c.h.bf16 %v2862_v13  ;;  %v2865_v30 = vld [vmem:[%s3170_s29 + $0x28] sm:$0xff]   ;;  %v478_v38 = vld [vmem:[%s3272_s14] sm:$0xff]  ;;  %v3283_v42 = vld [vmem:[%s3272_s14 + $0x10] sm:$0xff]  ;;  %s5852_s15 = smov (!%p393_p2, %s4818_s15), 2  ;;  %s5067_s29 = scalar_lea.vmem %s5494_s6, %s4862_s16 }
  0x33   : > { %5570 = vst [vmem:[#allocation6_spill] sm:$0xff] %v3174_v6  ;;  %5571 = vst [vmem:[#allocation7_spill] sm:$0xff] %v3176_v7  ;;  %v2907_v10 = vpack.i.bf16 %v3176_v7, %v3174_v6  ;;  %v2912_v11 = vpack.i.bf16 %v3184_v9, %v3182_v8  ;;  %v3213_v21 = vunpack.c.l.bf16 %v2864_v18  ;;  %v3215_v22 = vunpack.c.h.bf16 %v2864_v18  ;;  %v3286_v43 = vld [vmem:[%s3272_s14 + $0x8] sm:$0xff]  ;;  %v3294_v47 = vld [vmem:[%s3272_s14 + $0x18] sm:$0xff]  ;;  %s2872_s19 = smul.u32 48, %s5852_s15 }
  0x34   : > { %689 = vrot.lane.b32.xlu1 %v3148_v0, %s3068_s30  ;;  %687 = vrot.lane.b32.xlu0 %v3151_v1, %s3068_s30  ;;  %5572 = vst [vmem:[#allocation8_spill] sm:$0xff] %v3182_v8  ;;  %5573 = vst [vmem:[#allocation9_spill] sm:$0xff] %v3184_v9  ;;  %v2922_v19 = vpack.i.bf16 %v3198_v15, %v3196_v14  ;;  %v2917_v20 = vpack.i.bf16 %v3202_v17, %v3200_v16  ;;  %v3250_v31 = vunpack.c.l.bf16 %v2865_v30 }
  0x35   : > { %5574 = vst [vmem:[#allocation10_spill] sm:$0xff] %v3198_v15  ;;  %5575 = vst [vmem:[#allocation11_spill] sm:$0xff] %v3200_v16  ;;  %v2927_v23 = vpack.i.bf16 %v3215_v22, %v3213_v21  ;;  %v3252_v32 = vunpack.c.h.bf16 %v2865_v30  ;;  %v2267_v41 = vmul.f32 %v3279_v40, %v478_v38  ;;  %v2269_v45 = vmul.f32 %v3279_v40, %v3283_v42  ;;  %s4918_s26 = scalar_lea.vmem %s5491_s3, %s2872_s19  ;;  %s429_s19 = scalar_lea.vmem %s5497_s9, %s2796_s17 }
  0x36   : > { %5576 = vst [vmem:[#allocation12_spill] sm:$0xff] %v3202_v17  ;;  %5577 = vst [vmem:[#allocation13_spill] sm:$0xff] %v3250_v31  ;;  %v2268_v46 = vmul.f32 %v3279_v40, %v3286_v43  ;;  %v2270_v49 = vmul.f32 %v3279_v40, %v3294_v47  ;;  %v3311_v57 = vmul.f32 %v3176_v7, %v3176_v7 }
  0x37   : > { %5578 = vst [vmem:[#allocation14_spill] sm:$0xff] %v3252_v32  ;;  %v2952_v33 = vpack.i.bf16 %v3252_v32, %v3250_v31  ;;  %v2271_v44 = vsel %vm2113_vm1, %v2267_v41, 0.0  ;;  %v2277_v48 = vsel %vm2113_vm1, %v2269_v45, 0.0  ;;  %v3315_v58 = vmul.f32 %v3176_v7, %v3148_v0 }
  0x38   : > { %2908 = vrot.lane.b32.xlu1 %v2907_v10, %s3068_s30  ;;  %2898 = vrot.lane.b32.xlu0 %v2907_v10, %s3067_s25  ;;  %v2274_v50 = vsel %vm2113_vm1, %v2268_v46, 0.0  ;;  %v2280_v51 = vsel %vm2113_vm1, %v2270_v49, 0.0  ;;  %v3319_v59 = vmul.f32 %v3174_v6, %v3174_v6  ;;  %v3323_v62 = vmul.f32 %v3174_v6, %v3151_v1 }
  0x39   : > { %v3327_v63 = vmul.f32 %v3182_v8, %v3182_v8  ;;  %v3331_v4 = vmul.f32 %v3184_v9, %v3184_v9  ;;  %v3335_v5 = vmul.f32 %v3158_v2, %v3158_v2  ;;  %v3347_v12 = vmul.f32 %v3184_v9, %v3158_v2 }
  0x3a   : > { %v3351_v13 = vmul.f32 %v3161_v3, %v3161_v3  ;;  %v3397_v41 = vmul.f32 %v3202_v17, %v3226_v24 }
  0x3c   : > { %2913 = vrot.lane.b32.xlu1 %v2912_v11, %s3068_s30  ;;  %2903 = vrot.lane.b32.xlu0 %v2912_v11, %s3067_s25  ;;  %5585 = vst [vmem:[#allocation21_spill] sm:$0xff] %v3397_v41 }
  0x40   : > { %693 = vrot.lane.b32.xlu1 %v3158_v2, %s3068_s30  ;;  %691 = vrot.lane.b32.xlu0 %v3161_v3, %s3068_s30 }
  0x44   : > { %2923 = vrot.lane.b32.xlu1 %v2922_v19, %s3067_s25  ;;  %2918 = vrot.lane.b32.xlu0 %v2917_v20, %s3067_s25 }
  0x48   : > { %2933 = vrot.lane.b32.xlu1 %v2917_v20, %s3068_s30  ;;  %2928 = vrot.lane.b32.xlu0 %v2927_v23, %s3067_s25  ;;  %v3363_v20 = vmul.f32 %v3200_v16, %v3200_v16 }
  0x4c   : > { %2943 = vrot.lane.b32.xlu1 %v2927_v23, %s3068_s30  ;;  %2938 = vrot.lane.b32.xlu0 %v2922_v19, %s3068_s30  ;;  %v3359_v19 = vmul.f32 %v3182_v8, %v3161_v3  ;;  %v3367_v23 = vmul.f32 %v3202_v17, %v3202_v17 }
  0x50   : > { %649 = vrot.lane.b32.xlu1 %v3226_v24, %s3067_s25  ;;  %647 = vrot.lane.b32.xlu0 %v3229_v25, %s3067_s25 }
  0x54   : > { %653 = vrot.lane.b32.xlu1 %v461_v26, %s3067_s25  ;;  %651 = vrot.lane.b32.xlu0 %v460_v27, %s3067_s25 }
  0x58   : > { %657 = vrot.lane.b32.xlu1 %v463_v28, %s3067_s25  ;;  %655 = vrot.lane.b32.xlu0 %v462_v29, %s3067_s25 }
  0x5c   : > { %697 = vrot.lane.b32.xlu1 %v3226_v24, %s3068_s30  ;;  %695 = vrot.lane.b32.xlu0 %v3229_v25, %s3068_s30 }
  0x60   : > { %701 = vrot.lane.b32.xlu1 %v461_v26, %s3068_s30  ;;  %699 = vrot.lane.b32.xlu0 %v460_v27, %s3068_s30  ;;  %v3371_v26 = vmul.f32 %v3213_v21, %v3213_v21  ;;  %v3375_v27 = vmul.f32 %v3215_v22, %v3215_v22 }
  0x64   : > { %705 = vrot.lane.b32.xlu1 %v463_v28, %s3068_s30  ;;  %703 = vrot.lane.b32.xlu0 %v462_v29, %s3068_s30  ;;  %v3379_v28 = vmul.f32 %v3196_v14, %v3196_v14  ;;  %v3383_v29 = vmul.f32 %v3198_v15, %v3198_v15 }
  0x66   : > { %5582 = vst [vmem:[#allocation18_spill] sm:$0xff] %v3379_v28  ;;  %5583 = vst [vmem:[#allocation19_spill] sm:$0xff] %v3383_v29 }
  0x68   : > { %2953 = vrot.lane.b32.xlu1 %v2952_v33, %s3068_s30  ;;  %2948 = vrot.lane.b32.xlu0 %v2952_v33, %s3067_s25 }
  0x6c   : > { %661 = vrot.lane.b32.xlu1 %v465_v34, %s3067_s25  ;;  %659 = vrot.lane.b32.xlu0 %v464_v35, %s3067_s25 }
  0x70   : > { %709 = vrot.lane.b32.xlu1 %v465_v34, %s3068_s30  ;;  %707 = vrot.lane.b32.xlu0 %v464_v35, %s3068_s30 }
  0x8f   : > { %2272 = vadd.xlane.f32.xlu0 %v2271_v44 }
  0x93   : > { %2278 = vadd.xlane.f32.xlu0 %v2277_v48 }
  0x94   : > { %2275 = vadd.xlane.f32.xlu1 %v2274_v50 }
  0x97   : > { %2281 = vadd.xlane.f32.xlu0 %v2280_v51 }
  0x9e   : > { %v642_v52 = vpop.permute.xlu1 %641  ;;  %v640_v53 = vpop.permute.xlu0 %639 }
  0x9f   : > { %v3339_v10 = vsel %vm565_vm2, %v3148_v0, %v642_v52  ;;  %v3343_v11 = vsel %vm565_vm2, %v3151_v1, %v640_v53 }
  0xa0   : > { %v932_v30 = vmul.f32 %v3339_v10, %v3339_v10  ;;  %v931_v33 = vmul.f32 %v3343_v11, %v3343_v11 }
  0xa2   : > { %v646_v60 = vpop.permute.xlu1 %645  ;;  %v644_v61 = vpop.permute.xlu0 %643 }
  0xa3   : > { %v3355_v18 = vsel %vm565_vm2, %v3158_v2, %v646_v60  ;;  %v3405_v44 = vsel %vm565_vm2, %v3161_v3, %v644_v61 }
  0xa5   : > { %2309 = vrot.lane.b32.xlu1 %v478_v38, %s3068_s30  ;;  %v3401_v38 = vmul.f32 %v3355_v18, %v3355_v18 }
  0xa6   : > { %v690_v34 = vpop.permute.xlu1 %689  ;;  %v688_v35 = vpop.permute.xlu0 %687 }
  0xa7   : > { %v724_v45 = vsel %vm614_vm3, %v690_v34, %v3148_v0  ;;  %v723_v46 = vsel %vm614_vm3, %v688_v35, %v3151_v1  ;;  %v3429_v34 = vmul.f32 %v3405_v44, %v3405_v44 }
  0xa8   : > { %v788_v48 = vsel %vm487_vm4, %v724_v45, %v3339_v10  ;;  %v812_v49 = vsel %vm488_vm5, %v3339_v10, %v724_v45  ;;  %v944_v50 = vmul.f32 %v724_v45, %v724_v45  ;;  %v787_v51 = vsel %vm487_vm4, %v723_v46, %v3343_v11 }
  0xa9   : > { %v800_v52 = vadd.f32 %v788_v48, %v3148_v0  ;;  %v799_v53 = vadd.f32 %v787_v51, %v3151_v1  ;;  %v811_v60 = vsel %vm488_vm5, %v3343_v11, %v723_v46  ;;  %v943_v61 = vmul.f32 %v723_v46, %v723_v46  ;;  %2313 = vrot.lane.b32.xlu1 %v3283_v42, %s3068_s30 }
  0xaa   : > { %v956_v35 = vsel %vm487_vm4, %v944_v50, %v932_v30  ;;  %v980_v0 = vsel %vm488_vm5, %v932_v30, %v944_v50  ;;  %v2909_v48 = vpop.permute.xlu1 %2908  ;;  %v3437_v1 = vmul.f32 %v3229_v25, %v3229_v25 }
  0xab   : > { %v824_v51 = vadd.f32 %v812_v49, %v800_v52  ;;  %v968_v39 = vadd.f32 %v956_v35, %v920_v54  ;;  %v823_v40 = vadd.f32 %v811_v60, %v799_v53  ;;  %v955_v42 = vsel %vm487_vm4, %v943_v61, %v931_v33 }
  0xac   : > { %v967_v31 = vadd.f32 %v955_v42, %v919_v56  ;;  %v979_v32 = vsel %vm488_vm5, %v931_v33, %v943_v61  ;;  %v2911_v41 = vunpack.i.h.bf16 %v2909_v48  ;;  %v2910_v36 = vunpack.i.l.bf16 %v2909_v48  ;;  %v2899_v42 = vpop.permute.xlu0 %2898 }
  0xad   : > { %v992_v28 = vadd.f32 %v980_v0, %v968_v39  ;;  %v1242_v29 = vrot.slane %v824_v51, 7  ;;  %v1278_v30 = vrot.slane %v824_v51, 1  ;;  %v1241_v50 = vrot.slane %v823_v40, 7  ;;  %2311 = vrot.lane.b32.xlu0 %v3286_v43, %s3068_s30  ;;  %2315 = vrot.lane.b32.xlu1 %v3294_v47, %s3068_s30 }
  0xae   : > { %v991_v54 = vadd.f32 %v979_v32, %v967_v31  ;;  %v1277_v49 = vrot.slane %v823_v40, 1  ;;  %v616_v56 = vsel %vm614_vm3, %v2911_v41, %v3176_v7  ;;  %v3451_v33 = vmul.f32 %v3200_v16, %v3229_v25 }
  0xaf   : > { %v1506_v52 = vrot.slane %v992_v28, 7  ;;  %v1542_v39 = vrot.slane %v992_v28, 1  ;;  %v3454_v53 = vsel %vm1099_vm6, %v1241_v50, %v1242_v29  ;;  %v615_v43 = vsel %vm614_vm3, %v2910_v36, %v3174_v6 }
  0xb0   : > { %5586 = vst [vmem:[#allocation22_spill] sm:$0xff] %v3451_v33  ;;  %5587 = vst [vmem:[#allocation23_spill] sm:$0xff] %v3454_v53  ;;  %v1271_v60 = vsel %vm1099_vm6, %v823_v40, %v1241_v50  ;;  %v1279_v31 = vsel %vm1136_vm7, %v1277_v49, %v1278_v30  ;;  %v3461_v32 = vadd.f32 %v3454_v53, %v824_v51  ;;  %v1505_v47 = vrot.slane %v991_v54, 7 }
  0xb1   : > { %v3464_v41 = vsel %vm1136_vm7, %v1278_v30, %v824_v51  ;;  %v3467_v25 = vsel %vm1136_vm7, %v1542_v39, %v992_v28  ;;  %v1313_v29 = vsel %vm489_vm8, %v1279_v31, %v1271_v60  ;;  %v1541_v61 = vrot.slane %v991_v54, 1 }
  0xb2   : > { %5588 = vst [vmem:[#allocation24_spill] sm:$0xff] %v3461_v32  ;;  %5589 = vst [vmem:[#allocation25_spill] sm:$0xff] %v3464_v41  ;;  %v1325_v35 = vadd.f32 %v1313_v29, %v823_v40  ;;  %v3472_v36 = vsel %vm1099_vm6, %v1505_v47, %v1506_v52  ;;  %v1535_v0 = vsel %vm1099_vm6, %v991_v54, %v1505_v47  ;;  %v2901_v32 = vunpack.i.h.bf16 %v2899_v42 }
  0xb3   : > { %5590 = vst [vmem:[#allocation26_spill] sm:$0xff] %v3467_v25  ;;  %5591 = vst [vmem:[#allocation27_spill] sm:$0xff] %v3472_v36  ;;  %v1028_v48 = vmul.f32 %v724_v45, %v616_v56  ;;  %v1543_v50 = vsel %vm1136_vm7, %v1541_v61, %v1542_v39  ;;  %v3477_v51 = vadd.f32 %v3472_v36, %v992_v28  ;;  %v3480_v25 = vpop.permute.xlu1 %2913  ;;  %v2900_v39 = vunpack.i.l.bf16 %v2899_v42 }
  0xb4   : > { %v860_v30 = vmul.f32 %v616_v56, %v616_v56  ;;  %v2362_v49 = vsub.f32 %v3176_v7, %v616_v56  ;;  %v3482_v60 = vadd.f32 %v1325_v35, %v1279_v31  ;;  %v1577_v40 = vsel %vm489_vm8, %v1543_v50, %v1535_v0 }
  0xb5   : > { %5592 = vst [vmem:[#allocation28_spill] sm:$0xff] %v3477_v51  ;;  %v1027_v52 = vmul.f32 %v723_v46, %v615_v43  ;;  %v2361_v47 = vsub.f32 %v3174_v6, %v615_v43  ;;  %v1589_v45 = vadd.f32 %v1577_v40, %v991_v54  ;;  %v859_v61 = vmul.f32 %v615_v43, %v615_v43 }
  0xb6   : > { %v2374_v29 = vand.u32 2147483647, %v2362_v49  ;;  %v3489_v28 = vmul.f32 %v3482_v60, %v3482_v60  ;;  %v2916_v36 = vunpack.i.h.bf16 %v3480_v25  ;;  %v567_v35 = vsel %vm565_vm2, %v3176_v7, %v2901_v32 }
  0xb7   : > { %v2373_v51 = vand.u32 2147483647, %v2361_v47  ;;  %v3492_v31 = vadd.f32 %v1589_v45, %v1543_v50  ;;  %v566_v46 = vsel %vm565_vm2, %v3174_v6, %v2900_v39  ;;  %v2915_v54 = vunpack.i.l.bf16 %v3480_v25 }
  0xb8   : > { %v3500_v0 = vsel %vm2113_vm1, %v2374_v29, 0.0  ;;  %v738_v42 = vsel %vm487_vm4, %v616_v56, %v567_v35  ;;  %v764_v49 = vsel %vm488_vm5, %v567_v35, %v616_v56  ;;  %v848_v40 = vmul.f32 %v567_v35, %v567_v35 }
  0xb9   : > { %v750_v50 = vadd.f32 %v3176_v7, %v738_v42  ;;  %v1016_v47 = vmul.f32 %v3339_v10, %v567_v35  ;;  %v737_v32 = vsel %vm487_vm4, %v615_v43, %v566_v46  ;;  %v763_v25 = vsel %vm488_vm5, %v566_v46, %v615_v43 }
  0xba   : > { %v872_v45 = vsel %vm487_vm4, %v860_v30, %v848_v40  ;;  %v896_v29 = vsel %vm488_vm5, %v848_v40, %v860_v30  ;;  %v749_v39 = vadd.f32 %v3174_v6, %v737_v32  ;;  %v847_v56 = vmul.f32 %v566_v46, %v566_v46 }
  0xbb   : > { %v776_v53 = vadd.f32 %v764_v49, %v750_v50  ;;  %v884_v42 = vadd.f32 %v872_v45, %v3311_v57  ;;  %v1040_v10 = vsel %vm487_vm4, %v1028_v48, %v1016_v47  ;;  %v1064_v35 = vsel %vm488_vm5, %v1016_v47, %v1028_v48 }
  0xbc   : > { %v1052_v43 = vadd.f32 %v1040_v10, %v3315_v58  ;;  %v775_v41 = vadd.f32 %v763_v25, %v749_v39  ;;  %v871_v7 = vsel %vm487_vm4, %v859_v61, %v847_v56  ;;  %v895_v30 = vsel %vm488_vm5, %v847_v56, %v859_v61 }
  0xbd   : > { %v908_v40 = vadd.f32 %v896_v29, %v884_v42  ;;  %v1101_v32 = vrot.slane %v776_v53, 7  ;;  %v1138_v49 = vrot.slane %v776_v53, 1  ;;  %v883_v57 = vadd.f32 %v871_v7, %v3319_v59 }
  0xbe   : > { %v1076_v50 = vadd.f32 %v1064_v35, %v1052_v43  ;;  %v1015_v45 = vmul.f32 %v3343_v11, %v566_v46  ;;  %v1100_v6 = vrot.slane %v775_v41, 7  ;;  %v1137_v33 = vrot.slane %v775_v41, 1 }
  0xbf   : > { %v3530_v48 = vsel %vm2113_vm1, %v2373_v51, 0.0  ;;  %v3533_v58 = vsel %vm1136_vm7, %v1138_v49, %v776_v53  ;;  %v1410_v47 = vrot.slane %v908_v40, 1  ;;  %v907_v25 = vadd.f32 %v895_v30, %v883_v57 }
  0xc0   : > { %5593 = vst [vmem:[#allocation29_spill] sm:$0xff] %v3533_v58  ;;  %v1374_v39 = vrot.slane %v908_v40, 7  ;;  %v1674_v61 = vrot.slane %v1076_v50, 1  ;;  %v1039_v29 = vsel %vm487_vm4, %v1027_v52, %v1015_v45  ;;  %v1063_v7 = vsel %vm488_vm5, %v1015_v45, %v1027_v52 }
  0xc1   : > { %v1638_v59 = vrot.slane %v1076_v50, 7  ;;  %v1051_v11 = vadd.f32 %v1039_v29, %v3323_v62  ;;  %v3541_v46 = vsel %vm1099_vm6, %v1100_v6, %v1101_v32  ;;  %v1130_v51 = vsel %vm1099_vm6, %v775_v41, %v1100_v6 }
  0xc2   : > { %5594 = vst [vmem:[#allocation30_spill] sm:$0xff] %v3541_v46  ;;  %v3545_v56 = vsel %vm1136_vm7, %v1410_v47, %v908_v40  ;;  %v1139_v42 = vsel %vm1136_vm7, %v1137_v33, %v1138_v49  ;;  %v3549_v10 = vadd.f32 %v3541_v46, %v776_v53  ;;  %v1373_v35 = vrot.slane %v907_v25, 7  ;;  %v4074_v46 = vld [vmem:[%s3145_s24 + $0x38] sm:$0xff] }
  0xc3   : > { %5595 = vst [vmem:[#allocation31_spill] sm:$0xff] %v3545_v56  ;;  %v1075_v43 = vadd.f32 %v1063_v7, %v1051_v11  ;;  %v1177_v52 = vsel %vm489_vm8, %v1139_v42, %v1130_v51  ;;  %v1409_v30 = vrot.slane %v907_v25, 1  ;;  %v3555_v62 = vsel %vm614_vm3, %v2916_v36, %v3184_v9 }
  0xc4   : > { %5596 = vst [vmem:[#allocation32_spill] sm:$0xff] %v3549_v10  ;;  %v3558_v6 = vsel %vm1136_vm7, %v1674_v61, %v1076_v50  ;;  %v1189_v32 = vadd.f32 %v1177_v52, %v775_v41  ;;  %v3561_v57 = vsel %vm1099_vm6, %v1373_v35, %v1374_v39  ;;  %v1403_v33 = vsel %vm1099_vm6, %v907_v25, %v1373_v35  ;;  %v2904_v35 = vpop.permute.xlu0 %2903 }
  0xc5   : > { %5597 = vst [vmem:[#allocation33_spill] sm:$0xff] %v3558_v6  ;;  %5598 = vst [vmem:[#allocation34_spill] sm:$0xff] %v3561_v57  ;;  %v1411_v53 = vsel %vm1136_vm7, %v1409_v30, %v1410_v47  ;;  %v3566_v49 = vadd.f32 %v3561_v57, %v908_v40  ;;  %v1637_v45 = vrot.slane %v1075_v43, 7  ;;  %v1673_v29 = vrot.slane %v1075_v43, 1 }
  0xc6   : > { %v1217_v7 = vadd.f32 %v1189_v32, %v1139_v42  ;;  %v1445_v36 = vsel %vm489_vm8, %v1411_v53, %v1403_v33  ;;  %v2364_v11 = vsub.f32 %v3184_v9, %v3555_v62  ;;  %v3574_v41 = vsel %vm614_vm3, %v2915_v54, %v3182_v8 }
  0xc7   : > { %5599 = vst [vmem:[#allocation35_spill] sm:$0xff] %v3566_v49  ;;  %v1457_v39 = vadd.f32 %v1445_v36, %v907_v25  ;;  %v3577_v51 = vsel %vm1099_vm6, %v1637_v45, %v1638_v59  ;;  %v1667_v40 = vsel %vm1099_vm6, %v1075_v43, %v1637_v45  ;;  %v1675_v47 = vsel %vm1136_vm7, %v1673_v29, %v1674_v61 }
  0xc8   : > { %5600 = vst [vmem:[#allocation36_spill] sm:$0xff] %v3577_v51  ;;  %v1709_v42 = vsel %vm489_vm8, %v1675_v47, %v1667_v40  ;;  %v3584_v52 = vadd.f32 %v3577_v51, %v1076_v50  ;;  %v1757_v30 = vmul.f32 %v3482_v60, %v1217_v7  ;;  %v1769_v32 = vmul.f32 %v1217_v7, %v1217_v7 }
  0xc9   : > { %v1481_v54 = vadd.f32 %v1457_v39, %v1411_v53  ;;  %v1721_v33 = vadd.f32 %v1709_v42, %v1075_v43  ;;  %v862_v25 = vmul.f32 %v3555_v62, %v3555_v62  ;;  %v2376_v59 = vand.u32 2147483647, %v2364_v11 }
  0xca   : > { %5601 = vst [vmem:[#allocation37_spill] sm:$0xff] %v3584_v52  ;;  %v1793_v36 = vmul.f32 2.0, %v1757_v30  ;;  %v1853_v45 = vadd.f32 %v3489_v28, %v1769_v32  ;;  %v2363_v61 = vsub.f32 %v3182_v8, %v3574_v41  ;;  %v2906_v29 = vunpack.i.h.bf16 %v2904_v35 }
  0xcb   : > { %v1745_v40 = vadd.f32 %v1721_v33, %v1675_v47  ;;  %v1877_v50 = vadd.f32 %v3492_v31, %v1481_v54  ;;  %v2391_v52 = vsel %vm2113_vm1, %v2376_v59, 0.0  ;;  %v2905_v60 = vunpack.i.l.bf16 %v2904_v35 }
  0xcc   : > { %v3594_v7 = vadd.f32 0.0081, %v1793_v36  ;;  %v1865_v43 = vadd.f32 0.0081, %v1853_v45  ;;  %v861_v53 = vmul.f32 %v3574_v41, %v3574_v41  ;;  %v2375_v11 = vand.u32 2147483647, %v2363_v61 }
  0xcd   : > { %v1817_v39 = vmul.f32 18.0, %v1745_v40  ;;  %v1889_v42 = vmul.f32 9.0, %v1877_v50  ;;  %v569_v30 = vsel %vm565_vm2, %v3184_v9, %v2906_v29  ;;  %v568_v47 = vsel %vm565_vm2, %v3182_v8, %v2905_v60 }
  0xce   : > { %5602 = vst [vmem:[#allocation38_spill] sm:$0xff] %v3594_v7  ;;  %v2386_v31 = vsel %vm2113_vm1, %v2375_v11, 0.0  ;;  %v740_v35 = vsel %vm487_vm4, %v3555_v62, %v569_v30  ;;  %v766_v54 = vsel %vm488_vm5, %v569_v30, %v3555_v62  ;;  %v850_v33 = vmul.f32 %v569_v30, %v569_v30 }
  0xcf   : > { %v1829_v59 = vsub.f32 %v1817_v39, %v1793_v36  ;;  %v1901_v45 = vsub.f32 %v1889_v42, %v1769_v32  ;;  %v3610_v61 = vadd.f32 %v2391_v52, %v3500_v0  ;;  %v752_v29 = vadd.f32 %v3184_v9, %v740_v35  ;;  %v694_v39 = vpop.permute.xlu1 %693 }
  0xd0   : > { %v874_v40 = vsel %vm487_vm4, %v862_v25, %v850_v33  ;;  %v898_v50 = vsel %vm488_vm5, %v850_v33, %v862_v25  ;;  %v1018_v60 = vmul.f32 %v3355_v18, %v569_v30  ;;  %v739_v11 = vsel %vm487_vm4, %v3574_v41, %v568_v47 }
  0xd1   : > { %v1913_v36 = vsub.f32 %v1901_v45, %v3489_v28  ;;  %v3623_v32 = vadd.f32 %v2386_v31, %v3530_v48  ;;  %v778_v0 = vadd.f32 %v766_v54, %v752_v29  ;;  %v886_v52 = vadd.f32 %v874_v40, %v3331_v4 }
  0xd2   : > { %v751_v42 = vadd.f32 %v3182_v8, %v739_v11  ;;  %v765_v25 = vsel %vm488_vm5, %v568_v47, %v3574_v41  ;;  %v849_v30 = vmul.f32 %v568_v47, %v568_v47  ;;  %v3631_v35 = vmul.f32 %v3405_v44, %v568_v47 }
  0xd3   : > { %v1925_v33 = vadd.f32 0.0729, %v1913_v36  ;;  %v910_v7 = vadd.f32 %v898_v50, %v886_v52  ;;  %v1104_v28 = vrot.slane %v778_v0, 7  ;;  %v1141_v45 = vrot.slane %v778_v0, 1 }
  0xd4   : > { %v777_v48 = vadd.f32 %v765_v25, %v751_v42  ;;  %v873_v31 = vsel %vm487_vm4, %v861_v53, %v849_v30  ;;  %v897_v4 = vsel %vm488_vm5, %v849_v30, %v861_v53  ;;  %v726_v54 = vsel %vm614_vm3, %v694_v39, %v3158_v2 }
  0xd5   : > { %v3639_v29 = vadd.f32 0.0729, %v1829_v59  ;;  %v1949_v40 = vmul.f32 %v1925_v33, %v1865_v43  ;;  %v3642_v47 = vsel %vm1136_vm7, %v1141_v45, %v778_v0  ;;  %v1377_v11 = vrot.slane %v910_v7, 7 }
  0xd6   : > { %5604 = vst [vmem:[#allocation40_spill] sm:$0xff] %v3642_v47  ;;  %v885_v50 = vadd.f32 %v873_v31, %v3327_v63  ;;  %v1103_v36 = vrot.slane %v777_v48, 7  ;;  %v1140_v52 = vrot.slane %v777_v48, 1  ;;  %v790_v42 = vsel %vm487_vm4, %v726_v54, %v3355_v18 }
  0xd7   : > { %5603 = vst [vmem:[#allocation39_spill] sm:$0xff] %v3639_v29  ;;  %2957 = vrcp.f32 %v1949_v40  ;;  %v1413_v53 = vrot.slane %v910_v7, 1  ;;  %v802_v25 = vadd.f32 %v790_v42, %v3158_v2  ;;  %v814_v43 = vsel %vm488_vm5, %v3355_v18, %v726_v54 }
  0xd8   : > { %v909_v59 = vadd.f32 %v897_v4, %v885_v50  ;;  %v3653_v39 = vsel %vm1099_vm6, %v1103_v36, %v1104_v28  ;;  %v1131_v63 = vsel %vm1099_vm6, %v777_v48, %v1103_v36  ;;  %v1142_v30 = vsel %vm1136_vm7, %v1140_v52, %v1141_v45  ;;  %v692_v52 = vpop.permute.xlu0 %691 }
  0xd9   : > { %5605 = vst [vmem:[#allocation41_spill] sm:$0xff] %v3653_v39  ;;  %v1179_v33 = vsel %vm489_vm8, %v1142_v30, %v1131_v63  ;;  %v3660_v31 = vadd.f32 %v3653_v39, %v778_v0  ;;  %v3662_v40 = vadd.f32 %v814_v43, %v802_v25  ;;  %v946_v2 = vmul.f32 %v726_v54, %v726_v54  ;;  %v2924_v25 = vpop.permute.xlu1 %2923 }
  0xda   : > { %v1191_v42 = vadd.f32 %v1179_v33, %v777_v48  ;;  %v1376_v29 = vrot.slane %v909_v59, 7  ;;  %v1412_v18 = vrot.slane %v909_v59, 1  ;;  %v1030_v4 = vmul.f32 %v726_v54, %v3555_v62 }
  0xdb   : > { %5606 = vst [vmem:[#allocation42_spill] sm:$0xff] %v3660_v31  ;;  %v3666_v28 = vsel %vm1136_vm7, %v1413_v53, %v910_v7  ;;  %v958_v45 = vsel %vm487_vm4, %v946_v2, %v3401_v38  ;;  %v982_v0 = vsel %vm488_vm5, %v3401_v38, %v946_v2  ;;  %v1281_v50 = vrot.slane %v3662_v40, 1 }
  0xdc   : > { %5607 = vst [vmem:[#allocation43_spill] sm:$0xff] %v3666_v28  ;;  %v3676_v36 = vsel %vm1099_vm6, %v1376_v29, %v1377_v11  ;;  %v1404_v48 = vsel %vm1099_vm6, %v909_v59, %v1376_v29  ;;  %v1414_v62 = vsel %vm1136_vm7, %v1412_v18, %v1413_v53  ;;  %v970_v54 = vadd.f32 %v958_v45, %v3335_v5 }
  0xdd   : > { %5608 = vst [vmem:[#allocation44_spill] sm:$0xff] %v3676_v36  ;;  %v1447_v43 = vsel %vm489_vm8, %v1414_v62, %v1404_v48  ;;  %v3684_v63 = vadd.f32 %v3676_v36, %v910_v7  ;;  %v1042_v38 = vsel %vm487_vm4, %v1030_v4, %v1018_v60  ;;  %v1066_v11 = vsel %vm488_vm5, %v1018_v60, %v1030_v4 }
  0xde   : > { %v1459_v33 = vadd.f32 %v1447_v43, %v909_v59  ;;  %v994_v29 = vadd.f32 %v982_v0, %v970_v54  ;;  %v1054_v53 = vadd.f32 %v1042_v38, %v3347_v12  ;;  %v1245_v5 = vrot.slane %v3662_v40, 7 }
  0xdf   : > { %5609 = vst [vmem:[#allocation45_spill] sm:$0xff] %v3684_v63  ;;  %v3694_v2 = vsel %vm1136_vm7, %v1281_v50, %v3662_v40  ;;  %v725_v7 = vsel %vm614_vm3, %v692_v52, %v3161_v3  ;;  %v1219_v18 = vadd.f32 %v1191_v42, %v1142_v30  ;;  %v2926_v45 = vunpack.i.h.bf16 %v2924_v25 }
  0xe0   : > { %5610 = vst [vmem:[#allocation46_spill] sm:$0xff] %v3694_v2  ;;  %v1078_v48 = vadd.f32 %v1066_v11, %v1054_v53  ;;  %v1545_v51 = vrot.slane %v994_v29, 1  ;;  %v789_v60 = vsel %vm487_vm4, %v725_v7, %v3405_v44  ;;  %v2925_v59 = vunpack.i.l.bf16 %v2924_v25 }
  0xe1   : > { %v801_v12 = vadd.f32 %v789_v60, %v3161_v3  ;;  %v813_v4 = vsel %vm488_vm5, %v3405_v44, %v725_v7  ;;  %v945_v0 = vmul.f32 %v725_v7, %v725_v7  ;;  %v1029_v54 = vmul.f32 %v725_v7, %v3574_v41 }
  0xe2   : > { %v1509_v43 = vrot.slane %v994_v29, 7  ;;  %v3707_v30 = vsel %vm1136_vm7, %v1545_v51, %v994_v29  ;;  %v1677_v42 = vrot.slane %v1078_v48, 1  ;;  %v1483_v52 = vadd.f32 %v1459_v33, %v1414_v62 }
  0xe3   : > { %5611 = vst [vmem:[#allocation47_spill] sm:$0xff] %v3707_v30  ;;  %v825_v38 = vadd.f32 %v813_v4, %v801_v12  ;;  %v957_v25 = vsel %vm487_vm4, %v945_v0, %v3429_v34  ;;  %v981_v3 = vsel %vm488_vm5, %v3429_v34, %v945_v0  ;;  %v1041_v44 = vsel %vm487_vm4, %v1029_v54, %v3631_v35 }
  0xe4   : > { %v3718_v41 = vpop.eup %2957  ;;  %v1641_v11 = vrot.slane %v1078_v48, 7  ;;  %v969_v53 = vadd.f32 %v957_v25, %v3351_v13  ;;  %v1053_v62 = vadd.f32 %v1041_v44, %v3359_v19  ;;  %v1065_v33 = vsel %vm488_vm5, %v3631_v35, %v1029_v54  ;;  %v2919_v19 = vpop.permute.xlu0 %2918 }
  0xe5   : > { %5612 = vst [vmem:[#allocation48_spill] sm:$0xff] %v3718_v41  ;;  %v3726_v7 = vsel %vm1136_vm7, %v1677_v42, %v1078_v48  ;;  %v1244_v60 = vrot.slane %v825_v38, 7  ;;  %v1280_v34 = vrot.slane %v825_v38, 1  ;;  %v3730_v12 = vsel %vm565_vm2, %v3198_v15, %v2926_v45 }
  0xe6   : > { %5613 = vst [vmem:[#allocation49_spill] sm:$0xff] %v3726_v7  ;;  %v993_v4 = vadd.f32 %v981_v3, %v969_v53  ;;  %v1077_v0 = vadd.f32 %v1065_v33, %v1053_v62  ;;  %v3732_v41 = vmul.f32 %v1219_v18, %v1219_v18  ;;  %v3736_v13 = vmul.f32 %v3730_v12, %v3730_v12 }
  0xe7   : > { %v3739_v35 = vsel %vm1099_vm6, %v1244_v60, %v1245_v5  ;;  %v1272_v54 = vsel %vm1099_vm6, %v825_v38, %v1244_v60  ;;  %v1282_v25 = vsel %vm1136_vm7, %v1280_v34, %v1281_v50  ;;  %v3745_v45 = vsel %vm565_vm2, %v3196_v14, %v2925_v59 }
  0xe8   : > { %5614 = vst [vmem:[#allocation50_spill] sm:$0xff] %v3739_v35  ;;  %v1315_v3 = vsel %vm489_vm8, %v1282_v25, %v1272_v54  ;;  %v3751_v44 = vadd.f32 %v3739_v35, %v3662_v40  ;;  %v1508_v53 = vrot.slane %v993_v4, 7  ;;  %v1544_v62 = vrot.slane %v993_v4, 1 }
  0xe9   : > { %v1327_v33 = vadd.f32 %v1315_v3, %v825_v38  ;;  %v1640_v5 = vrot.slane %v1077_v0, 7  ;;  %v1676_v7 = vrot.slane %v1077_v0, 1  ;;  %v2921_v6 = vunpack.i.h.bf16 %v2919_v19 }
  0xea   : > { %5615 = vst [vmem:[#allocation51_spill] sm:$0xff] %v3751_v44  ;;  %v3754_v60 = vsel %vm1099_vm6, %v1508_v53, %v1509_v43  ;;  %v1536_v50 = vsel %vm1099_vm6, %v993_v4, %v1508_v53  ;;  %v1546_v59 = vsel %vm1136_vm7, %v1544_v62, %v1545_v51  ;;  %v2920_v34 = vunpack.i.l.bf16 %v2919_v19  ;;  %v2934_v51 = vpop.permute.xlu1 %2933 }
  0xeb   : > { %5616 = vst [vmem:[#allocation52_spill] sm:$0xff] %v3754_v60  ;;  %v1351_v30 = vadd.f32 %v1327_v33, %v1282_v25  ;;  %v1579_v54 = vsel %vm489_vm8, %v1546_v59, %v1536_v50  ;;  %v3761_v40 = vadd.f32 %v3754_v60, %v994_v29  ;;  %v3764_v38 = vsel %vm1099_vm6, %v1640_v5, %v1641_v11 }
  0xec   : > { %5618 = vst [vmem:[#allocation54_spill] sm:$0xff] %v3764_v38  ;;  %v1591_v3 = vadd.f32 %v1579_v54, %v993_v4  ;;  %v1668_v63 = vsel %vm1099_vm6, %v1077_v0, %v1640_v5  ;;  %v1678_v43 = vsel %vm1136_vm7, %v1676_v7, %v1677_v42  ;;  %v3769_v53 = vadd.f32 %v3764_v38, %v1078_v48  ;;  %v3785_v42 = vpop.permute.xlu0 %2928 }
  0xed   : > { %5617 = vst [vmem:[#allocation53_spill] sm:$0xff] %v3761_v40  ;;  %v1711_v19 = vsel %vm489_vm8, %v1678_v43, %v1668_v63  ;;  %v1759_v25 = vmul.f32 %v1351_v30, %v1219_v18  ;;  %v1783_v62 = vmul.f32 %v1351_v30, %v1351_v30  ;;  %v3775_v29 = vsel %vm565_vm2, %v3202_v17, %v2921_v6 }
  0xee   : > { %5619 = vst [vmem:[#allocation55_spill] sm:$0xff] %v3769_v53  ;;  %v1615_v11 = vadd.f32 %v1591_v3, %v1546_v59  ;;  %v1723_v33 = vadd.f32 %v1711_v19, %v1077_v0  ;;  %v3779_v4 = vmul.f32 %v3745_v45, %v3745_v45  ;;  %v3783_v48 = vsel %vm565_vm2, %v3200_v16, %v2920_v34  ;;  %v2944_v56 = vpop.permute.xlu1 %2943 }
  0xef   : > { %v1795_v7 = vmul.f32 2.0, %v1759_v25  ;;  %v1855_v63 = vadd.f32 %v1783_v62, %v3732_v41  ;;  %v852_v18 = vmul.f32 %v3775_v29, %v3775_v29  ;;  %v2936_v6 = vunpack.i.h.bf16 %v2934_v51 }
  0xf0   : > { %v1747_v30 = vadd.f32 %v1723_v33, %v1678_v43  ;;  %v1879_v5 = vadd.f32 %v1615_v11, %v1483_v52  ;;  %v851_v0 = vmul.f32 %v3783_v48, %v3783_v48  ;;  %v2935_v50 = vunpack.i.l.bf16 %v2934_v51 }
  0xf1   : > { %v1807_v59 = vadd.f32 0.0081, %v1795_v7  ;;  %v1867_v54 = vadd.f32 0.0081, %v1855_v63  ;;  %v3794_v34 = vsel %vm614_vm3, %v2936_v6, %v3202_v17  ;;  %v2931_v3 = vunpack.i.h.bf16 %v3785_v42 }
  0xf2   : > { %v1819_v19 = vmul.f32 18.0, %v1747_v30  ;;  %v1891_v25 = vmul.f32 9.0, %v1879_v5  ;;  %v864_v53 = vmul.f32 %v3794_v34, %v3794_v34  ;;  %v2366_v52 = vsub.f32 %v3202_v17, %v3794_v34 }
  0xf3   : > { %v3803_v43 = vsel %vm614_vm3, %v2935_v50, %v3200_v16  ;;  %v742_v51 = vsel %vm487_vm4, %v3794_v34, %v3775_v29  ;;  %v768_v11 = vsel %vm488_vm5, %v3775_v29, %v3794_v34  ;;  %v2930_v33 = vunpack.i.l.bf16 %v3785_v42 }
  0xf4   : > { %v1831_v63 = vsub.f32 %v1819_v19, %v1795_v7  ;;  %v1903_v6 = vsub.f32 %v1891_v25, %v3732_v41  ;;  %v2378_v30 = vand.u32 2147483647, %v2366_v52  ;;  %v741_v5 = vsel %vm487_vm4, %v3803_v43, %v3783_v48 }
  0xf5   : > { %v753_v50 = vadd.f32 %v3200_v16, %v741_v5  ;;  %v754_v38 = vadd.f32 %v3202_v17, %v742_v51  ;;  %v767_v40 = vsel %vm488_vm5, %v3783_v48, %v3803_v43  ;;  %v863_v42 = vmul.f32 %v3803_v43, %v3803_v43 }
  0xf6   : > { %v1843_v7 = vadd.f32 0.0729, %v1831_v63  ;;  %v1915_v41 = vsub.f32 %v1903_v6, %v1783_v62  ;;  %v2393_v19 = vsel %vm2113_vm1, %v2378_v30, 0.0  ;;  %v876_v25 = vsel %vm487_vm4, %v864_v53, %v852_v18 }
  0xf7   : > { %v779_v52 = vadd.f32 %v767_v40, %v753_v50  ;;  %v780_v60 = vadd.f32 %v768_v11, %v754_v38  ;;  %v875_v51 = vsel %vm487_vm4, %v863_v42, %v851_v0  ;;  %v888_v5 = vadd.f32 %v876_v25, %v3367_v23 }
  0xf8   : > { %v1927_v49 = vadd.f32 0.0729, %v1915_v41  ;;  %v3833_v36 = vmul.f32 %v1843_v7, %v1807_v59  ;;  %v887_v28 = vadd.f32 %v875_v51, %v3363_v20  ;;  %v899_v62 = vsel %vm488_vm5, %v851_v0, %v863_v42 }
  0xf9   : > { %v900_v63 = vsel %vm488_vm5, %v852_v18, %v864_v53  ;;  %v1106_v6 = vrot.slane %v779_v52, 7  ;;  %v1107_v30 = vrot.slane %v780_v60, 7  ;;  %v1143_v40 = vrot.slane %v779_v52, 1 }
  0xfa   : > { %5620 = vst [vmem:[#allocation56_spill] sm:$0xff] %v3833_v36  ;;  %v1951_v38 = vmul.f32 %v1927_v49, %v1867_v54  ;;  %v911_v11 = vadd.f32 %v899_v62, %v887_v28  ;;  %v912_v50 = vadd.f32 %v900_v63, %v888_v5  ;;  %v1144_v57 = vrot.slane %v780_v60, 1  ;;  %v3871_v63 = vpop.permute.xlu0 %2938 }
  0xfb   : > { %v3841_v23 = vsel %vm1099_vm6, %v1106_v6, %v1107_v30  ;;  %v1132_v59 = vsel %vm1099_vm6, %v779_v52, %v1106_v6  ;;  %v2365_v20 = vsub.f32 %v3200_v16, %v3803_v43  ;;  %v2394_v0 = vadd.f32 %v2393_v19, %v3610_v61 }
  0xfc   : > { %5621 = vst [vmem:[#allocation57_spill] sm:$0xff] %v3841_v23  ;;  %2959 = vrcp.f32 %v1951_v38  ;;  %v3848_v53 = vsel %vm1136_vm7, %v1143_v40, %v1144_v57  ;;  %v3851_v49 = vadd.f32 %v3841_v23, %v780_v60  ;;  %v3855_v28 = vsel %vm565_vm2, %v3215_v22, %v2931_v3  ;;  %v5641_v23 = vld [vmem:[#allocation18_spill] sm:$0xff] }
  0xfd   : > { %v1181_v18 = vsel %vm489_vm8, %v3848_v53, %v1132_v59  ;;  %v1379_v54 = vrot.slane %v911_v11, 7  ;;  %v1380_v42 = vrot.slane %v912_v50, 7  ;;  %v1415_v7 = vrot.slane %v911_v11, 1 }
  0xfe   : > { %5622 = vst [vmem:[#allocation58_spill] sm:$0xff] %v3851_v49  ;;  %v3860_v41 = vadd.f32 %v1181_v18, %v779_v52  ;;  %v1416_v61 = vrot.slane %v912_v50, 1  ;;  %v2377_v19 = vand.u32 2147483647, %v2365_v20  ;;  %v2406_v25 = vmul.f32 0.33333334, %v2394_v0 }
  0xff   : > { %v3863_v51 = vsel %vm1136_vm7, %v1144_v57, %v780_v60  ;;  %v3866_v5 = vsel %vm1099_vm6, %v1379_v54, %v1380_v42  ;;  %v1405_v3 = vsel %vm1099_vm6, %v911_v11, %v1379_v54  ;;  %v856_v62 = vmul.f32 %v3855_v28, %v3855_v28  ;;  %v650_v60 = vpop.permute.xlu1 %649 }
 0x100   : > { %5623 = vst [vmem:[#allocation59_spill] sm:$0xff] %v3863_v51  ;;  %5624 = vst [vmem:[#allocation60_spill] sm:$0xff] %v3866_v5  ;;  %v3874_v6 = vsel %vm1136_vm7, %v1415_v7, %v1416_v61  ;;  %v3877_v52 = vadd.f32 %v3866_v5, %v912_v50  ;;  %v2388_v30 = vsel %vm2113_vm1, %v2377_v19, 0.0  ;;  %v3882_v57 = vsel %vm565_vm2, %v3213_v21, %v2930_v33 }
 0x101   : > { %v3885_v40 = vsel %vm1136_vm7, %v1416_v61, %v912_v50  ;;  %v1449_v38 = vsel %vm489_vm8, %v3874_v6, %v1405_v3  ;;  %v2389_v59 = vadd.f32 %v2388_v30, %v3623_v32  ;;  %v2494_v20 = vsub.f32 0.0, %v2406_v25 }
 0x102   : > { %5625 = vst [vmem:[#allocation61_spill] sm:$0xff] %v3877_v52  ;;  %5626 = vst [vmem:[#allocation62_spill] sm:$0xff] %v3885_v40  ;;  %v3891_v0 = vadd.f32 %v1449_v38, %v911_v11  ;;  %v2946_v18 = vunpack.i.h.bf16 %v2944_v56  ;;  %v2945_v54 = vunpack.i.l.bf16 %v2944_v56  ;;  %v2941_v42 = vunpack.i.h.bf16 %v3871_v63 }
 0x103   : > { %v2405_v7 = vmul.f32 0.33333334, %v2389_v59  ;;  %v2499_v33 = vmul.f32 1.442695, %v2494_v20  ;;  %v855_v19 = vmul.f32 %v3882_v57, %v3882_v57  ;;  %v3898_v50 = vsel %vm565_vm2, %v3226_v24, %v650_v60 }
 0x104   : > { %v3902_v61 = vsel %vm614_vm3, %v2946_v18, %v3215_v22  ;;  %v3906_v32 = vsel %vm614_vm3, %v2945_v54, %v3213_v21  ;;  %v3910_v56 = vsel %vm614_vm3, %v2941_v42, %v3198_v15  ;;  %v3919_v30 = vmul.f32 %v3898_v50, %v3898_v50 }
 0x105   : > { %v2493_v25 = vsub.f32 0.0, %v2405_v7  ;;  %v868_v3 = vmul.f32 %v3902_v61, %v3902_v61  ;;  %v2370_v24 = vsub.f32 %v3215_v22, %v3902_v61  ;;  %2961 = vpow2.f32 %v2499_v33 }
 0x106   : > { %v745_v60 = vsel %vm487_vm4, %v3906_v32, %v3882_v57  ;;  %v746_v38 = vsel %vm487_vm4, %v3902_v61, %v3855_v28  ;;  %v771_v59 = vsel %vm488_vm5, %v3882_v57, %v3906_v32  ;;  %v772_v7 = vsel %vm488_vm5, %v3855_v28, %v3902_v61 }
 0x107   : > { %v2497_v20 = vmul.f32 1.442695, %v2493_v25  ;;  %v2382_v18 = vand.u32 2147483647, %v2370_v24  ;;  %v757_v54 = vadd.f32 %v3213_v21, %v745_v60  ;;  %v758_v42 = vadd.f32 %v3215_v22, %v746_v38 }
 0x108   : > { %v867_v33 = vmul.f32 %v3906_v32, %v3906_v32  ;;  %v880_v11 = vsel %vm487_vm4, %v868_v3, %v856_v62  ;;  %v2369_v36 = vsub.f32 %v3213_v21, %v3906_v32  ;;  %v904_v38 = vsel %vm488_vm5, %v856_v62, %v868_v3 }
 0x109   : > { %v3945_v25 = vpop.eup %2959  ;;  %2963 = vpow2.f32 %v2497_v20  ;;  %v783_v24 = vadd.f32 %v771_v59, %v757_v54  ;;  %v784_v60 = vadd.f32 %v772_v7, %v758_v42  ;;  %v2401_v52 = vsel %vm2113_vm1, %v2382_v18, 0.0 }
 0x10a   : > { %5627 = vst [vmem:[#allocation63_spill] sm:$0xff] %v3945_v25  ;;  %v879_v5 = vsel %vm487_vm4, %v867_v33, %v855_v19  ;;  %v892_v40 = vadd.f32 %v880_v11, %v3375_v27  ;;  %v2381_v44 = vand.u32 2147483647, %v2369_v36  ;;  %v903_v59 = vsel %vm488_vm5, %v855_v19, %v867_v33  ;;  %v648_v11 = vpop.permute.xlu0 %647 }
 0x10b   : > { %v891_v35 = vadd.f32 %v879_v5, %v3371_v26  ;;  %v1112_v2 = vrot.slane %v783_v24, 7  ;;  %v1113_v49 = vrot.slane %v784_v60, 7  ;;  %v1149_v31 = vrot.slane %v783_v24, 1 }
 0x10c   : > { %v916_v20 = vadd.f32 %v904_v38, %v892_v40  ;;  %v1150_v54 = vrot.slane %v784_v60, 1  ;;  %v744_v62 = vsel %vm487_vm4, %v3910_v56, %v3730_v12  ;;  %v3965_v26 = vsel %vm2113_vm1, %v2381_v44, 0.0 }
 0x10d   : > { %v915_v3 = vadd.f32 %v903_v59, %v891_v35  ;;  %v3961_v18 = vsel %vm1099_vm6, %v1112_v2, %v1113_v49  ;;  %v1134_v27 = vsel %vm1099_vm6, %v783_v24, %v1112_v2  ;;  %v756_v19 = vadd.f32 %v3198_v15, %v744_v62 }
 0x10e   : > { %5628 = vst [vmem:[#allocation64_spill] sm:$0xff] %v3961_v18  ;;  %v3968_v36 = vsel %vm1136_vm7, %v1149_v31, %v1150_v54  ;;  %v3971_v5 = vsel %vm1136_vm7, %v1150_v54, %v784_v60  ;;  %v1386_v40 = vrot.slane %v916_v20, 7  ;;  %v1422_v2 = vrot.slane %v916_v20, 1 }
 0x10f   : > { %5629 = vst [vmem:[#allocation65_spill] sm:$0xff] %v3971_v5  ;;  %v1185_v35 = vsel %vm489_vm8, %v3968_v36, %v1134_v27  ;;  %v1385_v49 = vrot.slane %v915_v3, 7  ;;  %v1421_v42 = vrot.slane %v915_v3, 1  ;;  %v3978_v44 = vadd.f32 %v3961_v18, %v784_v60 }
 0x110   : > { %v770_v31 = vsel %vm488_vm5, %v3730_v12, %v3910_v56  ;;  %v866_v7 = vmul.f32 %v3910_v56, %v3910_v56  ;;  %v2368_v33 = vsub.f32 %v3198_v15, %v3910_v56  ;;  %v3988_v38 = vadd.f32 %v1185_v35, %v783_v24  ;;  %v654_v35 = vpop.permute.xlu1 %653 }
 0x111   : > { %5630 = vst [vmem:[#allocation66_spill] sm:$0xff] %v3978_v44  ;;  %v3991_v59 = vsel %vm1099_vm6, %v1385_v49, %v1386_v40  ;;  %v1407_v54 = vsel %vm1099_vm6, %v915_v3, %v1385_v49  ;;  %v3995_v60 = vsel %vm1136_vm7, %v1421_v42, %v1422_v2  ;;  %v3998_v62 = vsel %vm1136_vm7, %v1422_v2, %v916_v20  ;;  %v5635_v42 = vld [vmem:[#allocation19_spill] sm:$0xff] }
 0x112   : > { %5631 = vst [vmem:[#allocation67_spill] sm:$0xff] %v3991_v59  ;;  %5632 = vst [vmem:[#allocation68_spill] sm:$0xff] %v3998_v62  ;;  %v1453_v27 = vsel %vm489_vm8, %v3995_v60, %v1407_v54  ;;  %v782_v25 = vadd.f32 %v770_v31, %v756_v19  ;;  %v878_v24 = vsel %vm487_vm4, %v866_v7, %v3736_v13  ;;  %v4006_v40 = vpop.eup %2961  ;;  %v2380_v62 = vand.u32 2147483647, %v2368_v33 }
 0x113   : > { %5633 = vst [vmem:[#allocation69_spill] sm:$0xff] %v4006_v40  ;;  %v4009_v49 = vadd.f32 %v3991_v59, %v916_v20  ;;  %v890_v44 = vadd.f32 %v878_v24, %v5635_v42  ;;  %v902_v2 = vsel %vm488_vm5, %v3736_v13, %v866_v7  ;;  %v4015_v10 = vadd.f32 %v1453_v27, %v915_v3  ;;  %v652_v24 = vpop.permute.xlu0 %651 }
 0x114   : > { %v1147_v19 = vrot.slane %v782_v25, 1  ;;  %v5636_v31 = vunpack.i.l.bf16 %v3871_v63  ;;  %v4025_v20 = vmul.f32 %v3898_v50, %v3775_v29  ;;  %v1110_v7 = vrot.slane %v782_v25, 7 }
 0x115   : > { %5634 = vst [vmem:[#allocation70_spill] sm:$0xff] %v4009_v49  ;;  %v914_v42 = vadd.f32 %v902_v2, %v890_v44  ;;  %v2400_v49 = vsel %vm2113_vm1, %v2380_v62, 0.0  ;;  %v4177_v17 = vadd.f32 %v3860_v41, %v3848_v53 }
 0x116   : > { %v4021_v54 = vsel %vm614_vm3, %v5636_v31, %v3196_v14  ;;  %v4036_v3 = vpop.eup %2963  ;;  %v4039_v29 = vsel %vm1136_vm7, %v1147_v19, %v782_v25  ;;  %v4044_v27 = vadd.f32 %v2401_v52, %v2400_v49  ;;  %v4049_v31 = vld [vmem:[%s3145_s24 + $0x20] sm:$0xff]  ;;  %v658_v49 = vpop.permute.xlu1 %657 }
 0x117   : > { %v743_v13 = vsel %vm487_vm4, %v4021_v54, %v3745_v45  ;;  %v769_v63 = vsel %vm488_vm5, %v3745_v45, %v4021_v54  ;;  %5637 = vst [vmem:[#allocation19_spill] sm:$0xff] %v4036_v3  ;;  %5638 = vst [vmem:[#allocation71_spill] sm:$0xff] %v4039_v29  ;;  %v865_v33 = vmul.f32 %v4021_v54, %v4021_v54  ;;  %v1419_v62 = vrot.slane %v914_v42, 1 }
 0x118   : > { %v755_v44 = vadd.f32 %v3196_v14, %v743_v13  ;;  %5639 = vst [vmem:[#allocation72_spill] sm:$0xff] %v4044_v27  ;;  %v2367_v2 = vsub.f32 %v3196_v14, %v4021_v54  ;;  %v4053_v59 = vsel %vm565_vm2, %v4049_v31, %v648_v11  ;;  %v1383_v18 = vrot.slane %v914_v42, 7 }
 0x119   : > { %v877_v13 = vsel %vm487_vm4, %v865_v33, %v3779_v4  ;;  %v901_v52 = vsel %vm488_vm5, %v3779_v4, %v865_v33  ;;  %v4062_v29 = vsel %vm1136_vm7, %v1419_v62, %v914_v42  ;;  %v4067_v11 = vmul.f32 %v4053_v59, %v4053_v59  ;;  %v656_v33 = vpop.permute.xlu0 %655 }
 0x11a   : > { %v781_v5 = vadd.f32 %v769_v63, %v755_v44  ;;  %5640 = vst [vmem:[#allocation73_spill] sm:$0xff] %v4062_v29  ;;  %v889_v51 = vadd.f32 %v877_v13, %v5641_v23  ;;  %v2379_v39 = vand.u32 2147483647, %v2367_v2  ;;  %v4071_v47 = vmul.f32 %v4053_v59, %v3783_v48  ;;  %v4086_v13 = vld [vmem:[%s3145_s24 + $0x30] sm:$0xff] }
 0x11b   : > { %v4078_v4 = vsel %vm565_vm2, %v4074_v46, %v654_v35  ;;  %v4090_v48 = vsel %vm565_vm2, %v4086_v13, %v652_v24 }
 0x11c   : > { %v1109_v63 = vrot.slane %v781_v5, 7  ;;  %v1146_v44 = vrot.slane %v781_v5, 1  ;;  %v913_v29 = vadd.f32 %v901_v52, %v889_v51  ;;  %v2395_v23 = vsel %vm2113_vm1, %v2379_v39, 0.0 }
 0x11d   : > { %v4083_v2 = vmul.f32 %v4078_v4, %v4078_v4  ;;  %v4101_v39 = vmul.f32 %v4078_v4, %v3730_v12  ;;  %v4119_v12 = vld [vmem:[%s3145_s24 + $0x48] sm:$0xff] }
 0x11e   : > { %v4093_v58 = vsel %vm1099_vm6, %v1109_v63, %v1110_v7  ;;  %v1133_v35 = vsel %vm1099_vm6, %v781_v5, %v1109_v63  ;;  %v4097_v51 = vsel %vm1136_vm7, %v1146_v44, %v1147_v19  ;;  %v1382_v24 = vrot.slane %v913_v29, 7 }
 0x11f   : > { %5642 = vst [vmem:[#allocation18_spill] sm:$0xff] %v4093_v58  ;;  %v1183_v52 = vsel %vm489_vm8, %v4097_v51, %v1133_v35  ;;  %v4107_v40 = vadd.f32 %v4093_v58, %v782_v25  ;;  %v1418_v7 = vrot.slane %v913_v29, 1  ;;  %v4112_v63 = vadd.f32 %v3965_v26, %v2395_v23  ;;  %v698_v25 = vpop.permute.xlu1 %697 }
 0x120   : > { %v4109_v3 = vadd.f32 %v1183_v52, %v781_v5  ;;  %v4116_v19 = vmul.f32 %v4090_v48, %v4090_v48  ;;  %v4123_v44 = vsel %vm565_vm2, %v4119_v12, %v658_v49  ;;  %v4126_v35 = vsel %vm1099_vm6, %v1382_v24, %v1383_v18 }
 0x121   : > { %5643 = vst [vmem:[#allocation74_spill] sm:$0xff] %v4107_v40  ;;  %5644 = vst [vmem:[#allocation75_spill] sm:$0xff] %v4112_v63  ;;  %v1406_v5 = vsel %vm1099_vm6, %v913_v29, %v1382_v24  ;;  %v4130_v26 = vsel %vm1136_vm7, %v1418_v7, %v1419_v62  ;;  %v4134_v23 = vmul.f32 %v4090_v48, %v3745_v45  ;;  %v4147_v40 = vld [vmem:[%s3145_s24 + $0x40] sm:$0xff]  ;;  %v696_v24 = vpop.permute.xlu0 %695 }
 0x122   : > { %5645 = vst [vmem:[#allocation76_spill] sm:$0xff] %v4126_v35  ;;  %v1451_v52 = vsel %vm489_vm8, %v4130_v26, %v1406_v5  ;;  %v4140_v49 = vadd.f32 %v4126_v35, %v914_v42  ;;  %v4144_v18 = vmul.f32 %v4123_v44, %v4123_v44  ;;  %v4151_v62 = vsel %vm565_vm2, %v4147_v40, %v656_v33  ;;  %v3014_v5 = vld [vmem:[%s3145_s24 + $0x28] sm:$0xff] }
 0x123   : > { %v4153_v45 = vadd.f32 %v1451_v52, %v913_v29  ;;  %v4157_v7 = vmul.f32 %v4123_v44, %v3855_v28  ;;  %v4161_v42 = vmul.f32 %v4151_v62, %v4151_v62  ;;  %v4167_v35 = vmul.f32 %v4151_v62, %v3882_v57 }
 0x124   : > { %5646 = vst [vmem:[#allocation77_spill] sm:$0xff] %v4140_v49  ;;  %v728_v49 = vsel %vm614_vm3, %v698_v25, %v3014_v5  ;;  %v727_v58 = vsel %vm614_vm3, %v696_v24, %v4049_v31  ;;  %v4181_v25 = vadd.f32 %v3891_v0, %v3874_v6  ;;  %v5648_v0 = vld [vmem:[#allocation21_spill] sm:$0xff] }
 0x125   : > { %v792_v29 = vsel %vm487_vm4, %v728_v49, %v3898_v50  ;;  %v948_v33 = vmul.f32 %v728_v49, %v728_v49  ;;  %v1032_v52 = vmul.f32 %v728_v49, %v3794_v34  ;;  %v816_v57 = vsel %vm488_vm5, %v3898_v50, %v728_v49 }
 0x126   : > { %v804_v28 = vadd.f32 %v3014_v5, %v792_v29  ;;  %v5647_v5 = vld [vmem:[#allocation20_spill] sm:$0xff]  ;;  %v791_v50 = vsel %vm487_vm4, %v727_v58, %v4053_v59  ;;  %v947_v9 = vmul.f32 %v727_v58, %v727_v58  ;;  %v1031_v8 = vmul.f32 %v727_v58, %v3803_v43 }
 0x127   : > { %v960_v34 = vsel %vm487_vm4, %v948_v33, %v3919_v30  ;;  %v1044_v24 = vsel %vm487_vm4, %v1032_v52, %v4025_v20  ;;  %v1068_v53 = vsel %vm488_vm5, %v4025_v20, %v1032_v52  ;;  %v984_v49 = vsel %vm488_vm5, %v3919_v30, %v948_v33 }
 0x128   : > { %v828_v41 = vadd.f32 %v816_v57, %v804_v28  ;;  %v972_v6 = vadd.f32 %v960_v34, %v5647_v5  ;;  %v1056_v29 = vadd.f32 %v1044_v24, %v5648_v0  ;;  %v803_v16 = vadd.f32 %v4049_v31, %v791_v50 }
 0x129   : > { %v815_v28 = vsel %vm488_vm5, %v4053_v59, %v727_v58  ;;  %v959_v24 = vsel %vm487_vm4, %v947_v9, %v4067_v11  ;;  %v1043_v30 = vsel %vm487_vm4, %v1031_v8, %v4071_v47  ;;  %v5650_v59 = vld [vmem:[#allocation22_spill] sm:$0xff] }
 0x12a   : > { %v996_v63 = vadd.f32 %v984_v49, %v972_v6  ;;  %v1080_v20 = vadd.f32 %v1068_v53, %v1056_v29  ;;  %v1284_v52 = vrot.slane %v828_v41, 1  ;;  %v1248_v57 = vrot.slane %v828_v41, 7 }
 0x12b   : > { %v827_v34 = vadd.f32 %v815_v28, %v803_v16  ;;  %v983_v53 = vsel %vm488_vm5, %v4067_v11, %v947_v9  ;;  %v971_v16 = vadd.f32 %v959_v24, %v3437_v1  ;;  %v1055_v5 = vadd.f32 %v1043_v30, %v5650_v59  ;;  %v702_v11 = vpop.permute.xlu1 %701 }
 0x12c   : > { %v4215_v31 = vsel %vm1136_vm7, %v1284_v52, %v828_v41  ;;  %v1512_v43 = vrot.slane %v996_v63, 7  ;;  %v1548_v33 = vrot.slane %v996_v63, 1  ;;  %v1680_v58 = vrot.slane %v1080_v20, 1 }
 0x12d   : > { %5649 = vst [vmem:[#allocation20_spill] sm:$0xff] %v4215_v31  ;;  %v1067_v6 = vsel %vm488_vm5, %v4071_v47, %v1031_v8  ;;  %v1644_v29 = vrot.slane %v1080_v20, 7  ;;  %v1247_v50 = vrot.slane %v827_v34, 7  ;;  %v1283_v49 = vrot.slane %v827_v34, 1 }
 0x12e   : > { %v4226_v0 = vsel %vm1136_vm7, %v1548_v33, %v996_v63  ;;  %v4229_v28 = vsel %vm1136_vm7, %v1680_v58, %v1080_v20  ;;  %v995_v31 = vadd.f32 %v983_v53, %v971_v16  ;;  %v1079_v9 = vadd.f32 %v1067_v6, %v1055_v5 }
 0x12f   : > { %5651 = vst [vmem:[#allocation21_spill] sm:$0xff] %v4226_v0  ;;  %5652 = vst [vmem:[#allocation22_spill] sm:$0xff] %v4229_v28  ;;  %v4233_v1 = vmul.f32 %v4177_v17, %v4177_v17  ;;  %v4236_v24 = vsel %vm1099_vm6, %v1247_v50, %v1248_v57  ;;  %v1273_v8 = vsel %vm1099_vm6, %v827_v34, %v1247_v50 }
 0x130   : > { %v1285_v47 = vsel %vm1136_vm7, %v1283_v49, %v1284_v52  ;;  %v926_v30 = vmul.f32 %v4074_v46, %v4074_v46  ;;  %v1511_v53 = vrot.slane %v995_v31, 7  ;;  %v1547_v16 = vrot.slane %v995_v31, 1 }
 0x131   : > { %v1317_v59 = vsel %vm489_vm8, %v1285_v47, %v1273_v8  ;;  %v1010_v5 = vmul.f32 %v4074_v46, %v3198_v15  ;;  %v1643_v28 = vrot.slane %v1079_v9, 7  ;;  %v1679_v0 = vrot.slane %v1079_v9, 1 }
 0x132   : > { %v1329_v6 = vadd.f32 %v1317_v59, %v827_v34  ;;  %v730_v57 = vsel %vm614_vm3, %v702_v11, %v4074_v46  ;;  %v4249_v50 = vadd.f32 %v4236_v24, %v828_v41  ;;  %v1537_v52 = vsel %vm1099_vm6, %v995_v31, %v1511_v53 }
 0x133   : > { %v1549_v49 = vsel %vm1136_vm7, %v1547_v16, %v1548_v33  ;;  %v794_v8 = vsel %vm487_vm4, %v730_v57, %v4078_v4  ;;  %v4257_v15 = vsel %vm1099_vm6, %v1511_v53, %v1512_v43  ;;  %v4262_v11 = vsel %vm1099_vm6, %v1643_v28, %v1644_v29 }
 0x134   : > { %5653 = vst [vmem:[#allocation78_spill] sm:$0xff] %v4249_v50  ;;  %v1353_v27 = vadd.f32 %v1329_v6, %v1285_v47  ;;  %5654 = vst [vmem:[#allocation79_spill] sm:$0xff] %v4257_v15  ;;  %v1581_v34 = vsel %vm489_vm8, %v1549_v49, %v1537_v52  ;;  %v1669_v59 = vsel %vm1099_vm6, %v1079_v9, %v1643_v28 }
 0x135   : > { %5655 = vst [vmem:[#allocation80_spill] sm:$0xff] %v4262_v11  ;;  %v1593_v41 = vadd.f32 %v1581_v34, %v995_v31  ;;  %v1681_v50 = vsel %vm1136_vm7, %v1679_v0, %v1680_v58  ;;  %v4267_v33 = vadd.f32 %v4262_v11, %v1080_v20  ;;  %v806_v16 = vadd.f32 %v4074_v46, %v794_v8  ;;  %v700_v8 = vpop.permute.xlu0 %699 }
 0x136   : > { %v1713_v47 = vsel %vm489_vm8, %v1681_v50, %v1669_v59  ;;  %v1761_v43 = vmul.f32 %v1353_v27, %v4177_v17  ;;  %v1785_v53 = vmul.f32 %v1353_v27, %v1353_v27  ;;  %v818_v31 = vsel %vm488_vm5, %v4078_v4, %v730_v57 }
 0x137   : > { %5656 = vst [vmem:[#allocation81_spill] sm:$0xff] %v4267_v33  ;;  %v1617_v6 = vadd.f32 %v1593_v41, %v1549_v49  ;;  %v1725_v52 = vadd.f32 %v1713_v47, %v1079_v9  ;;  %v950_v29 = vmul.f32 %v730_v57, %v730_v57  ;;  %v4277_v20 = vadd.f32 %v818_v31, %v806_v16 }
 0x138   : > { %v1797_v28 = vmul.f32 2.0, %v1761_v43  ;;  %v1857_v58 = vadd.f32 %v1785_v53, %v4233_v1  ;;  %v1034_v0 = vmul.f32 %v730_v57, %v3910_v56  ;;  %v4281_v34 = vadd.f32 %v4257_v15, %v996_v63 }
 0x139   : > { %v1749_v17 = vadd.f32 %v1725_v52, %v1681_v50  ;;  %v1881_v46 = vadd.f32 %v1617_v6, %v4181_v25  ;;  %v962_v27 = vsel %vm487_vm4, %v950_v29, %v4083_v2  ;;  %v986_v49 = vsel %vm488_vm5, %v4083_v2, %v950_v29 }
 0x13a   : > { %5657 = vst [vmem:[#allocation82_spill] sm:$0xff] %v4281_v34  ;;  %v4287_v9 = vadd.f32 0.0081, %v1797_v28  ;;  %v974_v4 = vadd.f32 %v962_v27, %v926_v30  ;;  %v1046_v56 = vsel %vm487_vm4, %v1034_v0, %v4101_v39  ;;  %v1070_v25 = vsel %vm488_vm5, %v4101_v39, %v1034_v0 }
 0x13b   : > { %v1821_v63 = vmul.f32 18.0, %v1749_v17  ;;  %v1893_v57 = vmul.f32 9.0, %v1881_v46  ;;  %v1058_v50 = vadd.f32 %v1046_v56, %v1010_v5  ;;  %v1869_v41 = vadd.f32 0.0081, %v1857_v58 }
 0x13c   : > { %5658 = vst [vmem:[#allocation83_spill] sm:$0xff] %v4287_v9  ;;  %v4298_v59 = vadd.f32 %v986_v49, %v974_v4  ;;  %v1251_v30 = vrot.slane %v4277_v20, 7  ;;  %v1287_v47 = vrot.slane %v4277_v20, 1  ;;  %v925_v6 = vmul.f32 %v4086_v13, %v4086_v13 }
 0x13d   : > { %v1833_v2 = vsub.f32 %v1821_v63, %v1797_v28  ;;  %v1905_v43 = vsub.f32 %v1893_v57, %v4233_v1  ;;  %v1082_v16 = vadd.f32 %v1070_v25, %v1058_v50  ;;  %v1009_v52 = vmul.f32 %v4086_v13, %v3196_v14 }
 0x13e   : > { %v4307_v5 = vsel %vm1136_vm7, %v1287_v47, %v4277_v20  ;;  %v1551_v39 = vrot.slane %v4298_v59, 1  ;;  %v729_v31 = vsel %vm614_vm3, %v700_v8, %v4086_v13  ;;  %v1515_v1 = vrot.slane %v4298_v59, 7 }
 0x13f   : > { %v4314_v29 = vadd.f32 0.0729, %v1833_v2  ;;  %v1917_v28 = vsub.f32 %v1905_v43, %v1785_v53  ;;  %v1683_v58 = vrot.slane %v1082_v16, 1  ;;  %v1647_v17 = vrot.slane %v1082_v16, 7 }
 0x140   : > { %v4319_v0 = vsel %vm1136_vm7, %v1551_v39, %v4298_v59  ;;  %v793_v46 = vsel %vm487_vm4, %v729_v31, %v4090_v48  ;;  %v949_v27 = vmul.f32 %v729_v31, %v729_v31  ;;  %v817_v53 = vsel %vm488_vm5, %v4090_v48, %v729_v31  ;;  %v706_v48 = vpop.permute.xlu1 %705 }
 0x141   : > { %5659 = vst [vmem:[#allocation84_spill] sm:$0xff] %v4314_v29  ;;  %5660 = vst [vmem:[#allocation85_spill] sm:$0xff] %v4319_v0  ;;  %v1929_v4 = vadd.f32 0.0729, %v1917_v28  ;;  %v805_v49 = vadd.f32 %v4086_v13, %v793_v46  ;;  %v1033_v56 = vmul.f32 %v729_v31, %v4021_v54  ;;  %v4330_v63 = vsel %vm1136_vm7, %v1683_v58, %v1082_v16 }
 0x142   : > { %5661 = vst [vmem:[#allocation86_spill] sm:$0xff] %v4330_v63  ;;  %v961_v57 = vsel %vm487_vm4, %v949_v27, %v4116_v19  ;;  %v1223_v50 = vadd.f32 %v4109_v3, %v4097_v51  ;;  %v1487_v25 = vadd.f32 %v4153_v45, %v4130_v26  ;;  %v985_v43 = vsel %vm488_vm5, %v4116_v19, %v949_v27 }
 0x143   : > { %v1953_v13 = vmul.f32 %v1929_v4, %v1869_v41  ;;  %v829_v8 = vadd.f32 %v817_v53, %v805_v49  ;;  %v973_v2 = vadd.f32 %v961_v57, %v925_v6  ;;  %v1045_v54 = vsel %vm487_vm4, %v1033_v56, %v4134_v23 }
 0x144   : > { %v1057_v31 = vadd.f32 %v1045_v54, %v1009_v52  ;;  %v1069_v3 = vsel %vm488_vm5, %v4134_v23, %v1033_v56  ;;  %v4348_v51 = vmul.f32 %v1223_v50, %v1223_v50  ;;  %v928_v6 = vmul.f32 %v4119_v12, %v4119_v12 }
 0x145   : > { %v997_v26 = vadd.f32 %v985_v43, %v973_v2  ;;  %v1250_v45 = vrot.slane %v829_v8, 7  ;;  %v1286_v41 = vrot.slane %v829_v8, 1  ;;  %2965 = vrcp.f32 %v1953_v13 }
 0x146   : > { %v1081_v28 = vadd.f32 %v1069_v3, %v1057_v31  ;;  %v1012_v46 = vmul.f32 %v4119_v12, %v3215_v22  ;;  %v732_v19 = vsel %vm614_vm3, %v706_v48, %v4119_v12  ;;  %v4365_v57 = vmul.f32 %v4147_v40, %v4147_v40 }
 0x147   : > { %v4357_v52 = vsel %vm1099_vm6, %v1250_v45, %v1251_v30  ;;  %v1274_v23 = vsel %vm1099_vm6, %v829_v8, %v1250_v45  ;;  %v1288_v27 = vsel %vm1136_vm7, %v1286_v41, %v1287_v47  ;;  %v1514_v4 = vrot.slane %v997_v26, 7 }
 0x148   : > { %v1319_v49 = vsel %vm489_vm8, %v1288_v27, %v1274_v23  ;;  %v1550_v53 = vrot.slane %v997_v26, 1  ;;  %v1646_v56 = vrot.slane %v1081_v28, 7  ;;  %v1682_v54 = vrot.slane %v1081_v28, 1 }
 0x149   : > { %v1331_v13 = vadd.f32 %v1319_v49, %v829_v8  ;;  %v4368_v2 = vsel %vm1099_vm6, %v1514_v4, %v1515_v1  ;;  %v1538_v30 = vsel %vm1099_vm6, %v997_v26, %v1514_v4  ;;  %v4373_v47 = vadd.f32 %v4357_v52, %v4277_v20 }
 0x14a   : > { %5662 = vst [vmem:[#allocation87_spill] sm:$0xff] %v4368_v2  ;;  %v1552_v48 = vsel %vm1136_vm7, %v1550_v53, %v1551_v39  ;;  %v4377_v43 = vsel %vm1099_vm6, %v1646_v56, %v1647_v17  ;;  %v1670_v31 = vsel %vm1099_vm6, %v1081_v28, %v1646_v56  ;;  %v1684_v1 = vsel %vm1136_vm7, %v1682_v54, %v1683_v58 }
 0x14b   : > { %5663 = vst [vmem:[#allocation88_spill] sm:$0xff] %v4373_v47  ;;  %5664 = vst [vmem:[#allocation89_spill] sm:$0xff] %v4377_v43  ;;  %v1355_v3 = vadd.f32 %v1331_v13, %v1288_v27  ;;  %v1583_v8 = vsel %vm489_vm8, %v1552_v48, %v1538_v30  ;;  %v4384_v45 = vadd.f32 %v4377_v43, %v1082_v16 }
 0x14c   : > { %v1595_v41 = vadd.f32 %v1583_v8, %v997_v26  ;;  %v4388_v20 = vadd.f32 %v4368_v2, %v4298_v59  ;;  %v1715_v39 = vsel %vm489_vm8, %v1684_v1, %v1670_v31  ;;  %v796_v17 = vsel %vm487_vm4, %v732_v19, %v4123_v44  ;;  %v4686_v2 = vld [vmem:[%s3272_s14] sm:$0xff] }
 0x14d   : > { %5665 = vst [vmem:[#allocation90_spill] sm:$0xff] %v4384_v45  ;;  %v1727_v23 = vadd.f32 %v1715_v39, %v1081_v28  ;;  %v1763_v27 = vmul.f32 %v1355_v3, %v1223_v50  ;;  %v1787_v4 = vmul.f32 %v1355_v3, %v1355_v3  ;;  %v808_v58 = vadd.f32 %v4119_v12, %v796_v17  ;;  %v704_v28 = vpop.permute.xlu0 %703 }
 0x14e   : > { %5666 = vst [vmem:[#allocation91_spill] sm:$0xff] %v4388_v20  ;;  %v1619_v49 = vadd.f32 %v1595_v41, %v1552_v48  ;;  %v820_v16 = vsel %vm488_vm5, %v4123_v44, %v732_v19  ;;  %v952_v26 = vmul.f32 %v732_v19, %v732_v19  ;;  %v1036_v59 = vmul.f32 %v732_v19, %v3902_v61 }
 0x14f   : > { %v1751_v53 = vadd.f32 %v1727_v23, %v1684_v1  ;;  %v1799_v56 = vmul.f32 2.0, %v1763_v27  ;;  %v1859_v13 = vadd.f32 %v1787_v4, %v4348_v51  ;;  %v4401_v30 = vadd.f32 %v820_v16, %v808_v58 }
 0x150   : > { %v1883_v54 = vadd.f32 %v1619_v49, %v1487_v25  ;;  %v964_v50 = vsel %vm487_vm4, %v952_v26, %v4144_v18  ;;  %v1048_v12 = vsel %vm487_vm4, %v1036_v59, %v4157_v7  ;;  %v1011_v44 = vmul.f32 %v4147_v40, %v3213_v21 }
 0x151   : > { %v4411_v61 = vadd.f32 0.0081, %v1799_v56  ;;  %v1823_v19 = vmul.f32 18.0, %v1751_v53  ;;  %v976_v48 = vadd.f32 %v964_v50, %v928_v6  ;;  %v988_v25 = vsel %vm488_vm5, %v4144_v18, %v952_v26 }
 0x152   : > { %v1871_v31 = vadd.f32 0.0081, %v1859_v13  ;;  %v1895_v3 = vmul.f32 9.0, %v1883_v54  ;;  %v1060_v8 = vadd.f32 %v1048_v12, %v1012_v46  ;;  %v1072_v1 = vsel %vm488_vm5, %v4157_v7, %v1036_v59  ;;  %v4419_v41 = vpop.eup %2965 }
 0x153   : > { %5667 = vst [vmem:[#allocation92_spill] sm:$0xff] %v4411_v61  ;;  %5668 = vst [vmem:[#allocation93_spill] sm:$0xff] %v4419_v41  ;;  %v1835_v39 = vsub.f32 %v1823_v19, %v1799_v56  ;;  %v1000_v17 = vadd.f32 %v988_v25, %v976_v48  ;;  %v1290_v23 = vrot.slane %v4401_v30, 1  ;;  %v731_v6 = vsel %vm614_vm3, %v704_v28, %v4147_v40  ;;  %v2954_v48 = vpop.permute.xlu1 %2953 }
 0x154   : > { %v1907_v27 = vsub.f32 %v1895_v3, %v4348_v51  ;;  %v4425_v58 = vadd.f32 %v1072_v1, %v1060_v8  ;;  %v1254_v18 = vrot.slane %v4401_v30, 7  ;;  %v795_v46 = vsel %vm487_vm4, %v731_v6, %v4151_v62 }
 0x155   : > { %v4431_v7 = vadd.f32 0.0729, %v1835_v39  ;;  %v4435_v49 = vsel %vm1136_vm7, %v1290_v23, %v4401_v30  ;;  %v1554_v16 = vrot.slane %v1000_v17, 1  ;;  %v819_v26 = vsel %vm488_vm5, %v4151_v62, %v731_v6 }
 0x156   : > { %5670 = vst [vmem:[#allocation95_spill] sm:$0xff] %v4435_v49  ;;  %v1919_v51 = vsub.f32 %v1907_v27, %v1787_v4  ;;  %v1518_v59 = vrot.slane %v1000_v17, 7  ;;  %v1686_v53 = vrot.slane %v4425_v58, 1  ;;  %v807_v56 = vadd.f32 %v4147_v40, %v795_v46 }
 0x157   : > { %5669 = vst [vmem:[#allocation94_spill] sm:$0xff] %v4431_v7  ;;  %v1650_v13 = vrot.slane %v4425_v58, 7  ;;  %v951_v54 = vmul.f32 %v731_v6, %v731_v6  ;;  %v1035_v50 = vmul.f32 %v731_v6, %v3906_v32  ;;  %v1225_v12 = vadd.f32 %v3988_v38, %v3968_v36 }
 0x158   : > { %v1931_v28 = vadd.f32 0.0729, %v1919_v51  ;;  %v4447_v19 = vsel %vm1136_vm7, %v1554_v16, %v1000_v17  ;;  %v4451_v62 = vsel %vm1136_vm7, %v1686_v53, %v4425_v58  ;;  %v831_v4 = vadd.f32 %v819_v26, %v807_v56 }
 0x159   : > { %5671 = vst [vmem:[#allocation96_spill] sm:$0xff] %v4447_v19  ;;  %5672 = vst [vmem:[#allocation97_spill] sm:$0xff] %v4451_v62  ;;  %v963_v40 = vsel %vm487_vm4, %v951_v54, %v4161_v42  ;;  %v987_v32 = vsel %vm488_vm5, %v4161_v42, %v951_v54  ;;  %v1047_v36 = vsel %vm487_vm4, %v1035_v50, %v4167_v35  ;;  %v2956_v42 = vunpack.i.h.bf16 %v2954_v48 }
 0x15a   : > { %v1489_v38 = vadd.f32 %v4015_v10, %v3995_v60  ;;  %v1955_v25 = vmul.f32 %v1931_v28, %v1871_v31  ;;  %v975_v3 = vadd.f32 %v963_v40, %v4365_v57  ;;  %v1059_v8 = vadd.f32 %v1047_v36, %v1011_v44  ;;  %v5674_v57 = vld [vmem:[#allocation14_spill] sm:$0xff] }
 0x15b   : > { %v1253_v1 = vrot.slane %v831_v4, 7  ;;  %v1071_v39 = vsel %vm488_vm5, %v4167_v35, %v1035_v50  ;;  %v1289_v6 = vrot.slane %v831_v4, 1  ;;  %v4468_v27 = vmul.f32 %v1225_v12, %v1225_v12 }
 0x15c   : > { %v999_v46 = vadd.f32 %v987_v32, %v975_v3  ;;  %v1083_v26 = vadd.f32 %v1071_v39, %v1059_v8  ;;  %v2955_v56 = vunpack.i.l.bf16 %v2954_v48  ;;  %2967 = vrcp.f32 %v1955_v25 }
 0x15d   : > { %v4471_v51 = vsel %vm1099_vm6, %v1253_v1, %v1254_v18  ;;  %v1275_v10 = vsel %vm1099_vm6, %v831_v4, %v1253_v1  ;;  %v1291_v60 = vsel %vm1136_vm7, %v1289_v6, %v1290_v23  ;;  %v4477_v44 = vsel %vm614_vm3, %v2956_v42, %v5674_v57  ;;  %v2949_v6 = vpop.permute.xlu0 %2948 }
 0x15e   : > { %5673 = vst [vmem:[#allocation98_spill] sm:$0xff] %v4471_v51  ;;  %v1321_v35 = vsel %vm489_vm8, %v1291_v60, %v1275_v10  ;;  %v1517_v31 = vrot.slane %v999_v46, 7  ;;  %v1553_v54 = vrot.slane %v999_v46, 1  ;;  %v1649_v50 = vrot.slane %v1083_v26, 7 }
 0x15f   : > { %v1333_v28 = vadd.f32 %v1321_v35, %v831_v4  ;;  %v4483_v18 = vadd.f32 %v4471_v51, %v4401_v30  ;;  %v1685_v48 = vrot.slane %v1083_v26, 1  ;;  %v2372_v40 = vsub.f32 %v5674_v57, %v4477_v44  ;;  %v5679_v35 = vld [vmem:[#allocation13_spill] sm:$0xff] }
 0x160   : > { %v4488_v23 = vsel %vm1099_vm6, %v1517_v31, %v1518_v59  ;;  %v1539_v32 = vsel %vm1099_vm6, %v999_v46, %v1517_v31  ;;  %v1555_v36 = vsel %vm1136_vm7, %v1553_v54, %v1554_v16  ;;  %v4494_v25 = vmul.f32 %v4477_v44, %v4477_v44 }
 0x161   : > { %5675 = vst [vmem:[#allocation14_spill] sm:$0xff] %v4483_v18  ;;  %5676 = vst [vmem:[#allocation99_spill] sm:$0xff] %v4488_v23  ;;  %v1357_v4 = vadd.f32 %v1333_v28, %v1291_v60  ;;  %v1585_v30 = vsel %vm489_vm8, %v1555_v36, %v1539_v32  ;;  %v4499_v3 = vsel %vm1099_vm6, %v1649_v50, %v1650_v13  ;;  %v2384_v16 = vand.u32 2147483647, %v2372_v40 }
 0x162   : > { %5677 = vst [vmem:[#allocation100_spill] sm:$0xff] %v4499_v3  ;;  %v1671_v8 = vsel %vm1099_vm6, %v1083_v26, %v1649_v50  ;;  %v1597_v1 = vadd.f32 %v1585_v30, %v999_v46  ;;  %v4503_v59 = vadd.f32 %v4488_v23, %v1000_v17  ;;  %v1687_v39 = vsel %vm1136_vm7, %v1685_v48, %v1686_v53 }
 0x163   : > { %v1717_v42 = vsel %vm489_vm8, %v1687_v39, %v1671_v8  ;;  %v1765_v10 = vmul.f32 %v1357_v4, %v1225_v12  ;;  %v1789_v60 = vmul.f32 %v1357_v4, %v1357_v4  ;;  %v4510_v31 = vsel %vm614_vm3, %v2955_v56, %v5679_v35  ;;  %v5681_v12 = vld [vmem:[#allocation72_spill] sm:$0xff]  ;;  %v662_v56 = vpop.permute.xlu1 %661 }
 0x164   : > { %5678 = vst [vmem:[#allocation101_spill] sm:$0xff] %v4503_v59  ;;  %v1621_v13 = vadd.f32 %v1597_v1, %v1555_v36  ;;  %v1729_v54 = vadd.f32 %v1717_v42, %v1083_v26  ;;  %v4514_v46 = vadd.f32 %v4499_v3, %v4425_v58  ;;  %v2403_v17 = vsel %vm2113_vm1, %v2384_v16, 0.0 }
 0x165   : > { %v1801_v53 = vmul.f32 2.0, %v1765_v10  ;;  %v1861_v50 = vadd.f32 %v1789_v60, %v4468_v27  ;;  %v2371_v28 = vsub.f32 %v5679_v35, %v4510_v31  ;;  %v2404_v48 = vadd.f32 %v2403_v17, %v5681_v12  ;;  %v4533_v17 = vld [vmem:[%s3145_s24 + $0x58] sm:$0xff] }
 0x166   : > { %5680 = vst [vmem:[#allocation13_spill] sm:$0xff] %v4514_v46  ;;  %v1753_v40 = vadd.f32 %v1729_v54, %v1687_v39  ;;  %v1885_v32 = vadd.f32 %v1621_v13, %v1489_v38  ;;  %v869_v26 = vmul.f32 %v4510_v31, %v4510_v31  ;;  %v845_v58 = vmul.f32 %v5679_v35, %v5679_v35  ;;  %v660_v39 = vpop.permute.xlu0 %659 }
 0x167   : > { %v4525_v36 = vadd.f32 0.0081, %v1801_v53  ;;  %v2383_v4 = vand.u32 2147483647, %v2371_v28  ;;  %v846_v30 = vmul.f32 %v5674_v57, %v5674_v57  ;;  %v2951_v8 = vunpack.i.h.bf16 %v2949_v6 }
 0x168   : > { %v1825_v1 = vmul.f32 18.0, %v1753_v40  ;;  %v1897_v16 = vmul.f32 9.0, %v1885_v32  ;;  %v2408_v42 = vmul.f32 0.33333334, %v2404_v48  ;;  %v2950_v38 = vunpack.i.l.bf16 %v2949_v6  ;;  %v5684_v32 = vld [vmem:[#allocation75_spill] sm:$0xff] }
 0x169   : > { %5682 = vst [vmem:[#allocation72_spill] sm:$0xff] %v4525_v36  ;;  %v1873_v10 = vadd.f32 0.0081, %v1861_v50  ;;  %v2398_v13 = vsel %vm2113_vm1, %v2383_v4, 0.0  ;;  %v577_v54 = vsel %vm565_vm2, %v5674_v57, %v2951_v8  ;;  %v4537_v28 = vsel %vm565_vm2, %v4533_v17, %v662_v56  ;;  %v4539_v12 = vpop.eup %2967  ;;  %v4549_v36 = vld [vmem:[%s3145_s24 + $0x50] sm:$0xff] }
 0x16a   : > { %5683 = vst [vmem:[#allocation102_spill] sm:$0xff] %v4539_v12  ;;  %v1837_v40 = vsub.f32 %v1825_v1, %v1801_v53  ;;  %v1909_v48 = vsub.f32 %v1897_v16, %v4468_v27  ;;  %v2399_v6 = vadd.f32 %v2398_v13, %v5684_v32  ;;  %v2496_v41 = vsub.f32 0.0, %v2408_v42 }
 0x16b   : > { %v748_v50 = vsel %vm487_vm4, %v4477_v44, %v577_v54  ;;  %v858_v4 = vmul.f32 %v577_v54, %v577_v54  ;;  %v576_v8 = vsel %vm565_vm2, %v5679_v35, %v2950_v38  ;;  %v4553_v56 = vsel %vm565_vm2, %v4549_v36, %v660_v39  ;;  %vm2628_vm2 = vmand %vm489_vm8, %vm487_vm4 }
 0x16c   : > { %v1921_v53 = vsub.f32 %v1909_v48, %v1789_v60  ;;  %v2407_v1 = vmul.f32 0.33333334, %v2399_v6  ;;  %v2503_v27 = vmul.f32 1.442695, %v2496_v41  ;;  %v774_v16 = vsel %vm488_vm5, %v577_v54, %v4477_v44 }
 0x16d   : > { %v4558_v42 = vadd.f32 0.0729, %v1837_v40  ;;  %v760_v13 = vadd.f32 %v5674_v57, %v748_v50  ;;  %v882_v38 = vsel %vm487_vm4, %v4494_v25, %v858_v4  ;;  %v747_v39 = vsel %vm487_vm4, %v4510_v31, %v576_v8 }
 0x16e   : > { %v1933_v32 = vadd.f32 0.0729, %v1921_v53  ;;  %v2495_v60 = vsub.f32 0.0, %v2407_v1  ;;  %v894_v48 = vadd.f32 %v882_v38, %v846_v30  ;;  %v906_v41 = vsel %vm488_vm5, %v858_v4, %v4494_v25 }
 0x16f   : > { %5685 = vst [vmem:[#allocation75_spill] sm:$0xff] %v4558_v42  ;;  %2969 = vpow2.f32 %v2503_v27  ;;  %v786_v40 = vadd.f32 %v774_v16, %v760_v13  ;;  %v759_v6 = vadd.f32 %v5679_v35, %v747_v39  ;;  %v857_v50 = vmul.f32 %v576_v8, %v576_v8  ;;  %v708_v16 = vpop.permute.xlu0 %707 }
 0x170   : > { %v1957_v12 = vmul.f32 %v1933_v32, %v1873_v10  ;;  %v2501_v42 = vmul.f32 1.442695, %v2495_v60  ;;  %v918_v7 = vadd.f32 %v906_v41, %v894_v48  ;;  %v773_v61 = vsel %vm488_vm5, %v576_v8, %v4510_v31  ;;  %v710_v60 = vpop.permute.xlu1 %709 }
 0x171   : > { %v1116_v29 = vrot.slane %v786_v40, 7  ;;  %v1153_v53 = vrot.slane %v786_v40, 1  ;;  %v785_v1 = vadd.f32 %v773_v61, %v759_v6  ;;  %v881_v30 = vsel %vm487_vm4, %v869_v26, %v857_v50 }
 0x172   : > { %2971 = vrcp.f32 %v1957_v12  ;;  %v1425_v25 = vrot.slane %v918_v7, 1  ;;  %v893_v4 = vadd.f32 %v881_v30, %v845_v58  ;;  %v942_v27 = vmul.f32 %v4537_v28, %v4537_v28 }
 0x173   : > { %2973 = vpow2.f32 %v2501_v42  ;;  %v1389_v10 = vrot.slane %v918_v7, 7  ;;  %v905_v13 = vsel %vm488_vm5, %v857_v50, %v869_v26  ;;  %v1115_v38 = vrot.slane %v785_v1, 7 }
 0x174   : > { %v4581_v39 = vsel %vm1136_vm7, %v1153_v53, %v786_v40  ;;  %v4584_v61 = vsel %vm1136_vm7, %v1425_v25, %v918_v7  ;;  %v917_v32 = vadd.f32 %v905_v13, %v893_v4  ;;  %v1152_v12 = vrot.slane %v785_v1, 1  ;;  %v4597_v4 = vpop.xlane.xlu0 %2272 }
 0x175   : > { %5686 = vst [vmem:[#allocation103_spill] sm:$0xff] %v4584_v61  ;;  %v4587_v58 = vsel %vm1099_vm6, %v1115_v38, %v1116_v29  ;;  %v1135_v48 = vsel %vm1099_vm6, %v785_v1, %v1115_v38  ;;  %v1026_v42 = vmul.f32 %v4537_v28, %v577_v54  ;;  %v941_v26 = vmul.f32 %v4553_v56, %v4553_v56 }
 0x176   : > { %v1154_v41 = vsel %vm1136_vm7, %v1152_v12, %v1153_v53  ;;  %v4595_v6 = vadd.f32 %v4587_v58, %v786_v40  ;;  %v1388_v50 = vrot.slane %v917_v32, 7  ;;  %v1424_v30 = vrot.slane %v917_v32, 1 }
 0x177   : > { %v1187_v29 = vsel %vm489_vm8, %v1154_v41, %v1135_v48  ;;  %v1025_v13 = vmul.f32 %v4553_v56, %v576_v8  ;;  %v930_v54 = vmul.f32 %v4533_v17, %v4533_v17  ;;  %v734_v38 = vsel %vm614_vm3, %v710_v60, %v4533_v17 }
 0x178   : > { %v1199_v9 = vadd.f32 %v1187_v29, %v785_v1  ;;  %v4607_v53 = vsel %vm1099_vm6, %v1388_v50, %v1389_v10  ;;  %v1408_v40 = vsel %vm1099_vm6, %v917_v32, %v1388_v50  ;;  %v1426_v12 = vsel %vm1136_vm7, %v1424_v30, %v1425_v25 }
 0x179   : > { %5687 = vst [vmem:[#allocation104_spill] sm:$0xff] %v4607_v53  ;;  %v1455_v46 = vsel %vm489_vm8, %v1426_v12, %v1408_v40  ;;  %v4614_v48 = vadd.f32 %v4607_v53, %v918_v7  ;;  %v1014_v8 = vmul.f32 %v4533_v17, %v5674_v57  ;;  %v798_v1 = vsel %vm487_vm4, %v734_v38, %v4537_v28 }
 0x17a   : > { %v1467_v60 = vadd.f32 %v1455_v46, %v917_v32  ;;  %v810_v10 = vadd.f32 %v4533_v17, %v798_v1  ;;  %v954_v29 = vmul.f32 %v734_v38, %v734_v38  ;;  %v1038_v50 = vmul.f32 %v734_v38, %v4477_v44  ;;  %v2276_v1 = vpop.xlane.xlu1 %2275 }
 0x17b   : > { %5688 = vst [vmem:[#allocation105_spill] sm:$0xff] %v4614_v48  ;;  %v822_v25 = vsel %vm488_vm5, %v4537_v28, %v734_v38  ;;  %v929_v7 = vmul.f32 %v4549_v36, %v4549_v36  ;;  %v733_v30 = vsel %vm614_vm3, %v708_v16, %v4549_v36  ;;  %v4630_v40 = vadd.f32 %v1199_v9, %v1154_v41  ;;  %v2279_v38 = vpop.xlane.xlu0 %2278 }
 0x17c   : > { %v4632_v45 = vpop.eup %2969  ;;  %v834_v46 = vadd.f32 %v822_v25, %v810_v10  ;;  %v966_v32 = vsel %vm487_vm4, %v954_v29, %v942_v27  ;;  %v1050_v44 = vsel %vm487_vm4, %v1038_v50, %v1026_v42  ;;  %v1013_v28 = vmul.f32 %v4549_v36, %v5679_v35 }
 0x17d   : > { %v978_v33 = vadd.f32 %v966_v32, %v930_v54  ;;  %v990_v16 = vsel %vm488_vm5, %v942_v27, %v954_v29  ;;  %v1062_v9 = vadd.f32 %v1050_v44, %v1014_v8  ;;  %v797_v41 = vsel %vm487_vm4, %v733_v30, %v4553_v56 }
 0x17e   : > { %v1074_v10 = vsel %vm488_vm5, %v1026_v42, %v1038_v50  ;;  %v1293_v25 = vrot.slane %v834_v46, 1  ;;  %v809_v3 = vadd.f32 %v4549_v36, %v797_v41  ;;  %v821_v62 = vsel %vm488_vm5, %v4553_v56, %v733_v30  ;;  %v2310_v63 = vpop.permute.xlu1 %2309 }
 0x17f   : > { %v4651_v43 = vpop.eup %2971  ;;  %v4653_v54 = vadd.f32 %v990_v16, %v978_v33  ;;  %v1086_v27 = vadd.f32 %v1074_v10, %v1062_v9  ;;  %v953_v8 = vmul.f32 %v733_v30, %v733_v30  ;;  %v1037_v29 = vmul.f32 %v733_v30, %v4510_v31 }
 0x180   : > { %5689 = vst [vmem:[#allocation106_spill] sm:$0xff] %v4651_v43  ;;  %v4656_v32 = vpop.eup %2973  ;;  %v1257_v44 = vrot.slane %v834_v46, 7  ;;  %v4659_v42 = vsel %vm1136_vm7, %v1293_v25, %v834_v46  ;;  %v833_v50 = vadd.f32 %v821_v62, %v809_v3  ;;  %v4661_v41 = vadd.f32 %v1467_v60, %v1426_v12  ;;  %v2282_v12 = vpop.xlane.xlu0 %2281 }
 0x181   : > { %5690 = vst [vmem:[#allocation107_spill] sm:$0xff] %v4659_v42  ;;  %v1521_v56 = vrot.slane %v4653_v54, 7  ;;  %v1557_v43 = vrot.slane %v4653_v54, 1  ;;  %v1689_v33 = vrot.slane %v1086_v27, 1  ;;  %v4667_v16 = vmul.f32 %v4630_v40, %v4630_v40 }
 0x182   : > { %v1653_v31 = vrot.slane %v1086_v27, 7  ;;  %v965_v30 = vsel %vm487_vm4, %v953_v8, %v941_v26  ;;  %v989_v62 = vsel %vm488_vm5, %v941_v26, %v953_v8  ;;  %v1049_v3 = vsel %vm487_vm4, %v1037_v29, %v1025_v13 }
 0x183   : > { %v4677_v60 = vsel %vm1136_vm7, %v1557_v43, %v4653_v54  ;;  %v977_v9 = vadd.f32 %v965_v30, %v929_v7  ;;  %v1061_v10 = vadd.f32 %v1049_v3, %v1013_v28  ;;  %v1073_v11 = vsel %vm488_vm5, %v1025_v13, %v1037_v29  ;;  %v2314_v3 = vpop.permute.xlu1 %2313 }
 0x184   : > { %5691 = vst [vmem:[#allocation108_spill] sm:$0xff] %v4677_v60  ;;  %v4682_v59 = vsel %vm1136_vm7, %v1689_v33, %v1086_v27  ;;  %v1256_v20 = vrot.slane %v833_v50, 7  ;;  %v1292_v34 = vrot.slane %v833_v50, 1  ;;  %v2283_v26 = vadd.f32 %v2276_v1, %v4597_v4 }
 0x185   : > { %5692 = vst [vmem:[#allocation109_spill] sm:$0xff] %v4682_v59  ;;  %v1001_v8 = vadd.f32 %v989_v62, %v977_v9  ;;  %v1085_v23 = vadd.f32 %v1073_v11, %v1061_v10  ;;  %v2290_v19 = vadd.f32 %v2282_v12, %v2279_v38  ;;  %v2321_v7 = vsel %vm614_vm3, %v2310_v63, %v4686_v2  ;;  %v4698_v38 = vld [vmem:[%s3272_s14 + $0x10] sm:$0xff] }
 0x186   : > { %v4691_v28 = vsel %vm1099_vm6, %v1256_v20, %v1257_v44  ;;  %v1276_v13 = vsel %vm1099_vm6, %v833_v50, %v1256_v20  ;;  %v1294_v29 = vsel %vm1136_vm7, %v1292_v34, %v1293_v25  ;;  %v2284_v30 = vrot.slane %v2283_v26, 4 }
 0x187   : > { %5693 = vst [vmem:[#allocation110_spill] sm:$0xff] %v4691_v28  ;;  %v1323_v4 = vsel %vm489_vm8, %v1294_v29, %v1276_v13  ;;  %v1520_v1 = vrot.slane %v1001_v8, 7  ;;  %v1556_v11 = vrot.slane %v1001_v8, 1  ;;  %v2323_v62 = vsel %vm614_vm3, %v2314_v3, %v4698_v38 }
 0x188   : > { %v1335_v63 = vadd.f32 %v1323_v4, %v833_v50  ;;  %v1652_v12 = vrot.slane %v1085_v23, 7  ;;  %v1688_v44 = vrot.slane %v1085_v23, 1  ;;  %v2285_v9 = vadd.f32 %v2284_v30, %v2283_v26 }
 0x189   : > { %v4703_v20 = vadd.f32 %v4691_v28, %v834_v46  ;;  %v1540_v34 = vsel %vm1099_vm6, %v1001_v8, %v1520_v1  ;;  %v1558_v25 = vsel %vm1136_vm7, %v1556_v11, %v1557_v43  ;;  %v2291_v10 = vrot.slane %v2290_v19, 4 }
 0x18a   : > { %v1359_v13 = vadd.f32 %v1335_v63, %v1294_v29  ;;  %v4708_v59 = vsel %vm1099_vm6, %v1520_v1, %v1521_v56  ;;  %v1587_v60 = vsel %vm489_vm8, %v1558_v25, %v1540_v34  ;;  %v4713_v50 = vsel %vm1099_vm6, %v1652_v12, %v1653_v31 }
 0x18b   : > { %5694 = vst [vmem:[#allocation111_spill] sm:$0xff] %v4703_v20  ;;  %5695 = vst [vmem:[#allocation112_spill] sm:$0xff] %v4708_v59  ;;  %v1599_v3 = vadd.f32 %v1587_v60, %v1001_v8  ;;  %v1672_v26 = vsel %vm1099_vm6, %v1085_v23, %v1652_v12  ;;  %v1690_v46 = vsel %vm1136_vm7, %v1688_v44, %v1689_v33  ;;  %v2286_v4 = vrot.slane %v2285_v9, 2  ;;  %v2312_v8 = vpop.permute.xlu0 %2311 }
 0x18c   : > { %5696 = vst [vmem:[#allocation113_spill] sm:$0xff] %v4713_v50  ;;  %v4718_v30 = vadd.f32 %v4713_v50, %v1086_v27  ;;  %v1719_v43 = vsel %vm489_vm8, %v1690_v46, %v1672_v26  ;;  %v1767_v56 = vmul.f32 %v1359_v13, %v4630_v40  ;;  %v1791_v29 = vmul.f32 %v1359_v13, %v1359_v13  ;;  %v3019_v13 = vld [vmem:[%s3272_s14 + $0x8] sm:$0xff] }
 0x18d   : > { %v1623_v1 = vadd.f32 %v1599_v3, %v1558_v25  ;;  %v1731_v11 = vadd.f32 %v1719_v43, %v1085_v23  ;;  %v2292_v31 = vadd.f32 %v2291_v10, %v2290_v19  ;;  %v2325_v60 = vsub.f32 %v4686_v2, %v2321_v7  ;;  %v2316_v25 = vpop.permute.xlu1 %2315  ;;  %v5706_v50 = vld [vmem:[#allocation11_spill] sm:$0xff] }
 0x18e   : > { %5697 = vst [vmem:[#allocation114_spill] sm:$0xff] %v4718_v30  ;;  %v4726_v33 = vadd.f32 %v4708_v59, %v4653_v54  ;;  %v1803_v27 = vmul.f32 2.0, %v1767_v56  ;;  %v1863_v63 = vadd.f32 %v1791_v29, %v4667_v16  ;;  %v2287_v12 = vadd.f32 %v2286_v4, %v2285_v9  ;;  %v3020_v4 = vld [vmem:[%s3272_s14 + $0x18] sm:$0xff] }
 0x18f   : > { %v1755_v44 = vadd.f32 %v1731_v11, %v1690_v46  ;;  %v1887_v40 = vadd.f32 %v1623_v1, %v4661_v41  ;;  %v2293_v34 = vrot.slane %v2292_v31, 2  ;;  %v2327_v23 = vsub.f32 %v4698_v38, %v2323_v62 }
 0x190   : > { %5698 = vst [vmem:[#allocation115_spill] sm:$0xff] %v4726_v33  ;;  %v4731_v19 = vadd.f32 0.0081, %v1803_v27  ;;  %v2288_v7 = vrot.slane %v2287_v12, 1  ;;  %v4733_v10 = vand.u32 2147483647, %v2325_v60  ;;  %v2322_v54 = vsel %vm614_vm3, %v2312_v8, %v3019_v13 }
 0x191   : > { %v1827_v3 = vmul.f32 18.0, %v1755_v44  ;;  %v1875_v26 = vadd.f32 0.0081, %v1863_v63  ;;  %v1899_v43 = vmul.f32 9.0, %v1887_v40  ;;  %v2294_v9 = vadd.f32 %v2293_v34, %v2292_v31 }
 0x192   : > { %5699 = vst [vmem:[#allocation116_spill] sm:$0xff] %v4731_v19  ;;  %v2289_v46 = vadd.f32 %v2288_v7, %v2287_v12  ;;  %v2326_v56 = vsub.f32 %v3019_v13, %v2322_v54  ;;  %v2324_v41 = vsel %vm614_vm3, %v2316_v25, %v3020_v4  ;;  %v4741_v30 = vand.u32 2147483647, %v2327_v23 }
 0x193   : > { %v1839_v62 = vsub.f32 %v1827_v3, %v1803_v27  ;;  %v1911_v1 = vsub.f32 %v1899_v43, %v4667_v16  ;;  %v2295_v11 = vrot.slane %v2294_v9, 1  ;;  %v2328_v60 = vsub.f32 %v3020_v4, %v2324_v41 }
 0x194   : > { %v2297_v19 = vmul.f32 0.00390625, %v2289_v46  ;;  %v4743_v8 = vand.u32 2147483647, %v2326_v56  ;;  %v4746_v63 = vadd.s32 8, %v3305_v55  ;;  %v5701_v40 = vmov 0.0  }
 0x195   : > { %v4748_v31 = vadd.f32 0.0729, %v1839_v62  ;;  %v1923_v12 = vsub.f32 %v1911_v1, %v1791_v29  ;;  %v2296_v44 = vadd.f32 %v2295_v11, %v2294_v9  ;;  %v4751_v34 = vsel %vm502_vm9, 1.0, %v5701_v40 }
 0x196   : > { %v2299_v27 = vadd.f32 1e-07, %v2297_v19  ;;  %v4753_v25 = vand.u32 2147483647, %v2328_v60  ;;  %vm510_vm10 = vcmp.lt.s32.totalorder %v4746_v63, 15  ;;  %v2337_v16 = vrot.slane %v4686_v2, 1 }
 0x197   : > { %5700 = vst [vmem:[#allocation117_spill] sm:$0xff] %v4748_v31  ;;  %v1935_v23 = vadd.f32 0.0729, %v1923_v12  ;;  %v2298_v7 = vmul.f32 0.00390625, %v2296_v44  ;;  %vm512_vm11 = vmand %vm510_vm10, %vm493_vm0  ;;  %v2338_v54 = vrot.slane %v3019_v13, 1  ;;  %v2340_v3 = vrot.slane %v4698_v38, 1 }
 0x198   : > { %2975 = vrcp.f32 %v2299_v27  ;;  %v4761_v29 = vsel %vm512_vm11, 1.0, %v5701_v40  ;;  %v2341_v43 = vrot.slane %v3020_v4, 1  ;;  %v5702_v19 = vld [vmem:[#allocation6_spill] sm:$0xff]  ;;  %v5703_v40 = vld [vmem:[#allocation7_spill] sm:$0xff]  ;;  %v5705_v31 = vld [vmem:[#allocation9_spill] sm:$0xff]  ;;  %vm492_vm12 = vcmp.eq.s32.totalorder %v4746_v63, 15 }
 0x199   : > { %v2409_v9 = vrot.slane %v5702_v19, 1  ;;  %v1959_v46 = vmul.f32 %v1935_v23, %v1875_v26  ;;  %v2300_v56 = vadd.f32 1e-07, %v2298_v7  ;;  %v2339_v41 = vsel %vm1136_vm7, %v2337_v16, %v2338_v54  ;;  %v5704_v7 = vld [vmem:[#allocation8_spill] sm:$0xff] }
 0x19a   : > { %v2347_v62 = vsel %vm1136_vm7, %v2338_v54, %v3019_v13  ;;  %v2342_v1 = vsel %vm1136_vm7, %v2340_v3, %v2341_v43  ;;  %v2348_v11 = vsel %vm1136_vm7, %v2341_v43, %v3020_v4  ;;  %v2349_v60 = vsub.f32 %v4686_v2, %v2339_v41 }
 0x19b   : > { %v2350_v12 = vsub.f32 %v3019_v13, %v2347_v62  ;;  %2977 = vrcp.f32 %v1959_v46  ;;  %v2351_v44 = vsub.f32 %v4698_v38, %v2342_v1  ;;  %v2352_v27 = vsub.f32 %v3020_v4, %v2348_v11  ;;  %v5707_v13 = vld [vmem:[#allocation12_spill] sm:$0xff]  ;;  %v5708_v4 = vld [vmem:[#allocation10_spill] sm:$0xff] }
 0x19c   : > { %v2410_v55 = vrot.slane %v5703_v40, 1  ;;  %2979 = vrcp.f32 %v2300_v56  ;;  %v2353_v26 = vand.u32 2147483647, %v2349_v60  ;;  %v2412_v16 = vrot.slane %v5704_v7, 1 }
 0x19d   : > { %v2354_v23 = vand.u32 2147483647, %v2350_v12  ;;  %v2355_v37 = vand.u32 2147483647, %v2351_v44  ;;  %v2356_v54 = vand.u32 2147483647, %v2352_v27 }
 0x19e   : > { %v2411_v3 = vsel %vm1136_vm7, %v2409_v9, %v2410_v55  ;;  %v2413_v43 = vrot.slane %v5705_v31, 1  ;;  %v2415_v2 = vrot.slane %v5706_v50, 1  ;;  %v2416_v46 = vrot.slane %v5707_v13, 1 }
 0x19f   : > { %v2418_v38 = vrot.slane %v3196_v14, 1  ;;  %v2419_v41 = vrot.slane %v5708_v4, 1  ;;  %v2421_v62 = vrot.slane %v3213_v21, 1  ;;  %v2422_v1 = vrot.slane %v3215_v22, 1 }
 0x1a0   : > { %v2414_v56 = vsel %vm1136_vm7, %v2412_v16, %v2413_v43  ;;  %v2424_v11 = vrot.slane %v5679_v35, 1  ;;  %v2417_v9 = vsel %vm1136_vm7, %v2415_v2, %v2416_v46  ;;  %v2425_v12 = vrot.slane %v5674_v57, 1 }
 0x1a1   : > { %v2420_v60 = vsel %vm1136_vm7, %v2418_v38, %v2419_v41  ;;  %v2439_v44 = vsel %vm1136_vm7, %v2410_v55, %v5703_v40  ;;  %v2423_v27 = vsel %vm1136_vm7, %v2421_v62, %v2422_v1  ;;  %v2440_v16 = vsel %vm1136_vm7, %v2413_v43, %v5705_v31 }
 0x1a2   : > { %v2441_v33 = vsel %vm1136_vm7, %v2416_v46, %v5707_v13  ;;  %v2442_v59 = vsel %vm1136_vm7, %v2419_v41, %v5708_v4  ;;  %v2426_v2 = vsel %vm1136_vm7, %v2424_v11, %v2425_v12  ;;  %v2443_v38 = vsel %vm1136_vm7, %v2422_v1, %v3215_v22 }
 0x1a3   : > { %v2444_v0 = vsel %vm1136_vm7, %v2425_v12, %v5674_v57  ;;  %v2445_v55 = vsub.f32 %v5702_v19, %v2411_v3  ;;  %v2446_v62 = vsub.f32 %v5703_v40, %v2439_v44  ;;  %v2447_v43 = vsub.f32 %v5704_v7, %v2414_v56 }
 0x1a4   : > { %v2448_v46 = vsub.f32 %v5705_v31, %v2440_v16  ;;  %v2449_v15 = vsub.f32 %v5706_v50, %v2417_v9  ;;  %v2450_v41 = vsub.f32 %v5707_v13, %v2441_v33  ;;  %v2451_v11 = vsub.f32 %v3196_v14, %v2420_v60 }
 0x1a5   : > { %v2452_v1 = vsub.f32 %v5708_v4, %v2442_v59  ;;  %v2453_v12 = vsub.f32 %v3213_v21, %v2423_v27  ;;  %v2976_v48 = vpop.eup %2975  ;;  %v2454_v3 = vsub.f32 %v3215_v22, %v2443_v38  ;;  %v2455_v44 = vsub.f32 %v5679_v35, %v2426_v2  ;;  %v4821_v38 = vld [vmem:[%s3145_s24] sm:$0xff] }
 0x1a6   : > { %v2456_v56 = vsub.f32 %v5674_v57, %v2444_v0  ;;  %v2457_v53 = vand.u32 2147483647, %v2445_v55  ;;  %v2333_v16 = vmul.f32 %v2976_v48, %v4733_v10  ;;  %v2334_v9 = vmul.f32 %v2976_v48, %v4743_v8  ;;  %v5710_v10 = vld [vmem:[#allocation19_spill] sm:$0xff]  ;;  %v5711_v8 = vld [vmem:[#allocation69_spill] sm:$0xff] }
 0x1a7   : > { %v4813_v33 = vmul.f32 %v2976_v48, %v2353_v26  ;;  %v4815_v60 = vmul.f32 %v2976_v48, %v2354_v23  ;;  %v2458_v59 = vand.u32 2147483647, %v2446_v62  ;;  %v2459_v27 = vand.u32 2147483647, %v2447_v43  ;;  %v4830_v62 = vld [vmem:[%s3145_s24 + $0x8] sm:$0xff] }
 0x1a8   : > { %v2460_v61 = vand.u32 2147483647, %v2448_v46  ;;  %v4825_v2 = vpop.eup %2977  ;;  %v2505_v55 = vmul.f32 %v5710_v10, %v2333_v16  ;;  %v2506_v26 = vmul.f32 %v5711_v8, %v2334_v9  ;;  %v2461_v20 = vand.u32 2147483647, %v2449_v15 }
 0x1a9   : > { %5709 = vst [vmem:[#allocation6_spill] sm:$0xff] %v4825_v2  ;;  %v2462_v48 = vand.u32 2147483647, %v2450_v41  ;;  %v2980_v23 = vpop.eup %2979  ;;  %v2463_v18 = vand.u32 2147483647, %v2451_v11  ;;  %v2034_v43 = vsub.f32 %v5703_v40, %v4830_v62 }
 0x1aa   : > { %v2464_v47 = vand.u32 2147483647, %v2452_v1  ;;  %v2465_v28 = vand.u32 2147483647, %v2453_v12  ;;  %v2335_v46 = vmul.f32 %v2980_v23, %v4741_v30  ;;  %v2336_v0 = vmul.f32 %v2980_v23, %v4753_v25 }
 0x1ab   : > { %v2509_v2 = vmul.f32 %v4751_v34, %v2505_v55  ;;  %v2510_v16 = vmul.f32 %v4751_v34, %v2506_v26  ;;  %v4838_v9 = vmul.f32 %v2980_v23, %v2355_v37  ;;  %v4840_v15 = vmul.f32 %v2980_v23, %v2356_v54 }
 0x1ac   : > { %v2466_v41 = vand.u32 2147483647, %v2454_v3  ;;  %v2467_v11 = vand.u32 2147483647, %v2455_v44  ;;  %v2507_v1 = vmul.f32 %v4656_v32, %v2335_v46  ;;  %v2508_v12 = vmul.f32 %v4632_v45, %v2336_v0 }
 0x1ad   : > { %v2513_v10 = vsel %vm2113_vm1, %v2509_v2, 0.0  ;;  %v2514_v30 = vsel %vm2113_vm1, %v2510_v16, 0.0  ;;  %v2468_v8 = vand.u32 2147483647, %v2456_v56  ;;  %v2469_v55 = vsel %vm2113_vm1, %v2457_v53, 0.0 }
 0x1ae   : > { %v2515_v25 = vadd.f32 %v2514_v30, %v2513_v10  ;;  %v2470_v37 = vsel %vm2113_vm1, %v2459_v27, 0.0  ;;  %v2511_v26 = vmul.f32 %v4751_v34, %v2507_v1  ;;  %v2512_v54 = vmul.f32 %v4751_v34, %v2508_v12  ;;  %v3023_v12 = vld [vmem:[%s3145_s24 + $0x10] sm:$0xff] }
 0x1af   : > { %v2471_v3 = vadd.f32 %v2470_v37, %v2469_v55  ;;  %v2472_v32 = vsel %vm2113_vm1, %v2461_v20, 0.0  ;;  %v2474_v45 = vsel %vm2113_vm1, %v2458_v59, 0.0  ;;  %v2475_v44 = vsel %vm2113_vm1, %v2460_v61, 0.0 }
 0x1b0   : > { %v2477_v56 = vsel %vm2113_vm1, %v2462_v48, 0.0  ;;  %v2479_v53 = vsel %vm2113_vm1, %v2463_v18, 0.0  ;;  %v2516_v27 = vsel %vm2113_vm1, %v2511_v26, 0.0  ;;  %v2518_v0 = vsel %vm2113_vm1, %v2512_v54, 0.0  ;;  %v3026_v54 = vld [vmem:[%s3145_s24 + $0x28] sm:$0xff] }
 0x1b1   : > { %v2473_v34 = vadd.f32 %v2472_v32, %v2471_v3  ;;  %v2476_v2 = vadd.f32 %v2475_v44, %v2474_v45  ;;  %v2517_v23 = vadd.f32 %v2516_v27, %v2515_v25  ;;  %v2480_v20 = vsel %vm2113_vm1, %v2465_v28, 0.0  ;;  %v3024_v25 = vld [vmem:[%s3145_s24 + $0x18] sm:$0xff]  ;;  %v3027_v32 = vld [vmem:[%s3145_s24 + $0x30] sm:$0xff] }
 0x1b2   : > { %v2482_v59 = vsel %vm2113_vm1, %v2467_v11, 0.0  ;;  %v2484_v61 = vsel %vm2113_vm1, %v2464_v47, 0.0  ;;  %v2481_v18 = vadd.f32 %v2480_v20, %v2479_v53  ;;  %v2485_v46 = vsel %vm2113_vm1, %v2466_v41, 0.0  ;;  %v3028_v53 = vld [vmem:[%s3145_s24 + $0x38] sm:$0xff]  ;;  %v3030_v20 = vld [vmem:[%s3145_s24 + $0x48] sm:$0xff] }
 0x1b3   : > { %v2478_v48 = vadd.f32 %v2477_v56, %v2476_v2  ;;  %v2487_v16 = vsel %vm2113_vm1, %v2468_v8, 0.0  ;;  %v2519_v28 = vadd.f32 %v2518_v0, %v2517_v23  ;;  %v2486_v1 = vadd.f32 %v2485_v46, %v2484_v61  ;;  %v3025_v8 = vld [vmem:[%s3145_s24 + $0x20] sm:$0xff] }
 0x1b4   : > { %v2489_v11 = vmul.f32 0.33333334, %v2473_v34  ;;  %v2035_v47 = vsub.f32 %v5704_v7, %v3023_v12  ;;  %v2483_v10 = vadd.f32 %v2482_v59, %v2481_v18  ;;  %v2036_v41 = vsub.f32 %v5705_v31, %v3024_v25  ;;  %v3029_v0 = vld [vmem:[%s3145_s24 + $0x40] sm:$0xff]  ;;  %v473_v25 = vld [vmem:[%s4881_s18 + $0x18] sm:$0xff] }
 0x1b5   : > { %v2490_v30 = vmul.f32 0.33333334, %v2478_v48  ;;  %v2037_v55 = vsub.f32 %v5706_v50, %v3025_v8  ;;  %2520 = vadd.xlane.f32.xlu0 %v2519_v28  ;;  %v2488_v37 = vadd.f32 %v2487_v16, %v2486_v1  ;;  %v2038_v3 = vsub.f32 %v5707_v13, %v3026_v54  ;;  %v470_v46 = vld [vmem:[%s4881_s18] sm:$0xff]  ;;  %v475_v8 = vld [vmem:[%s425_s23 + $0x8] sm:$0xff] }
 0x1b6   : > { %v2530_v26 = vsub.f32 0.0, %v2489_v11  ;;  %v2039_v45 = vsub.f32 %v3196_v14, %v3027_v32  ;;  %v2491_v44 = vmul.f32 0.33333334, %v2483_v10  ;;  %v2040_v27 = vsub.f32 %v5708_v4, %v3028_v53  ;;  %v474_v12 = vld [vmem:[%s425_s23] sm:$0xff] }
 0x1b7   : > { %v2531_v56 = vsub.f32 0.0, %v2490_v30  ;;  %v2041_v34 = vsub.f32 %v3213_v21, %v3029_v0  ;;  %v2492_v2 = vmul.f32 0.33333334, %v2488_v37  ;;  %v2042_v59 = vsub.f32 %v3215_v22, %v3030_v20  ;;  %v476_v37 = vld [vmem:[%s425_s23 + $0x10] sm:$0xff] }
 0x1b8   : > { %v2534_v23 = vmul.f32 1.442695, %v2530_v26  ;;  %v2043_v61 = vsub.f32 %v5679_v35, %v4549_v36  ;;  %v2532_v48 = vsub.f32 0.0, %v2491_v44  ;;  %v2044_v16 = vsub.f32 %v5674_v57, %v4533_v17  ;;  %v471_v17 = vld [vmem:[%s4881_s18 + $0x8] sm:$0xff]  ;;  %v477_v26 = vld [vmem:[%s425_s23 + $0x18] sm:$0xff] }
 0x1b9   : > { %v2536_v18 = vmul.f32 1.442695, %v2531_v56  ;;  %v5712_v28 = vsub.f32 %v5702_v19, %v4821_v38  ;;  %v2533_v11 = vsub.f32 0.0, %v2492_v2  ;;  %v4911_v10 = vand.u32 2147483647, %v2034_v43  ;;  %v472_v38 = vld [vmem:[%s4881_s18 + $0x10] sm:$0xff] }
 0x1ba   : > { %2981 = vpow2.f32 %v2534_v23  ;;  %v4913_v36 = vand.u32 2147483647, %v2035_v47  ;;  %v2538_v30 = vmul.f32 1.442695, %v2532_v48  ;;  %v4923_v54 = vand.u32 2147483647, %v2036_v41 }
 0x1bb   : > { %v4906_v1 = vand.u32 2147483647, %v5712_v28  ;;  %5714 = vst [vmem:[#allocation8_spill] sm:$0xff] %v4911_v10  ;;  %2983 = vpow2.f32 %v2536_v18  ;;  %v4925_v62 = vand.u32 2147483647, %v2037_v55  ;;  %v2057_v44 = vsub.f32 %v474_v12, %v470_v46  ;;  %v4942_v2 = vld [vmem:[%s4918_s26] sm:$0xff]  }
 0x1bc   : > { %5715 = vst [vmem:[#allocation9_spill] sm:$0xff] %v4913_v36  ;;  %5716 = vst [vmem:[#allocation11_spill] sm:$0xff] %v4923_v54  ;;  %v2540_v43 = vmul.f32 1.442695, %v2533_v11  ;;  %v4927_v47 = vand.u32 2147483647, %v2038_v3  ;;  %2985 = vpow2.f32 %v2538_v30  ;;  %v2058_v3 = vsub.f32 %v475_v8, %v471_v17 }
 0x1bd   : > { %5713 = vst [vmem:[#allocation7_spill] sm:$0xff] %v4906_v1  ;;  %5717 = vst [vmem:[#allocation12_spill] sm:$0xff] %v4925_v62  ;;  %v4929_v32 = vand.u32 2147483647, %v2039_v45  ;;  %v4931_v56 = vand.u32 2147483647, %v2040_v27  ;;  %v2059_v45 = vsub.f32 %v476_v37, %v472_v38  ;;  %v2060_v23 = vsub.f32 %v477_v26, %v473_v25 }
 0x1be   : > { %5718 = vst [vmem:[#allocation10_spill] sm:$0xff] %v4927_v47  ;;  %v4933_v53 = vand.u32 2147483647, %v2041_v34  ;;  %v4935_v0 = vand.u32 2147483647, %v2042_v59  ;;  %2987 = vpow2.f32 %v2540_v43  ;;  %v2065_v27 = vadd.f32 %v474_v12, %v470_v46  ;;  %v4947_v34 = vld [vmem:[%s4918_s26 + $0x8] sm:$0xff]  }
 0x1bf   : > { %5719 = vst [vmem:[#allocation19_spill] sm:$0xff] %v4929_v32  ;;  %v4937_v41 = vand.u32 2147483647, %v2043_v61  ;;  %v4939_v55 = vand.u32 2147483647, %v2044_v16  ;;  %v2066_v59 = vadd.f32 %v475_v8, %v471_v17  ;;  %v2067_v18 = vadd.f32 %v476_v37, %v472_v38  ;;  %v4952_v61 = vld [vmem:[%s4918_s26 + $0x10] sm:$0xff]  }
 0x1c0   : > { %v4944_v20 = vand.u32 2147483647, %v2057_v44  ;;  %v4949_v48 = vand.u32 2147483647, %v2058_v3  ;;  %v2068_v28 = vadd.f32 %v477_v26, %v473_v25  ;;  %v4955_v16 = vld [vmem:[%s4918_s26 + $0x18] sm:$0xff]   ;;  %v4958_v11 = vld [vmem:[%s4918_s26 + $0x20] sm:$0xff]   ;;  %v2839_v46 = vunpack.c.l.bf16 %v4942_v2 }
 0x1c1   : > { %v4960_v30 = vand.u32 2147483647, %v2059_v45  ;;  %v4962_v43 = vand.u32 2147483647, %v2060_v23  ;;  %v2069_v44 = vand.u32 2147483647, %v2065_v27  ;;  %v2843_v25 = vunpack.c.l.bf16 %v4947_v34 }
 0x1c2   : > { %v2070_v12 = vand.u32 2147483647, %v2066_v59  ;;  %v2071_v3 = vand.u32 2147483647, %v2067_v18  ;;  %v2072_v42 = vand.u32 2147483647, %v2068_v28  ;;  %v2844_v8 = vunpack.c.h.bf16 %v4947_v34 }
 0x1c3   : > { %v2073_v38 = vadd.f32 1e-12, %v2069_v44  ;;  %v2847_v37 = vunpack.c.l.bf16 %v4952_v61  ;;  %v4970_v26 = vld [vmem:[%s4918_s26 + $0x28] sm:$0xff]   ;;  %v2848_v27 = vunpack.c.h.bf16 %v4952_v61  ;;  %v2851_v59 = vunpack.c.l.bf16 %v4955_v16 }
 0x1c4   : > { %v2074_v45 = vadd.f32 1e-12, %v2070_v12  ;;  %v2075_v23 = vadd.f32 1e-12, %v2071_v3  ;;  %v2076_v51 = vadd.f32 1e-12, %v2072_v42  ;;  %v2852_v18 = vunpack.c.h.bf16 %v4955_v16 }
 0x1c5   : > { %2989 = vrcp.f32 %v2073_v38  ;;  %v2855_v28 = vunpack.c.l.bf16 %v4958_v11  ;;  %v2856_v44 = vunpack.c.h.bf16 %v4958_v11  ;;  %v2114_v42 = vsel %vm2113_vm1, %v4906_v1, 0.0 }
 0x1c6   : > { %2991 = vrcp.f32 %v2074_v45  ;;  %v2115_v61 = vsel %vm2113_vm1, %v4913_v36, 0.0  ;;  %v2117_v16 = vsel %vm2113_vm1, %v4925_v62, 0.0  ;;  %v2119_v38 = vsel %vm2113_vm1, %v4911_v10, 0.0  ;;  %v5720_v36 = vld [vmem:[#allocation16_spill] sm:$0xff] }
 0x1c7   : > { %v2982_v49 = vpop.eup %2981  ;;  %2993 = vrcp.f32 %v2075_v23  ;;  %v2116_v11 = vadd.f32 %v2115_v61, %v2114_v42  ;;  %v2120_v23 = vsel %vm2113_vm1, %v4923_v54, 0.0  ;;  %v2122_v17 = vsel %vm2113_vm1, %v4927_v47, 0.0 }
 0x1c8   : > { %v2984_v12 = vpop.eup %2983  ;;  %v2542_v3 = vmul.f32 %v2982_v49, %v4813_v33  ;;  %2995 = vrcp.f32 %v2076_v51  ;;  %v2124_v34 = vsel %vm2113_vm1, %v4929_v32, 0.0  ;;  %v2121_v51 = vadd.f32 %v2120_v23, %v2119_v38 }
 0x1c9   : > { %v2543_v45 = vmul.f32 %v2984_v12, %v4815_v60  ;;  %v2986_v62 = vpop.eup %2985  ;;  %v2118_v49 = vadd.f32 %v2117_v16, %v2116_v11  ;;  %v2125_v33 = vsel %vm2113_vm1, %v4933_v53, 0.0  ;;  %v2127_v47 = vsel %vm2113_vm1, %v4937_v41, 0.0 }
 0x1ca   : > { %v2546_v1 = vmul.f32 %v5720_v36, %v2542_v3  ;;  %v2544_v60 = vmul.f32 %v2986_v62, %v4838_v9  ;;  %v2126_v12 = vadd.f32 %v2125_v33, %v2124_v34  ;;  %v2123_v10 = vadd.f32 %v2122_v17, %v2121_v51 }
 0x1cb   : > { %v2988_v42 = vpop.eup %2987  ;;  %v2547_v61 = vmul.f32 %v4761_v29, %v2543_v45  ;;  %v2129_v16 = vsel %vm2113_vm1, %v4931_v56, 0.0  ;;  %v2130_v9 = vsel %vm2113_vm1, %v4935_v0, 0.0  ;;  %v5015_v45 = vmul.f32 0.33333334, %v2118_v49 }
 0x1cc   : > { %v2545_v54 = vmul.f32 %v2988_v42, %v4840_v15  ;;  %v2550_v32 = vsel %vm2113_vm1, %v2546_v1, 0.0  ;;  %v2548_v3 = vmul.f32 %v5720_v36, %v2544_v60  ;;  %v2128_v38 = vadd.f32 %v2127_v47, %v2126_v12 }
 0x1cd   : > { %v2551_v11 = vsel %vm2113_vm1, %v2547_v61, 0.0  ;;  %v2131_v15 = vadd.f32 %v2130_v9, %v2129_v16  ;;  %v2132_v1 = vsel %vm2113_vm1, %v4939_v55, 0.0  ;;  %v5017_v36 = vmul.f32 0.33333334, %v2123_v10 }
 0x1ce   : > { %v2549_v62 = vmul.f32 %v4761_v29, %v2545_v54  ;;  %v2552_v34 = vadd.f32 %v2551_v11, %v2550_v32  ;;  %v2553_v17 = vsel %vm2113_vm1, %v2548_v3, 0.0  ;;  %v2139_v47 = vsub.f32 %v5702_v19, %v2839_v46  ;;  %v5726_v11 = vld [vmem:[#allocation29_spill] sm:$0xff] }
 0x1cf   : > { %v2133_v33 = vadd.f32 %v2132_v1, %v2131_v15  ;;  %v5021_v42 = vmul.f32 0.33333334, %v2128_v38  ;;  %v5721_v29 = vunpack.c.h.bf16 %v4942_v2  ;;  %v2141_v32 = vsub.f32 %v5704_v7, %v2843_v25 }
 0x1d0   : > { %v2554_v23 = vadd.f32 %v2553_v17, %v2552_v34  ;;  %v2555_v51 = vsel %vm2113_vm1, %v2549_v62, 0.0  ;;  %v2142_v60 = vsub.f32 %v5705_v31, %v2844_v8  ;;  %v2143_v49 = vsub.f32 %v5706_v50, %v2847_v37 }
 0x1d1   : > { %v2140_v54 = vsub.f32 %v5703_v40, %v5721_v29  ;;  %v5029_v12 = vmul.f32 0.33333334, %v2133_v33  ;;  %v2144_v19 = vsub.f32 %v5707_v13, %v2848_v27  ;;  %v2145_v46 = vsub.f32 %v3196_v14, %v2851_v59 }
 0x1d2   : > { %v2990_v10 = vpop.eup %2989  ;;  %v2556_v61 = vadd.f32 %v2555_v51, %v2554_v23  ;;  %v2146_v40 = vsub.f32 %v5708_v4, %v2852_v18  ;;  %v2147_v7 = vsub.f32 %v3213_v21, %v2855_v28  ;;  %v2148_v31 = vsub.f32 %v3215_v22, %v2856_v44 }
 0x1d3   : > { %v2992_v16 = vpop.eup %2991  ;;  %v5034_v3 = vmul.f32 %v2990_v10, %v4944_v20  ;;  %v5722_v25 = vunpack.c.l.bf16 %v4970_v26  ;;  %v5723_v14 = vunpack.c.h.bf16 %v4970_v26  ;;  %v2151_v8 = vand.u32 2147483647, %v2139_v47 }
 0x1d4   : > { %v2994_v2 = vpop.eup %2993  ;;  %2557 = vadd.xlane.f32.xlu1 %v2556_v61  ;;  %v5040_v50 = vmul.f32 %v2992_v16, %v4949_v48  ;;  %v2152_v21 = vand.u32 2147483647, %v2140_v54  ;;  %v2153_v22 = vand.u32 2147483647, %v2141_v32  ;;  %v2154_v27 = vand.u32 2147483647, %v2142_v60 }
 0x1d5   : > { %v2149_v13 = vsub.f32 %v5679_v35, %v5722_v25  ;;  %v2150_v20 = vsub.f32 %v5674_v57, %v5723_v14  ;;  %v2996_v37 = vpop.eup %2995  ;;  %v5049_v4 = vmul.f32 %v2994_v2, %v4960_v30  ;;  %v2155_v48 = vand.u32 2147483647, %v2143_v49  ;;  %v5727_v57 = vld [vmem:[#allocation30_spill] sm:$0xff]  ;;  %v5730_v25 = vld [vmem:[#allocation59_spill] sm:$0xff] }
 0x1d6   : > { %v5052_v59 = vmul.f32 %v2996_v37, %v4962_v43  ;;  %v2156_v18 = vand.u32 2147483647, %v2144_v19  ;;  %v2157_v28 = vand.u32 2147483647, %v2145_v46  ;;  %v2158_v35 = vand.u32 2147483647, %v2146_v40 }
 0x1d7   : > { %5724 = vst [vmem:[#allocation69_spill] sm:$0xff] %v5049_v4  ;;  %v2159_v44 = vand.u32 2147483647, %v2147_v7  ;;  %v2160_v26 = vand.u32 2147483647, %v2148_v31  ;;  %v1206_v38 = vsel %vm492_vm12, %v5727_v57, %v5726_v11  ;;  %v2163_v62 = vsel %vm2113_vm1, %v2151_v8, 0.0 }
 0x1d8   : > { %5725 = vst [vmem:[#allocation16_spill] sm:$0xff] %v5052_v59  ;;  %v2161_v30 = vand.u32 2147483647, %v2149_v13  ;;  %v2162_v9 = vand.u32 2147483647, %v2150_v20  ;;  %v2164_v34 = vsel %vm2113_vm1, %v2153_v22, 0.0 }
 0x1d9   : > { %v2165_v43 = vadd.f32 %v2164_v34, %v2163_v62  ;;  %v2166_v15 = vsel %vm2113_vm1, %v2155_v48, 0.0  ;;  %v2168_v1 = vsel %vm2113_vm1, %v2152_v21, 0.0  ;;  %v2169_v17 = vsel %vm2113_vm1, %v2154_v27, 0.0  ;;  %v5728_v19 = vld [vmem:[#allocation40_spill] sm:$0xff]  ;;  %v5729_v46 = vld [vmem:[#allocation41_spill] sm:$0xff]  ;;  %v466_v40 = vld [vmem:[%s5067_s29] sm:$0xff] }
 0x1da   : > { %v2170_v47 = vadd.f32 %v2169_v17, %v2168_v1  ;;  %v2171_v23 = vsel %vm2113_vm1, %v2156_v18, 0.0  ;;  %v2173_v51 = vsel %vm2113_vm1, %v2157_v28, 0.0  ;;  %v2174_v33 = vsel %vm2113_vm1, %v2159_v44, 0.0  ;;  %v5731_v13 = vld [vmem:[#allocation57_spill] sm:$0xff]  ;;  %v467_v20 = vld [vmem:[%s5067_s29 + $0x8] sm:$0xff]  ;;  %v5733_v21 = vld [vmem:[#allocation18_spill] sm:$0xff] }
 0x1db   : > { %v2167_v29 = vadd.f32 %v2166_v15, %v2165_v43  ;;  %v2175_v54 = vadd.f32 %v2174_v33, %v2173_v51  ;;  %v2176_v32 = vsel %vm2113_vm1, %v2161_v30, 0.0  ;;  %v2178_v60 = vsel %vm2113_vm1, %v2158_v35, 0.0  ;;  %v5732_v37 = vld [vmem:[#allocation71_spill] sm:$0xff]  ;;  %v5734_v27 = vld [vmem:[#allocation65_spill] sm:$0xff]  ;;  %v5735_v48 = vld [vmem:[#allocation64_spill] sm:$0xff] }
 0x1dc   : > { %v2172_v49 = vadd.f32 %v2171_v23, %v2170_v47  ;;  %v2179_v10 = vsel %vm2113_vm1, %v2160_v26, 0.0  ;;  %v2181_v61 = vsel %vm2113_vm1, %v2162_v9, 0.0  ;;  %v1208_v16 = vsel %vm492_vm12, %v5729_v46, %v5728_v19  ;;  %v468_v35 = vld [vmem:[%s5067_s29 + $0x10] sm:$0xff]  ;;  %v5738_v9 = vld [vmem:[#allocation42_spill] sm:$0xff]  ;;  %v469_v15 = vld [vmem:[%s5067_s29 + $0x18] sm:$0xff] }
 0x1dd   : > { %v2177_v7 = vadd.f32 %v2176_v32, %v2175_v54  ;;  %v2180_v31 = vadd.f32 %v2179_v10, %v2178_v60  ;;  %v2183_v2 = vmul.f32 0.33333334, %v2167_v29  ;;  %v1210_v14 = vsel %vm492_vm12, %v5731_v13, %v5730_v25  ;;  %v5736_v11 = vld [vmem:[#allocation32_spill] sm:$0xff]  ;;  %v5739_v34 = vld [vmem:[#allocation58_spill] sm:$0xff]  ;;  %v5745_v32 = vld [vmem:[#allocation25_spill] sm:$0xff] }
 0x1de   : > { %v2184_v8 = vmul.f32 0.33333334, %v2172_v49  ;;  %v1212_v22 = vsel %vm492_vm12, %v5733_v21, %v5732_v37  ;;  %v1214_v18 = vsel %vm492_vm12, %v5735_v48, %v5734_v27  ;;  %v1216_v28 = vsel %vm492_vm12, %v4587_v58, %v4581_v39  ;;  %v5742_v1 = vld [vmem:[#allocation74_spill] sm:$0xff]  ;;  %v5746_v60 = vld [vmem:[#allocation23_spill] sm:$0xff] }
 0x1df   : > { %v2182_v44 = vadd.f32 %v2181_v61, %v2180_v31  ;;  %v2185_v26 = vmul.f32 0.33333334, %v2177_v7  ;;  %vm2187_vm13 = vcmp.lt.f32.partialorder %v5015_v45, %v2183_v2  ;;  %v5101_v57 = vadd.f32 %v1206_v38, %v5736_v11  ;;  %v5743_v47 = vld [vmem:[#allocation66_spill] sm:$0xff]  ;;  %v5750_v31 = vld [vmem:[#allocation95_spill] sm:$0xff] }
 0x1e0   : > { %vm2188_vm14 = vcmp.lt.f32.partialorder %v5017_v36, %v2184_v8  ;;  %v5104_v30 = vsel %vm2187_vm13, %v466_v40, 0.0  ;;  %v5107_v62 = vadd.f32 %v1208_v16, %v5738_v9  ;;  %v5110_v43 = vadd.f32 %v1210_v14, %v5739_v34  ;;  %v5747_v10 = vld [vmem:[#allocation46_spill] sm:$0xff]  ;;  %v5749_v16 = vld [vmem:[#allocation20_spill] sm:$0xff]  ;;  %v5752_v13 = vld [vmem:[#allocation107_spill] sm:$0xff] }
 0x1e1   : > { %5737 = vst [vmem:[#allocation29_spill] sm:$0xff] %v5104_v30  ;;  %v2186_v39 = vmul.f32 0.33333334, %v2182_v44  ;;  %vm2189_vm15 = vcmp.lt.f32.partialorder %v5021_v42, %v2185_v26  ;;  %v5114_v58 = vsel %vm2188_vm14, %v467_v20, 0.0  ;;  %v2608_v45 = vmul.f32 %v5104_v30, %v5034_v3  ;;  %v5748_v61 = vld [vmem:[#allocation50_spill] sm:$0xff]  ;;  %v5754_v8 = vld [vmem:[#allocation24_spill] sm:$0xff] }
 0x1e2   : > { %5740 = vst [vmem:[#allocation30_spill] sm:$0xff] %v5114_v58  ;;  %v5118_v38 = vsel %vm2189_vm15, %v468_v35, 0.0  ;;  %v2609_v36 = vmul.f32 %v5114_v58, %v5040_v50  ;;  %v5123_v17 = vadd.f32 %v1212_v22, %v5742_v1  ;;  %v5126_v23 = vadd.f32 %v1214_v18, %v5743_v47  ;;  %v5751_v2 = vld [vmem:[#allocation98_spill] sm:$0xff]  ;;  %v5755_v22 = vld [vmem:[#allocation51_spill] sm:$0xff]  ;;  %v5765_v47 = vld [vmem:[#allocation60_spill] sm:$0xff] }
 0x1e3   : > { %5741 = vst [vmem:[#allocation40_spill] sm:$0xff] %v5118_v38  ;;  %vm2190_vm0 = vcmp.lt.f32.partialorder %v5029_v12, %v2186_v39  ;;  %v2610_v42 = vmul.f32 %v5118_v38, %v5049_v4  ;;  %v2612_v51 = vsel %vm2113_vm1, %v2608_v45, 0.0  ;;  %v5133_v33 = vadd.f32 %v1216_v28, %v4595_v6  ;;  %v5753_v14 = vld [vmem:[#allocation110_spill] sm:$0xff]  ;;  %v5759_v44 = vld [vmem:[#allocation111_spill] sm:$0xff]  ;;  %v5763_v45 = vld [vmem:[#allocation44_spill] sm:$0xff] }
 0x1e4   : > { %v5135_v29 = vsel %vm2190_vm0, %v469_v15, 0.0  ;;  %v2613_v54 = vsel %vm2113_vm1, %v2609_v36, 0.0  ;;  %v1338_v49 = vsel %vm492_vm12, %v5746_v60, %v5745_v32  ;;  %v1340_v12 = vsel %vm492_vm12, %v5748_v61, %v5747_v10  ;;  %v5756_v48 = vld [vmem:[#allocation78_spill] sm:$0xff]  ;;  %v5760_v11 = vld [vmem:[#allocation31_spill] sm:$0xff]  ;;  %v5768_v60 = vld [vmem:[#allocation68_spill] sm:$0xff] }
 0x1e5   : > { %5744 = vst [vmem:[#allocation41_spill] sm:$0xff] %v5135_v29  ;;  %v2611_v19 = vmul.f32 %v5135_v29, %v5052_v59  ;;  %v2614_v46 = vadd.f32 %v2613_v54, %v2612_v51  ;;  %v2615_v6 = vsel %vm2113_vm1, %v2610_v42, 0.0  ;;  %v1342_v40 = vsel %vm492_vm12, %v4236_v24, %v5749_v16  ;;  %v5758_v28 = vld [vmem:[#allocation14_spill] sm:$0xff]  ;;  %v5762_v39 = vld [vmem:[#allocation43_spill] sm:$0xff]  ;;  %v5766_v51 = vld [vmem:[#allocation73_spill] sm:$0xff] }
 0x1e6   : > { %v1344_v7 = vsel %vm492_vm12, %v4357_v52, %v4307_v5  ;;  %v1346_v25 = vsel %vm492_vm12, %v5751_v2, %v5750_v31  ;;  %v1348_v20 = vsel %vm492_vm12, %v5753_v14, %v5752_v13  ;;  %v1350_v37 = vadd.f32 %v1338_v49, %v5754_v8  ;;  %v5757_v5 = vld [vmem:[#allocation88_spill] sm:$0xff]  ;;  %v5761_v9 = vld [vmem:[#allocation34_spill] sm:$0xff]  ;;  %v5769_v49 = vld [vmem:[#allocation67_spill] sm:$0xff] }
 0x1e7   : > { %v2616_v21 = vadd.f32 %v2615_v6, %v2614_v46  ;;  %v2617_v24 = vsel %vm2113_vm1, %v2611_v19, 0.0  ;;  %v1352_v27 = vadd.f32 %v1340_v12, %v5755_v22  ;;  %v1354_v18 = vadd.f32 %v1342_v40, %v5756_v48  ;;  %v5764_v1 = vld [vmem:[#allocation62_spill] sm:$0xff]  ;;  %v5767_v54 = vld [vmem:[#allocation76_spill] sm:$0xff]  ;;  %v5770_v61 = vld [vmem:[#allocation103_spill] sm:$0xff] }
 0x1e8   : > { %v1356_v52 = vadd.f32 %v1344_v7, %v5757_v5  ;;  %v1358_v35 = vadd.f32 %v1346_v25, %v5758_v28  ;;  %v1360_v26 = vadd.f32 %v1348_v20, %v5759_v44  ;;  %v1470_v34 = vsel %vm492_vm12, %v5761_v9, %v5760_v11  ;;  %v5771_v12 = vld [vmem:[#allocation104_spill] sm:$0xff]  ;;  %v5772_v46 = vld [vmem:[#allocation35_spill] sm:$0xff]  ;;  %v5773_v16 = vld [vmem:[#allocation45_spill] sm:$0xff] }
 0x1e9   : > { %v2618_v15 = vadd.f32 %v2617_v24, %v2616_v21  ;;  %v1472_v36 = vsel %vm492_vm12, %v5763_v45, %v5762_v39  ;;  %v1474_v42 = vsel %vm492_vm12, %v5765_v47, %v5764_v1  ;;  %v1476_v32 = vsel %vm492_vm12, %v5767_v54, %v5766_v51  ;;  %v5774_v7 = vld [vmem:[#allocation61_spill] sm:$0xff]  ;;  %v5776_v13 = vld [vmem:[#allocation70_spill] sm:$0xff]  ;;  %v5779_v24 = vld [vmem:[#allocation27_spill] sm:$0xff] }
 0x1ea   : > { %v1478_v10 = vsel %vm492_vm12, %v5769_v49, %v5768_v60  ;;  %v1480_v19 = vsel %vm492_vm12, %v5771_v12, %v5770_v61  ;;  %v5197_v6 = vadd.f32 %v1470_v34, %v5772_v46  ;;  %v5200_v40 = vadd.f32 %v1472_v36, %v5773_v16  ;;  %v5775_v2 = vld [vmem:[#allocation77_spill] sm:$0xff]  ;;  %v5778_v21 = vld [vmem:[#allocation26_spill] sm:$0xff]  ;;  %v5780_v48 = vld [vmem:[#allocation47_spill] sm:$0xff] }
 0x1eb   : > { %2619 = vadd.xlane.f32.xlu1 %v2618_v15  ;;  %v5203_v31 = vadd.f32 %v1474_v42, %v5774_v7  ;;  %v5206_v25 = vadd.f32 %v1476_v32, %v5775_v2  ;;  %v5209_v14 = vadd.f32 %v1478_v10, %v5776_v13  ;;  %v5777_v20 = vld [vmem:[#allocation105_spill] sm:$0xff]  ;;  %v1602_v22 = vsel %vm492_vm12, %v5779_v24, %v5778_v21  ;;  %v5781_v5 = vld [vmem:[#allocation52_spill] sm:$0xff]  ;;  %v5783_v11 = vld [vmem:[#allocation79_spill] sm:$0xff] }
 0x1ec   : > { %v5212_v8 = vadd.f32 %v1480_v19, %v5777_v20  ;;  %v1604_v28 = vsel %vm492_vm12, %v5781_v5, %v5780_v48  ;;  %v5782_v44 = vld [vmem:[#allocation21_spill] sm:$0xff]  ;;  %v5785_v15 = vld [vmem:[#allocation87_spill] sm:$0xff]  ;;  %v5786_v45 = vld [vmem:[#allocation96_spill] sm:$0xff]  ;;  %v1764_v63 = vmul.f32 %v1356_v52, %v5123_v17 }
 0x1ed   : > { %v1606_v9 = vsel %vm492_vm12, %v5783_v11, %v5782_v44  ;;  %v5784_v34 = vld [vmem:[#allocation85_spill] sm:$0xff]  ;;  %v5787_v36 = vld [vmem:[#allocation99_spill] sm:$0xff]  ;;  %v5788_v47 = vld [vmem:[#allocation108_spill] sm:$0xff] }
 0x1ee   : > { %v1608_v39 = vsel %vm492_vm12, %v5785_v15, %v5784_v34  ;;  %v1610_v1 = vsel %vm492_vm12, %v5787_v36, %v5786_v45  ;;  %v5789_v42 = vld [vmem:[#allocation112_spill] sm:$0xff]  ;;  %v5791_v60 = vld [vmem:[#allocation53_spill] sm:$0xff]  ;;  %v5792_v10 = vld [vmem:[#allocation82_spill] sm:$0xff] }
 0x1ef   : > { %v1612_v51 = vsel %vm492_vm12, %v5789_v42, %v5788_v47  ;;  %v5790_v54 = vld [vmem:[#allocation28_spill] sm:$0xff]  ;;  %v5242_v49 = vadd.f32 %v1604_v28, %v5791_v60  ;;  %v5245_v61 = vadd.f32 %v1606_v9, %v5792_v10  ;;  %v5793_v12 = vld [vmem:[#allocation91_spill] sm:$0xff]  ;;  %v5794_v46 = vld [vmem:[#allocation101_spill] sm:$0xff] }
 0x1f0   : > { %v5239_v32 = vadd.f32 %v1602_v22, %v5790_v54  ;;  %v5248_v19 = vadd.f32 %v1608_v39, %v5793_v12  ;;  %v5251_v16 = vadd.f32 %v1610_v1, %v5794_v46  ;;  %v5795_v7 = vld [vmem:[#allocation115_spill] sm:$0xff]  ;;  %v5796_v13 = vld [vmem:[#allocation33_spill] sm:$0xff]  ;;  %v5797_v20 = vld [vmem:[#allocation36_spill] sm:$0xff] }
 0x1f1   : > { %v5254_v2 = vadd.f32 %v1612_v51, %v5795_v7  ;;  %v1734_v21 = vsel %vm492_vm12, %v5797_v20, %v5796_v13  ;;  %v5798_v24 = vld [vmem:[#allocation49_spill] sm:$0xff]  ;;  %v5799_v22 = vld [vmem:[#allocation54_spill] sm:$0xff]  ;;  %v5801_v28 = vld [vmem:[#allocation80_spill] sm:$0xff] }
 0x1f2   : > { %v1736_v48 = vsel %vm492_vm12, %v5799_v22, %v5798_v24  ;;  %v5800_v5 = vld [vmem:[#allocation22_spill] sm:$0xff]  ;;  %v5803_v9 = vld [vmem:[#allocation89_spill] sm:$0xff]  ;;  %v5805_v39 = vld [vmem:[#allocation100_spill] sm:$0xff] }
 0x1f3   : > { %v1738_v44 = vsel %vm492_vm12, %v5801_v28, %v5800_v5  ;;  %v5802_v11 = vld [vmem:[#allocation86_spill] sm:$0xff]  ;;  %v5804_v15 = vld [vmem:[#allocation97_spill] sm:$0xff]  ;;  %v5809_v54 = vld [vmem:[#allocation55_spill] sm:$0xff]  ;;  %v1758_v5 = vmul.f32 %v1350_v37, %v5101_v57  ;;  %v1760_v28 = vmul.f32 %v1352_v27, %v5107_v62 }
 0x1f4   : > { %v1740_v34 = vsel %vm492_vm12, %v5803_v9, %v5802_v11  ;;  %v1742_v45 = vsel %vm492_vm12, %v5805_v39, %v5804_v15  ;;  %v5806_v36 = vld [vmem:[#allocation109_spill] sm:$0xff]  ;;  %v1748_v60 = vadd.f32 %v1736_v48, %v5809_v54  ;;  %v5811_v46 = vld [vmem:[#allocation90_spill] sm:$0xff]  ;;  %v1762_v11 = vmul.f32 %v1354_v18, %v5110_v43 }
 0x1f5   : > { %v5807_v1 = vld [vmem:[#allocation113_spill] sm:$0xff]  ;;  %v1752_v7 = vadd.f32 %v1740_v34, %v5811_v46  ;;  %v5813_v24 = vld [vmem:[#allocation114_spill] sm:$0xff]  ;;  %v1768_v48 = vmul.f32 %v1360_v26, %v5133_v33  ;;  %v5298_v9 = vmul.f32 %v5107_v62, %v5107_v62  ;;  %v5302_v34 = vmul.f32 %v5110_v43, %v5110_v43 }
 0x1f6   : > { %v1744_v47 = vsel %vm492_vm12, %v5807_v1, %v5806_v36  ;;  %v5808_v42 = vld [vmem:[#allocation37_spill] sm:$0xff]  ;;  %v5306_v15 = vmul.f32 %v5123_v17, %v5123_v17  ;;  %v5310_v39 = vmul.f32 %v5126_v23, %v5126_v23  ;;  %v5318_v62 = vmul.f32 %v1352_v27, %v1352_v27 }
 0x1f7   : > { %v1746_v51 = vadd.f32 %v1734_v21, %v5808_v42  ;;  %v5810_v10 = vld [vmem:[#allocation81_spill] sm:$0xff]  ;;  %v1756_v22 = vadd.f32 %v1744_v47, %v5813_v24  ;;  %v1766_v21 = vmul.f32 %v1358_v35, %v5126_v23  ;;  %v5320_v36 = vmul.f32 %v1354_v18, %v1354_v18 }
 0x1f8   : > { %v1750_v12 = vadd.f32 %v1738_v44, %v5810_v10  ;;  %v5812_v13 = vld [vmem:[#allocation13_spill] sm:$0xff]  ;;  %v5294_v44 = vmul.f32 %v5101_v57, %v5101_v57  ;;  %v5314_v57 = vmul.f32 %v5133_v33, %v5133_v33  ;;  %v5322_v43 = vmul.f32 %v1356_v52, %v1356_v52 }
 0x1f9   : > { %v1754_v20 = vadd.f32 %v1742_v45, %v5812_v13  ;;  %v5316_v45 = vmul.f32 %v1350_v37, %v1350_v37  ;;  %v5324_v1 = vmul.f32 %v1358_v35, %v1358_v35  ;;  %v5326_v17 = vmul.f32 %v1360_v26, %v1360_v26 }
 0x1fa   : > { %v1794_v47 = vmul.f32 2.0, %v1758_v5  ;;  %v1796_v42 = vmul.f32 2.0, %v1760_v28  ;;  %v1798_v23 = vmul.f32 2.0, %v1762_v11  ;;  %v1800_v54 = vmul.f32 2.0, %v1764_v63 }
 0x1fb   : > { %v1802_v10 = vmul.f32 2.0, %v1766_v21  ;;  %v1804_v46 = vmul.f32 2.0, %v1768_v48  ;;  %v1818_v37 = vmul.f32 18.0, %v1746_v51  ;;  %v1820_v24 = vmul.f32 18.0, %v1748_v60 }
 0x1fc   : > { %v1806_v33 = vadd.f32 0.0081, %v1794_v47  ;;  %v1808_v13 = vadd.f32 0.0081, %v1796_v42  ;;  %v1810_v27 = vadd.f32 0.0081, %v1798_v23  ;;  %v1854_v52 = vadd.f32 %v5316_v45, %v5294_v44 }
 0x1fd   : > { %v1812_v29 = vadd.f32 0.0081, %v1800_v54  ;;  %v5328_v18 = vadd.f32 0.0081, %v1802_v10  ;;  %v5332_v35 = vadd.f32 0.0081, %v1804_v46  ;;  %v1830_v63 = vsub.f32 %v1818_v37, %v1794_v47 }
 0x1fe   : > { %v1822_v26 = vmul.f32 18.0, %v1750_v12  ;;  %v1824_v5 = vmul.f32 18.0, %v1752_v7  ;;  %v1826_v28 = vmul.f32 18.0, %v1754_v20  ;;  %v1828_v11 = vmul.f32 18.0, %v1756_v22 }
 0x1ff   : > { %v1832_v21 = vsub.f32 %v1820_v24, %v1796_v42  ;;  %v1856_v48 = vadd.f32 %v5318_v62, %v5298_v9  ;;  %v1858_v58 = vadd.f32 %v5320_v36, %v5302_v34  ;;  %v1842_v59 = vadd.f32 0.0729, %v1830_v63  ;;  %v5814_v63 = vld [vmem:[#allocation38_spill] sm:$0xff] }
 0x200   : > { %v1834_v51 = vsub.f32 %v1822_v26, %v1798_v23  ;;  %v1836_v60 = vsub.f32 %v1824_v5, %v1800_v54  ;;  %v1838_v38 = vsub.f32 %v1826_v28, %v1802_v10  ;;  %v1840_v30 = vsub.f32 %v1828_v11, %v1804_v46 }
 0x201   : > { %v1844_v4 = vadd.f32 0.0729, %v1832_v21  ;;  %v1860_v12 = vadd.f32 %v5322_v43, %v5306_v15  ;;  %v1862_v47 = vadd.f32 %v5324_v1, %v5310_v39  ;;  %v1864_v23 = vadd.f32 %v5326_v17, %v5314_v57  ;;  %v5815_v21 = vld [vmem:[#allocation39_spill] sm:$0xff] }
 0x202   : > { %v1846_v7 = vadd.f32 0.0729, %v1834_v51  ;;  %v1848_v20 = vadd.f32 0.0729, %v1836_v60  ;;  %v1850_v22 = vadd.f32 0.0729, %v1838_v38  ;;  %v1878_v26 = vadd.f32 %v5239_v32, %v5197_v6 }
 0x203   : > { %v1852_v42 = vadd.f32 0.0729, %v1840_v30  ;;  %v1866_v54 = vadd.f32 0.0081, %v1854_v52  ;;  %v1868_v10 = vadd.f32 0.0081, %v1856_v48  ;;  %v1880_v28 = vadd.f32 %v5242_v49, %v5200_v40 }
 0x204   : > { %v1870_v37 = vadd.f32 0.0081, %v1858_v58  ;;  %v1872_v24 = vadd.f32 0.0081, %v1860_v12  ;;  %v1874_v46 = vadd.f32 0.0081, %v1862_v47  ;;  %v1882_v38 = vadd.f32 %v5245_v61, %v5203_v31 }
 0x205   : > { %v1876_v5 = vadd.f32 0.0081, %v1864_v23  ;;  %v1884_v30 = vadd.f32 %v5248_v19, %v5206_v25  ;;  %v1886_v52 = vadd.f32 %v5251_v16, %v5209_v14  ;;  %v1888_v58 = vadd.f32 %v5254_v2, %v5212_v8  ;;  %v5816_v16 = vld [vmem:[#allocation83_spill] sm:$0xff]  ;;  %v5817_v2 = vld [vmem:[#allocation84_spill] sm:$0xff] }
 0x206   : > { %v1890_v11 = vmul.f32 9.0, %v1878_v26  ;;  %v1937_v6 = vmul.f32 %v5815_v21, %v5814_v63  ;;  %v1892_v32 = vmul.f32 9.0, %v1880_v28  ;;  %v1894_v48 = vmul.f32 9.0, %v1882_v38  ;;  %v5821_v38 = vld [vmem:[#allocation75_spill] sm:$0xff] }
 0x207   : > { %v1896_v51 = vmul.f32 9.0, %v1884_v30  ;;  %v5358_v40 = vmul.f32 %v1842_v59, %v1806_v33  ;;  %v1898_v49 = vmul.f32 9.0, %v1886_v52  ;;  %v1900_v31 = vmul.f32 9.0, %v1888_v58  ;;  %v5822_v52 = vld [vmem:[#allocation116_spill] sm:$0xff]  ;;  %v5823_v58 = vld [vmem:[#allocation117_spill] sm:$0xff] }
 0x208   : > { %v1902_v61 = vsub.f32 %v1890_v11, %v5294_v44  ;;  %v5361_v25 = vmul.f32 %v1844_v4, %v1808_v13  ;;  %v1904_v14 = vsub.f32 %v1892_v32, %v5298_v9  ;;  %v1906_v19 = vsub.f32 %v1894_v48, %v5302_v34  ;;  %v5818_v34 = vld [vmem:[#allocation92_spill] sm:$0xff]  ;;  %v5819_v13 = vld [vmem:[#allocation94_spill] sm:$0xff] }
 0x209   : > { %v1908_v8 = vsub.f32 %v1896_v51, %v5306_v15  ;;  %v1941_v60 = vmul.f32 %v5817_v2, %v5816_v16  ;;  %v1910_v12 = vsub.f32 %v1898_v49, %v5310_v39  ;;  %v1912_v59 = vsub.f32 %v1900_v31, %v5314_v57  ;;  %v5824_v48 = vld [vmem:[#allocation48_spill] sm:$0xff]  ;;  %v5826_v31 = vld [vmem:[#allocation63_spill] sm:$0xff] }
 0x20a   : > { %v1914_v33 = vsub.f32 %v1902_v61, %v5316_v45  ;;  %v5371_v47 = vmul.f32 %v1846_v7, %v1810_v27  ;;  %v1916_v4 = vsub.f32 %v1904_v14, %v5318_v62  ;;  %v1918_v44 = vsub.f32 %v1906_v19, %v5320_v36  ;;  %v5820_v7 = vld [vmem:[#allocation72_spill] sm:$0xff]  ;;  %v5828_v14 = vld [vmem:[#allocation102_spill] sm:$0xff] }
 0x20b   : > { %v1920_v9 = vsub.f32 %v1908_v8, %v5322_v43  ;;  %v1943_v15 = vmul.f32 %v5819_v13, %v5818_v34  ;;  %v1922_v23 = vsub.f32 %v1910_v12, %v5324_v1  ;;  %v1924_v26 = vsub.f32 %v1912_v59, %v5326_v17  ;;  %v5825_v49 = vld [vmem:[#allocation56_spill] sm:$0xff]  ;;  %v5829_v8 = vld [vmem:[#allocation106_spill] sm:$0xff] }
 0x20c   : > { %v1926_v39 = vadd.f32 0.0729, %v1914_v33  ;;  %v5380_v28 = vmul.f32 %v1848_v20, %v1812_v29  ;;  %v1928_v57 = vadd.f32 0.0729, %v1916_v4  ;;  %v1930_v45 = vadd.f32 0.0729, %v1918_v44 }
 0x20d   : > { %v1932_v27 = vadd.f32 0.0729, %v1920_v9  ;;  %v1945_v62 = vmul.f32 %v5821_v38, %v5820_v7  ;;  %v1934_v30 = vadd.f32 0.0729, %v1922_v23  ;;  %v1936_v36 = vadd.f32 0.0729, %v1924_v26 }
 0x20e   : > { %v5385_v43 = vmul.f32 %v1850_v22, %v5328_v18  ;;  %v1947_v11 = vmul.f32 %v5823_v58, %v5822_v52  ;;  %v5390_v1 = vmul.f32 %v1852_v42, %v5332_v35  ;;  %v1950_v17 = vmul.f32 %v1926_v39, %v1866_v54  ;;  %v5827_v18 = vld [vmem:[#allocation93_spill] sm:$0xff]  ;;  %v5830_v42 = vld [vmem:[#allocation6_spill] sm:$0xff] }
 0x20f   : > { %v1952_v29 = vmul.f32 %v1928_v57, %v1868_v10  ;;  %v1954_v20 = vmul.f32 %v1930_v45, %v1870_v37  ;;  %v1956_v63 = vmul.f32 %v1932_v27, %v1872_v24  ;;  %v1958_v21 = vmul.f32 %v1934_v30, %v1874_v46 }
 0x210   : > { %v1960_v32 = vmul.f32 %v1936_v36, %v1876_v5  ;;  %v1973_v51 = vmul.f32 %v5824_v48, %v1937_v6  ;;  %2997 = vrcp.f32 %v1950_v17  ;;  %v1975_v61 = vmul.f32 %v5826_v31, %v5825_v49  ;;  %v5831_v17 = vld [vmem:[#allocation7_spill] sm:$0xff]  ;;  %v5835_v49 = vld [vmem:[#allocation12_spill] sm:$0xff] }
 0x211   : > { %v1977_v22 = vmul.f32 %v5827_v18, %v1941_v60  ;;  %v1979_v19 = vmul.f32 %v5828_v14, %v1943_v15  ;;  %2999 = vrcp.f32 %v1952_v29  ;;  %v1981_v35 = vmul.f32 %v5829_v8, %v1945_v62  ;;  %v5834_v48 = vld [vmem:[#allocation11_spill] sm:$0xff] }
 0x212   : > { %v1983_v54 = vmul.f32 %v5830_v42, %v1947_v11  ;;  %v1985_v10 = vsub.f32 1.0, %v1973_v51  ;;  %3001 = vrcp.f32 %v1954_v20  ;;  %v1987_v37 = vsub.f32 1.0, %v1975_v61  ;;  %v5832_v20 = vld [vmem:[#allocation8_spill] sm:$0xff]  ;;  %v5836_v61 = vld [vmem:[#allocation10_spill] sm:$0xff]  ;;  %v5837_v14 = vld [vmem:[#allocation19_spill] sm:$0xff] }
 0x213   : > { %v1989_v24 = vsub.f32 1.0, %v1977_v22  ;;  %v1991_v46 = vsub.f32 1.0, %v1979_v19  ;;  %3003 = vrcp.f32 %v1956_v63  ;;  %v1993_v5 = vsub.f32 1.0, %v1981_v35 }
 0x214   : > { %v1995_v6 = vsub.f32 1.0, %v1983_v54  ;;  %v1997_v16 = vmul.f32 0.5, %v1985_v10  ;;  %3005 = vrcp.f32 %v1958_v21  ;;  %v1999_v2 = vmul.f32 0.5, %v1987_v37  ;;  %v5833_v21 = vld [vmem:[#allocation9_spill] sm:$0xff] }
 0x215   : > { %v2001_v12 = vmul.f32 0.5, %v1989_v24  ;;  %v2003_v60 = vmul.f32 0.5, %v1991_v46  ;;  %3007 = vrcp.f32 %v1960_v32  ;;  %v2005_v59 = vmul.f32 0.5, %v1993_v5 }
 0x216   : > { %v2007_v33 = vmul.f32 0.5, %v1995_v6  ;;  %v2009_v4 = vmax.f32 %v1997_v16, 0.0  ;;  %v2011_v44 = vmax.f32 %v1999_v2, 0.0  ;;  %v2085_v45 = vsub.f32 1.0, %v5034_v3 }
 0x217   : > { %v2013_v9 = vmax.f32 %v2001_v12, 0.0  ;;  %v2015_v34 = vmax.f32 %v2003_v60, 0.0  ;;  %v2017_v13 = vmax.f32 %v2005_v59, 0.0  ;;  %v2086_v38 = vsub.f32 1.0, %v5040_v50 }
 0x218   : > { %v2019_v15 = vmax.f32 %v2007_v33, 0.0  ;;  %v2021_v23 = vmin.f32 %v2009_v4, 1.0  ;;  %v2023_v26 = vmin.f32 %v2011_v44, 1.0  ;;  %v2207_v29 = vmin.f32 %v5831_v17, 1.0 }
 0x219   : > { %v2025_v39 = vmin.f32 %v2013_v9, 1.0  ;;  %v2027_v57 = vmin.f32 %v2015_v34, 1.0  ;;  %v2029_v27 = vmin.f32 %v2017_v13, 1.0  ;;  %v2208_v63 = vmin.f32 %v5832_v20, 1.0 }
 0x21a   : > { %v2031_v7 = vmin.f32 %v2019_v15, 1.0  ;;  %v2195_v62 = vmul.f32 0.85, %v2021_v23  ;;  %v2197_v30 = vmul.f32 0.85, %v2023_v26  ;;  %v2209_v32 = vmin.f32 %v5833_v21, 1.0 }
 0x21b   : > { %v5401_v36 = vmul.f32 0.85, %v2025_v39  ;;  %v5403_v52 = vmul.f32 0.85, %v2027_v57  ;;  %v5405_v58 = vmul.f32 0.85, %v2029_v27 }
 0x21c   : > { %v5407_v11 = vmul.f32 0.85, %v2031_v7  ;;  %v2210_v51 = vmin.f32 %v5834_v48, 1.0  ;;  %v2211_v31 = vmin.f32 %v5835_v49, 1.0  ;;  %v2212_v18 = vmin.f32 %v5836_v61, 1.0 }
 0x21d   : > { %v2998_v22 = vpop.eup %2997  ;;  %v2213_v19 = vmin.f32 %v5837_v14, 1.0  ;;  %v2214_v8 = vmin.f32 %v4931_v56, 1.0  ;;  %v2215_v35 = vmin.f32 %v4933_v53, 1.0  ;;  %v2216_v42 = vmin.f32 %v4935_v0, 1.0 }
 0x21e   : > { %v3000_v54 = vpop.eup %2999  ;;  %v1974_v10 = vmul.f32 %v2998_v22, %v5358_v40  ;;  %v2217_v37 = vmin.f32 %v4937_v41, 1.0  ;;  %v2218_v24 = vmin.f32 %v4939_v55, 1.0  ;;  %v2219_v46 = vmul.f32 0.15, %v2207_v29 }
 0x21f   : > { %v3002_v5 = vpop.eup %3001  ;;  %v1976_v6 = vmul.f32 %v3000_v54, %v5361_v25  ;;  %v2220_v16 = vmul.f32 0.15, %v2208_v63  ;;  %v2221_v2 = vmul.f32 0.15, %v2209_v32  ;;  %v2222_v12 = vmul.f32 0.15, %v2210_v51 }
 0x220   : > { %v3004_v60 = vpop.eup %3003  ;;  %v1978_v56 = vmul.f32 %v3002_v5, %v5371_v47  ;;  %v1986_v53 = vsub.f32 1.0, %v1974_v10  ;;  %v2223_v59 = vmul.f32 0.15, %v2211_v31  ;;  %v2224_v0 = vmul.f32 0.15, %v2212_v18 }
 0x221   : > { %v3006_v33 = vpop.eup %3005  ;;  %v1980_v40 = vmul.f32 %v3004_v60, %v5380_v28  ;;  %v1988_v4 = vsub.f32 1.0, %v1976_v6  ;;  %v2225_v41 = vmul.f32 0.15, %v2213_v19  ;;  %v2226_v44 = vmul.f32 0.15, %v2214_v8 }
 0x222   : > { %v3008_v55 = vpop.eup %3007  ;;  %v1982_v9 = vmul.f32 %v3006_v33, %v5385_v43  ;;  %v1990_v34 = vsub.f32 1.0, %v1978_v56  ;;  %v1998_v25 = vmul.f32 0.5, %v1986_v53  ;;  %v2227_v13 = vmul.f32 0.15, %v2215_v35 }
 0x223   : > { %v1984_v15 = vmul.f32 %v3008_v55, %v5390_v1  ;;  %v1992_v23 = vsub.f32 1.0, %v1980_v40  ;;  %v2000_v26 = vmul.f32 0.5, %v1988_v4  ;;  %v2228_v47 = vmul.f32 0.15, %v2216_v42 }
 0x224   : > { %v1994_v39 = vsub.f32 1.0, %v1982_v9  ;;  %v2002_v57 = vmul.f32 0.5, %v1990_v34  ;;  %v2010_v27 = vmax.f32 %v1998_v25, 0.0  ;;  %v2229_v7 = vmul.f32 0.15, %v2217_v37 }
 0x225   : > { %v1996_v17 = vsub.f32 1.0, %v1984_v15  ;;  %v2004_v28 = vmul.f32 0.5, %v1992_v23  ;;  %v2012_v29 = vmax.f32 %v2000_v26, 0.0  ;;  %v2230_v20 = vmul.f32 0.15, %v2218_v24  ;;  %v5838_v15 = vld [vmem:[#allocation69_spill] sm:$0xff] }
 0x226   : > { %v2006_v63 = vmul.f32 0.5, %v1994_v39  ;;  %v2014_v21 = vmax.f32 %v2002_v57, 0.0  ;;  %v2022_v32 = vmin.f32 %v2010_v27, 1.0  ;;  %v2231_v43 = vadd.f32 %v2219_v46, %v2195_v62 }
 0x227   : > { %v2008_v48 = vmul.f32 0.5, %v1996_v17  ;;  %v2016_v51 = vmax.f32 %v2004_v28, 0.0  ;;  %v2024_v49 = vmin.f32 %v2012_v29, 1.0  ;;  %v2233_v31 = vadd.f32 %v2221_v2, %v2197_v30  ;;  %v5840_v28 = vld [vmem:[#allocation29_spill] sm:$0xff] }
 0x228   : > { %v2018_v1 = vmax.f32 %v2006_v63, 0.0  ;;  %v2026_v61 = vmin.f32 %v2014_v21, 1.0  ;;  %v2196_v18 = vmul.f32 0.85, %v2022_v32  ;;  %v2235_v22 = vadd.f32 %v2223_v59, %v5401_v36  ;;  %v5841_v32 = vld [vmem:[#allocation30_spill] sm:$0xff] }
 0x229   : > { %v2020_v14 = vmax.f32 %v2008_v48, 0.0  ;;  %v2028_v19 = vmin.f32 %v2016_v51, 1.0  ;;  %v2198_v8 = vmul.f32 0.85, %v2024_v49  ;;  %v2237_v35 = vadd.f32 %v2225_v41, %v5403_v52 }
 0x22a   : > { %v2030_v42 = vmin.f32 %v2018_v1, 1.0  ;;  %v2200_v54 = vmul.f32 0.85, %v2026_v61  ;;  %v2232_v10 = vadd.f32 %v2220_v16, %v2196_v18  ;;  %v2239_v37 = vadd.f32 %v2227_v13, %v5405_v58  ;;  %v5842_v1 = vld [vmem:[#allocation40_spill] sm:$0xff]  ;;  %v5843_v18 = vld [vmem:[#allocation41_spill] sm:$0xff] }
 0x22b   : > { %v2032_v62 = vmin.f32 %v2020_v14, 1.0  ;;  %v2202_v24 = vmul.f32 0.85, %v2028_v19  ;;  %v2234_v46 = vadd.f32 %v2222_v12, %v2198_v8  ;;  %v2241_v30 = vadd.f32 %v2229_v7, %v5407_v11 }
 0x22c   : > { %v2204_v5 = vmul.f32 0.85, %v2030_v42  ;;  %v2236_v6 = vadd.f32 %v2224_v0, %v2200_v54  ;;  %v2243_v2 = vsel %vm2113_vm1, %v2231_v43, 0.0  ;;  %v2244_v36 = vsel %vm2113_vm1, %v2233_v31, 0.0 }
 0x22d   : > { %v2206_v60 = vmul.f32 0.85, %v2032_v62  ;;  %v2238_v56 = vadd.f32 %v2226_v44, %v2202_v24  ;;  %v2245_v53 = vadd.f32 %v2244_v36, %v2243_v2  ;;  %v2246_v52 = vsel %vm2113_vm1, %v2235_v22, 0.0 }
 0x22e   : > { %v2240_v59 = vadd.f32 %v2228_v47, %v2204_v5  ;;  %v2248_v16 = vsel %vm2113_vm1, %v2232_v10, 0.0  ;;  %v2249_v58 = vsel %vm2113_vm1, %v2234_v46, 0.0  ;;  %v2251_v12 = vsel %vm2113_vm1, %v2236_v6, 0.0  ;;  %v5839_v47 = vld [vmem:[#allocation16_spill] sm:$0xff] }
 0x22f   : > { %v2242_v33 = vadd.f32 %v2230_v20, %v2206_v60  ;;  %v2247_v11 = vadd.f32 %v2246_v52, %v2245_v53  ;;  %v2250_v40 = vadd.f32 %v2249_v58, %v2248_v16  ;;  %v2253_v0 = vsel %vm2113_vm1, %v2237_v35, 0.0 }
 0x230   : > { %v2254_v4 = vsel %vm2113_vm1, %v2239_v37, 0.0  ;;  %v2256_v41 = vsel %vm2113_vm1, %v2241_v30, 0.0  ;;  %v2258_v44 = vsel %vm2113_vm1, %v2238_v56, 0.0  ;;  %v2259_v55 = vsel %vm2113_vm1, %v2240_v59, 0.0 }
 0x231   : > { %v2252_v9 = vadd.f32 %v2251_v12, %v2250_v40  ;;  %v2255_v34 = vadd.f32 %v2254_v4, %v2253_v0  ;;  %v2260_v25 = vadd.f32 %v2259_v55, %v2258_v44  ;;  %v2261_v13 = vsel %vm2113_vm1, %v2242_v33, 0.0 }
 0x232   : > { %v2087_v23 = vsub.f32 1.0, %v5838_v15  ;;  %v2263_v26 = vmul.f32 0.33333334, %v2247_v11  ;;  %v2088_v39 = vsub.f32 1.0, %v5839_v47  ;;  %v2592_v29 = vsel %vm2113_vm1, %v5840_v28, 0.0 }
 0x233   : > { %v2257_v57 = vadd.f32 %v2256_v41, %v2255_v34  ;;  %v2262_v27 = vadd.f32 %v2261_v13, %v2260_v25  ;;  %v2264_v7 = vmul.f32 0.33333334, %v2252_v9  ;;  %v2593_v43 = vsel %vm2113_vm1, %v5841_v32, 0.0 }
 0x234   : > { %v2568_v17 = vmul.f32 %v2263_v26, %v2085_v45  ;;  %v2594_v45 = vadd.f32 %v2593_v43, %v2592_v29  ;;  %v2595_v50 = vsel %vm2113_vm1, %v5842_v1, 0.0  ;;  %v2597_v54 = vsel %vm2113_vm1, %v5843_v18, 0.0 }
 0x235   : > { %v2265_v20 = vmul.f32 0.33333334, %v2257_v57  ;;  %v2266_v63 = vmul.f32 0.33333334, %v2262_v27  ;;  %v2569_v21 = vmul.f32 %v2264_v7, %v2086_v38  ;;  %v5844_v7 = vld [vmem:[#allocation15_spill] sm:$0xff] }
 0x236   : > { %v2572_v48 = vmul.f32 %v2568_v17, %v5840_v28  ;;  %v2596_v35 = vadd.f32 %v2595_v50, %v2594_v45  ;;  %vm2640_vm3 = vcmp.eq.s32.totalorder %v5844_v7, 2  ;;  %vm2647_vm6 = vcmp.eq.s32.totalorder %v5844_v7, 3 }
 0x237   : > { %v2570_v51 = vmul.f32 %v2265_v20, %v2087_v23  ;;  %v2571_v49 = vmul.f32 %v2266_v63, %v2088_v39  ;;  %v2573_v31 = vmul.f32 %v2569_v21, %v5841_v32  ;;  %vm2641_vm7 = vmand %vm489_vm8, %vm2640_vm3  ;;  %v5846_v28 = vmov 0.0  }
 0x238   : > { %v2576_v3 = vsel %vm2113_vm1, %v2572_v48, 0.0  ;;  %v2598_v37 = vadd.f32 %v2597_v54, %v2596_v35  ;;  %v2803_v29 = vsel %vm2628_vm2, 1.0, %v5846_v28  ;;  %vm2648_vm4 = vmand %vm489_vm8, %vm2647_vm6  ;;  %v2805_v32 = vsel %vm2641_vm7, 1.0, %v5846_v28 }
 0x239   : > { %v2574_v61 = vmul.f32 %v2570_v51, %v5842_v1  ;;  %v2575_v22 = vmul.f32 %v2571_v49, %v5843_v18  ;;  %v2577_v14 = vsel %vm2113_vm1, %v2573_v31, 0.0  ;;  %v2806_v49 = vsel %vm2648_vm4, 1.0, %v5846_v28 }
 0x23a   : > { %v2578_v38 = vadd.f32 %v2577_v14, %v2576_v3 }
 0x23b   : > { %v2579_v19 = vsel %vm2113_vm1, %v2574_v61, 0.0  ;;  %v2581_v42 = vsel %vm2113_vm1, %v2575_v22, 0.0  ;;  %vm2633_vm1 = vcmp.eq.s32.totalorder %v5844_v7, 1 }
 0x23c   : > { %v2580_v8 = vadd.f32 %v2579_v19, %v2578_v38  ;;  %vm2634_vm5 = vmand %vm489_vm8, %vm2633_vm1 }
 0x23d   : > { %v2804_v63 = vsel %vm2634_vm5, 1.0, %v5846_v28 }
 0x23e   : > { %v2582_v10 = vadd.f32 %v2581_v42, %v2580_v8  ;;  %v2521_v62 = vpop.xlane.xlu0 %2520 }
 0x23f   : > { %v2522_v24 = vrot.slane %v2521_v62, 4 }
 0x240   : > { %2583 = vadd.xlane.f32.xlu0 %v2582_v10 }
 0x241   : > { %v2523_v46 = vadd.f32 %v2522_v24, %v2521_v62 }
 0x243   : > { %v2524_v30 = vrot.slane %v2523_v46, 2 }
 0x244   : > { %2599 = vadd.xlane.f32.xlu0 %v2598_v37 }
 0x245   : > { %v2525_v5 = vadd.f32 %v2524_v30, %v2523_v46 }
 0x247   : > { %v2526_v6 = vrot.slane %v2525_v5, 1 }
 0x249   : > { %v2527_v2 = vadd.f32 %v2526_v6, %v2525_v5 }
 0x24b   : > { %2874 = vpush %v2527_v2 }
 0x25d   : > { %v2558_v36 = vpop.xlane.xlu1 %2557 }
 0x25e   : > { %v2559_v60 = vrot.slane %v2558_v36, 4 }
 0x260   : > { %v2560_v56 = vadd.f32 %v2559_v60, %v2558_v36 }
 0x262   : > { %v2561_v53 = vrot.slane %v2560_v56, 2 }
 0x264   : > { %v2562_v52 = vadd.f32 %v2561_v53, %v2560_v56 }
 0x266   : > { %v2563_v59 = vrot.slane %v2562_v52, 1 }
 0x268   : > { %v2564_v16 = vadd.f32 %v2563_v59, %v2562_v52 }
 0x26a   : > { %2876 = vpush %v2564_v16 }
 0x274   : > { %v2620_v58 = vpop.xlane.xlu1 %2619 }
 0x275   : > { %v2621_v12 = vrot.slane %v2620_v58, 4 }
 0x277   : > { %v2622_v33 = vadd.f32 %v2621_v12, %v2620_v58 }
 0x279   : > { %v2623_v4 = vrot.slane %v2622_v33, 2 }
 0x27b   : > { %v2624_v25 = vadd.f32 %v2623_v4, %v2622_v33 }
 0x27c   : > { %s2875_s30 = spop %2874 }
 0x27d   : > { %v2625_v47 = vrot.slane %v2624_v25, 1  ;;  %s2529_s11 = smul.f32 0.0020833334, %s2875_s30 }
 0x27f   : > { %v2626_v27 = vadd.f32 %v2625_v47, %v2624_v25 }
 0x29b   : > { %s2877_s10 = spop %2876 }
 0x29c   : > { %s2566_s12 = smul.f32 0.0020833334, %s2877_s10 }
 0x29e   : > { %s2567_s14 = sadd.f32 %s2566_s12, %s2529_s11 }
 0x2a0   : > { %v2651_v31 = vstv %s2567_s14 }
 0x2a1   : > { %v2652_v1 = vmul.f32 %v2806_v49, %v2651_v31 }
 0x2c9   : > { %v2584_v11 = vpop.xlane.xlu0 %2583 }
 0x2ca   : > { %v2585_v40 = vrot.slane %v2584_v11, 4 }
 0x2cc   : > { %v2586_v0 = vadd.f32 %v2585_v40, %v2584_v11 }
 0x2cd   : > { %v2600_v41 = vpop.xlane.xlu0 %2599 }
 0x2ce   : > { %v2587_v44 = vrot.slane %v2586_v0, 2  ;;  %v2601_v55 = vrot.slane %v2600_v41, 4 }
 0x2d0   : > { %v2602_v9 = vadd.f32 %v2601_v55, %v2600_v41  ;;  %v2588_v34 = vadd.f32 %v2587_v44, %v2586_v0 }
 0x2d2   : > { %v2603_v13 = vrot.slane %v2602_v9, 2  ;;  %v2589_v15 = vrot.slane %v2588_v34, 1 }
 0x2d4   : > { %v2604_v23 = vadd.f32 %v2603_v13, %v2602_v9  ;;  %v2590_v26 = vadd.f32 %v2589_v15, %v2588_v34 }
 0x2d6   : > { %2878 = vpush %v2590_v26  ;;  %v2605_v39 = vrot.slane %v2604_v23, 1 }
 0x2d8   : > { %v2606_v57 = vadd.f32 %v2605_v39, %v2604_v23 }
 0x2da   : > { %2880 = vpush %v2606_v57 }
 0x2db   : > { %2882 = vpush %v2626_v27 }
 0x307   : > { %s2879_s13 = spop %2878 }
 0x308   : > { %v2631_v20 = vstv %s2879_s13 }
 0x309   : > { %v2632_v43 = vmul.f32 %v2803_v29, %v2631_v20 }
 0x30b   : > { %s2881_s15 = spop %2880 }
 0x30c   : > { %v2637_v21 = vstv %s2881_s15  ;;  %s2883_s16 = spop %2882 }
 0x30d   : > { %v2638_v48 = vmul.f32 %v2804_v63, %v2637_v21  ;;  %v2644_v51 = vstv %s2883_s16 }
 0x30e   : > { %v2645_v45 = vmul.f32 %v2805_v32, %v2644_v51 }
 0x30f   : > { %v2639_v3 = vadd.f32 %v2638_v48, %v2632_v43 }
 0x311   : > { %v2646_v61 = vadd.f32 %v2645_v45, %v2639_v3 }
 0x313   : > { %v2653_v18 = vadd.f32 %v2652_v1, %v2646_v61 }
 0x315   : > { %2654 = vst [vmem:[%s429_s19] sm:$0xff] %v2653_v18 }
 0x316 PF: > { %s29_s1 = sadd.s32 1, %s3063_s1  }
 0x317   : > { %p26_p3 = scmp.ge.s32.totalorder %s29_s1, 8  }
 0x319   :  { %28 = sbr.rel (!%p26_p3) target bundleno = 26 (0x1a), region = 96 }

</bundles_post_ra>
